<compile_context>
chip_gen: v7x
topology: tpu7x:2x2x1
jax: 0.10.0
libtpu: 0.0.40
codegen_flags: <defaults>
</compile_context>

<pallas_src>
import jax
import jax.numpy as jnp
from jax.experimental import pallas as pl
from jax.experimental.pallas import tpu as pltpu


_VMEM_LIMIT = 32 * 1024 * 1024        # explicit scoped-VMEM request (safe on all chips)
_VMEM_TILE_BUDGET = 24 * 1024 * 1024  # budget for double-buffered tiles (v7x-safe)
_MAX_TILE_M = 1024                    # raised from 512 per perf review


def _round_up(x, m):
    return (x + m - 1) // m * m


def _choose_tile_m(M, K, c_pad):
    """Pick an M tile (multiple of 8) that keeps double-buffered tiles in budget."""
    tile = min(_MAX_TILE_M, _round_up(M, 8))

    def vmem_est(t):
        # 2x bf16 patch tiles + 2x bf16 weight buffers + 2x bf16 y/out tiles
        # + small per-tile stats blocks.
        return (2 * t * K * 2 + 2 * K * c_pad * 2 + 2 * t * c_pad * 2
                + 4 * 8 * c_pad * 4)

    while tile > 8 and vmem_est(tile) > _VMEM_TILE_BUDGET:
        tile = max(8, _round_up(tile // 2, 8))
    return tile


# ---------------------------------------------------------------------------
# Pallas kernels
# ---------------------------------------------------------------------------
def _gemm_stats_kernel(p_ref, w_ref, y_ref, s_ref, ss_ref):
    """Tiled GEMM (bf16 x bf16 -> f32 acc) + per-tile partial channel stats.

    y is stored in bf16; sum/sumsq are computed from the f32 accumulator and
    written as this tile's OWN partial block (no resident accumulator), so the
    M grid axis is safely "parallel" (megacore on v7x).
    """
    acc = jnp.dot(p_ref[...], w_ref[...], preferred_element_type=jnp.float32)
    y_ref[...] = acc.astype(y_ref.dtype)

    tile_sum = jnp.sum(acc, axis=0, keepdims=True)        # (1, Cpad)
    tile_sq = jnp.sum(acc * acc, axis=0, keepdims=True)   # (1, Cpad)
    # Broadcast into all 8 sublane rows so the store is a full (8, Cpad) tile;
    # only row 0 of each per-tile block is consumed by the host-side reduce.
    s_ref[...] = jnp.broadcast_to(tile_sum, s_ref.shape)
    ss_ref[...] = jnp.broadcast_to(tile_sq, ss_ref.shape)


def _affine_relu_kernel(y_ref, scale_ref, shift_ref, o_ref):
    """Elementwise BatchNorm-affine + ReLU over one M tile (bf16 in / bf16 out)."""
    y = y_ref[...].astype(jnp.float32)
    o_ref[...] = jnp.maximum(y * scale_ref[...] + shift_ref[...], 0.0).astype(o_ref.dtype)


def _gemm_bias_relu_kernel(p_ref, w_ref, b_ref, o_ref):
    """Tiled GEMM + bias + ReLU (final no-norm layer, f32 boundary output)."""
    acc = jnp.dot(p_ref[...], w_ref[...], preferred_element_type=jnp.float32)
    o_ref[...] = jnp.maximum(acc + b_ref[...], 0.0).astype(o_ref.dtype)


# ---------------------------------------------------------------------------
# Glue: NHWC im2col (pure strided slices / concat, stays in JAX)
# ---------------------------------------------------------------------------
def _im2col_nhwc(x, k=4, s=2, p=1):
    N, H, W, C = x.shape
    xp = jnp.pad(x, ((0, 0), (p, p), (p, p), (0, 0)))
    Ho = (H + 2 * p - k) // s + 1
    Wo = (W + 2 * p - k) // s + 1
    cols = []
    for kh in range(k):
        for kw in range(k):
            cols.append(xp[:, kh:kh + s * Ho:s, kw:kw + s * Wo:s, :])  # (N,Ho,Wo,C)
    patches = jnp.concatenate(cols, axis=-1)        # K ordering = (kh, kw, c_in)
    return patches.reshape(N * Ho * Wo, k * k * C), Ho, Wo


# ---------------------------------------------------------------------------
# One Conv2d(4,2,1) [+ BatchNorm2d] + ReLU layer, NHWC in / NHWC out
# ---------------------------------------------------------------------------
def conv_block_nhwc(x, w, b, gamma, beta, use_bn, eps=1e-5):
    N, H, W, Cin = x.shape
    Cout = w.shape[0]
    patches, Ho, Wo = _im2col_nhwc(x)
    M, K = patches.shape

    c_pad = _round_up(Cout, 128)             # lane-dense output channels
    tile_m = _choose_tile_m(M, K, c_pad)
    m_pad = _round_up(M, tile_m)
    grid_m = m_pad // tile_m

    # bf16 MXU operands, zero-padded to tile-aligned / lane-dense shapes.
    # (astype is a no-op for layers whose activations are already bf16.)
    p_bf = jnp.pad(patches, ((0, m_pad - M), (0, 0))).astype(jnp.bfloat16)
    # PyTorch weight (Cout, Cin, kh, kw) -> (K, Cout) with K order (kh, kw, cin).
    w2 = jnp.transpose(w, (2, 3, 1, 0)).reshape(K, Cout)
    w_bf = jnp.pad(w2, ((0, 0), (0, c_pad - Cout))).astype(jnp.bfloat16)

    if use_bn:
        # Pass 1: parallel tiled GEMM + per-tile partial sum/sumsq, y in bf16.
        y, s, ss = pl.pallas_call(
            _gemm_stats_kernel,
            out_shape=(
                jax.ShapeDtypeStruct((m_pad, c_pad), jnp.bfloat16),
                jax.ShapeDtypeStruct((grid_m * 8, c_pad), jnp.float32),
                jax.ShapeDtypeStruct((grid_m * 8, c_pad), jnp.float32),
            ),
            grid=(grid_m,),
            in_specs=[
                pl.BlockSpec((tile_m, K), lambda i: (i, 0)),
                pl.BlockSpec((K, c_pad), lambda i: (0, 0)),
            ],
            out_specs=(
                pl.BlockSpec((tile_m, c_pad), lambda i: (i, 0)),
                pl.BlockSpec((8, c_pad), lambda i: (i, 0)),
                pl.BlockSpec((8, c_pad), lambda i: (i, 0)),
            ),
            compiler_params=pltpu.CompilerParams(
                dimension_semantics=("parallel",),
                vmem_limit_bytes=_VMEM_LIMIT),
        )(p_bf, w_bf)

        # Tiny per-channel stat reduction (grid_m x c_pad values) in JAX glue.
        # Padded rows/channels are all-zero, so they add 0 to sum/sumsq.
        # TODO(synk): E[x^2]-E[x]^2 in f32 is cancellation-prone for huge M;
        # switch to a Welford-style per-tile combine if that regime matters.
        cnt = jnp.float32(M)
        s_tot = jnp.sum(s.reshape(grid_m, 8, c_pad)[:, 0, :], axis=0)
        ss_tot = jnp.sum(ss.reshape(grid_m, 8, c_pad)[:, 0, :], axis=0)
        mean = s_tot / cnt
        var = jnp.maximum(ss_tot / cnt - mean * mean, 0.0)   # biased var (PyTorch train)
        inv = jax.lax.rsqrt(var + eps)
        g = jnp.pad(gamma, (0, c_pad - Cout))
        bt = jnp.pad(beta, (0, c_pad - Cout))
        scale = (g * inv).reshape(1, c_pad)
        shift = (bt - mean * g * inv).reshape(1, c_pad)
        # Conv bias is intentionally omitted: it cancels exactly in the BN mean
        # subtraction, so the result matches PyTorch Conv2d + BatchNorm2d.

        # Pass 2: parallel tiled affine + ReLU, bf16 in / bf16 out.
        out = pl.pallas_call(
            _affine_relu_kernel,
            out_shape=jax.ShapeDtypeStruct((m_pad, c_pad), jnp.bfloat16),
            grid=(grid_m,),
            in_specs=[
                pl.BlockSpec((tile_m, c_pad), lambda i: (i, 0)),
                pl.BlockSpec((1, c_pad), lambda i: (0, 0)),
                pl.BlockSpec((1, c_pad), lambda i: (0, 0)),
            ],
            out_specs=pl.BlockSpec((tile_m, c_pad), lambda i: (i, 0)),
            compiler_params=pltpu.CompilerParams(
                dimension_semantics=("parallel",),
                vmem_limit_bytes=_VMEM_LIMIT),
        )(y, scale, shift)
    else:
        b_pad = jnp.pad(b, (0, c_pad - Cout)).reshape(1, c_pad)
        out = pl.pallas_call(
            _gemm_bias_relu_kernel,
            out_shape=jax.ShapeDtypeStruct((m_pad, c_pad), jnp.float32),
            grid=(grid_m,),
            in_specs=[
                pl.BlockSpec((tile_m, K), lambda i: (i, 0)),
                pl.BlockSpec((K, c_pad), lambda i: (0, 0)),
                pl.BlockSpec((1, c_pad), lambda i: (0, 0)),
            ],
            out_specs=pl.BlockSpec((tile_m, c_pad), lambda i: (i, 0)),
            compiler_params=pltpu.CompilerParams(
                dimension_semantics=("parallel",),
                vmem_limit_bytes=_VMEM_LIMIT),
        )(p_bf, w_bf, b_pad)

    return out[:M, :Cout].reshape(N, Ho, Wo, Cout)


# ---------------------------------------------------------------------------
# Parameter construction (mirrors Encoder.__init__ layer shapes)
# ---------------------------------------------------------------------------
def init_encoder_params(key, input_nc, ngf, n_downsampling):
    layers = [(input_nc, ngf, True)]
    mult = 1
    for i in range(n_downsampling - 1):
        mult = 2 ** i
        layers.append((ngf * mult, ngf * mult * 2, True))
    mult *= 2
    layers.append((ngf * mult, ngf * mult * 2, False))   # final conv: ReLU only

    params, flags = [], []
    for (cin, cout, use_bn) in layers:
        key, kw, kb = jax.random.split(key, 3)
        fan_in = cin * 16
        w = jax.random.normal(kw, (cout, cin, 4, 4), jnp.float32) / jnp.sqrt(fan_in)
        b = 0.01 * jax.random.normal(kb, (cout,), jnp.float32)
        if use_bn:
            gamma = 1.0 + 0.05 * jnp.arange(cout, dtype=jnp.float32) / cout
            beta = 0.01 * jnp.arange(cout, dtype=jnp.float32)
        else:
            gamma = jnp.ones((cout,), jnp.float32)
            beta = jnp.zeros((cout,), jnp.float32)
        params.append(dict(w=w, b=b, gamma=gamma, beta=beta))
        flags.append(bool(use_bn))
    return params, tuple(flags)


def encoder_forward(x_nchw, params, use_bn_flags):
    h = jnp.transpose(x_nchw, (0, 2, 3, 1))            # NCHW -> NHWC once
    for p, use_bn in zip(params, use_bn_flags):
        h = conv_block_nhwc(h, p["w"], p["b"], p["gamma"], p["beta"], use_bn)
    fea = jnp.transpose(h, (0, 3, 1, 2))               # NHWC -> NCHW at boundary
    mu, std = jnp.split(fea, 2, axis=1)                # torch.chunk(fea, 2, dim=1)
    return mu, std


# Pure-JAX f32 reference for correctness checking.
def encoder_reference(x, params, use_bn_flags):
    h = x
    for p, use_bn in zip(params, use_bn_flags):
        h = jax.lax.conv_general_dilated(
            h, p["w"], window_strides=(2, 2), padding=((1, 1), (1, 1)),
            dimension_numbers=("NCHW", "OIHW", "NCHW"))
        h = h + p["b"][None, :, None, None]
        if use_bn:
            mean = jnp.mean(h, axis=(0, 2, 3), keepdims=True)
            var = jnp.mean((h - mean) ** 2, axis=(0, 2, 3), keepdims=True)
            h = (h - mean) * jax.lax.rsqrt(var + 1e-5)
            h = h * p["gamma"][None, :, None, None] + p["beta"][None, :, None, None]
        h = jnp.maximum(h, 0.0)
    mu, std = jnp.split(h, 2, axis=1)
    return mu, std


if __name__ == "__main__":
    # Encoder(input_nc=4, ngf=8, n_downsampling=2); x: (2, 4, 64, 64) so the
    # first layer exercises a multi-tile M grid (M = 2048, TILE_M = 1024 -> 2 tiles)
    # and the partial-stats reduction path.
    input_nc, ngf, n_down = 4, 8, 2
    key = jax.random.PRNGKey(0)
    key, kx = jax.random.split(key)
    x = jax.random.normal(kx, (2, input_nc, 64, 64), jnp.float32)

    params, bn_flags = init_encoder_params(key, input_nc, ngf, n_down)

    fwd = jax.jit(encoder_forward, static_argnums=(2,))
    mu, std = fwd(x, params, bn_flags)
    mu = jax.block_until_ready(mu)
    std = jax.block_until_ready(std)

    mu_ref, std_ref = encoder_reference(x, params, bn_flags)

    assert mu.shape == (2, 2 * ngf, 8, 8) and std.shape == (2, 2 * ngf, 8, 8)
    # bf16 MXU operands + bf16 intermediate activations (f32 accumulation) vs.
    # an all-f32 reference => loose tolerance.
    assert jnp.allclose(mu, mu_ref, atol=5e-2, rtol=5e-2), \
        float(jnp.max(jnp.abs(mu - mu_ref)))
    assert jnp.allclose(std, std_ref, atol=5e-2, rtol=5e-2), \
        float(jnp.max(jnp.abs(std - std_ref)))

    print("KERNEL_OK")
</pallas_src>

<mosaic_0001>
module attributes {stable_mosaic.version = 11 : i64} {
  func.func @_gemm_stats_kernel(%arg0: i32, %arg1: memref<1024x64xbf16, #tpu.memory_space<vmem>>, %arg2: memref<64x128xbf16, #tpu.memory_space<vmem>>, %arg3: memref<1024x128xbf16, #tpu.memory_space<vmem>>, %arg4: memref<8x128xf32, #tpu.memory_space<vmem>>, %arg5: memref<8x128xf32, #tpu.memory_space<vmem>>) attributes {dimension_semantics = [#tpu.dimension_semantics<parallel>], iteration_bounds = array<i64: 2>, scalar_prefetch = 0 : i64, scratch_operands = 0 : i64, tpu.core_type = #tpu.core_type<tc>, window_params = [{transform_indices = @transform_0, window_bounds = array<i64: 1024, 64>}, {pipeline_mode = #tpu.pipeline_mode<synchronous>, transform_indices = @transform_1, window_bounds = array<i64: 64, 128>}, {transform_indices = @transform_2, window_bounds = array<i64: 1024, 128>}, {transform_indices = @transform_3, window_bounds = array<i64: 8, 128>}, {transform_indices = @transform_4, window_bounds = array<i64: 8, 128>}]} {
    %c0 = arith.constant 0 : index
    %c0_0 = arith.constant 0 : index
    %0 = vector.load %arg1[%c0, %c0_0] : memref<1024x64xbf16, #tpu.memory_space<vmem>>, vector<1024x64xbf16>
    %c0_1 = arith.constant 0 : index
    %c0_2 = arith.constant 0 : index
    %1 = vector.load %arg2[%c0_1, %c0_2] : memref<64x128xbf16, #tpu.memory_space<vmem>>, vector<64x128xbf16>
    %cst = arith.constant dense<0.000000e+00> : vector<1024x128xf32>
    %2 = tpu.matmul %0, %1, %cst {dimension_numbers = #tpu.dot_dimension_numbers<[1], [0], [0], [1], [0, 0, 1, 1], [], []>} : vector<1024x64xbf16>, vector<64x128xbf16>, vector<1024x128xf32> -> vector<1024x128xf32>
    %3 = arith.truncf %2 : vector<1024x128xf32> to vector<1024x128xbf16>
    %c0_3 = arith.constant 0 : index
    %c0_4 = arith.constant 0 : index
    %4 = vector.load %arg3[%c0_3, %c0_4] : memref<1024x128xbf16, #tpu.memory_space<vmem>>, vector<1024x128xbf16>
    tpu.vector_store %arg3[%c0_3, %c0_4], %3 {strides = array<i32>} : memref<1024x128xbf16, #tpu.memory_space<vmem>>, vector<1024x128xbf16>,
    %cst_5 = arith.constant dense<0.000000e+00> : vector<128xf32>
    %5 = vector.multi_reduction <add>, %2, %cst_5 [0] : vector<1024x128xf32> to vector<128xf32>
    %6 = vector.shape_cast %5 : vector<128xf32> to vector<1x128xf32>
    %7 = arith.mulf %2, %2 : vector<1024x128xf32>
    %cst_6 = arith.constant dense<0.000000e+00> : vector<128xf32>
    %8 = vector.multi_reduction <add>, %7, %cst_6 [0] : vector<1024x128xf32> to vector<128xf32>
    %9 = vector.shape_cast %8 : vector<128xf32> to vector<1x128xf32>
    %10 = vector.shape_cast %6 : vector<1x128xf32> to vector<1x128xf32>
    %11 = vector.broadcast %10 : vector<1x128xf32> to vector<8x128xf32>
    %c0_7 = arith.constant 0 : index
    %c0_8 = arith.constant 0 : index
    %12 = vector.load %arg4[%c0_7, %c0_8] : memref<8x128xf32, #tpu.memory_space<vmem>>, vector<8x128xf32>
    tpu.vector_store %arg4[%c0_7, %c0_8], %11 {strides = array<i32>} : memref<8x128xf32, #tpu.memory_space<vmem>>, vector<8x128xf32>,
    %13 = vector.shape_cast %9 : vector<1x128xf32> to vector<1x128xf32>
    %14 = vector.broadcast %13 : vector<1x128xf32> to vector<8x128xf32>
    %c0_9 = arith.constant 0 : index
    %c0_10 = arith.constant 0 : index
    %15 = vector.load %arg5[%c0_9, %c0_10] : memref<8x128xf32, #tpu.memory_space<vmem>>, vector<8x128xf32>
    tpu.vector_store %arg5[%c0_9, %c0_10], %14 {strides = array<i32>} : memref<8x128xf32, #tpu.memory_space<vmem>>, vector<8x128xf32>,
    return
  }
  func.func @transform_0(%arg0: i32) -> (i32, i32) {
    %c0_i32 = arith.constant 0 : i32
    %c0_i32_0 = arith.constant 0 : i32
    return %arg0, %c0_i32 : i32, i32
  }
  func.func @transform_1(%arg0: i32) -> (i32, i32) {
    %c0_i32 = arith.constant 0 : i32
    %c0_i32_0 = arith.constant 0 : i32
    %c0_i32_1 = arith.constant 0 : i32
    return %c0_i32, %c0_i32_0 : i32, i32
  }
  func.func @transform_2(%arg0: i32) -> (i32, i32) {
    %c0_i32 = arith.constant 0 : i32
    %c0_i32_0 = arith.constant 0 : i32
    return %arg0, %c0_i32 : i32, i32
  }
  func.func @transform_3(%arg0: i32) -> (i32, i32) {
    %c0_i32 = arith.constant 0 : i32
    %c0_i32_0 = arith.constant 0 : i32
    return %arg0, %c0_i32 : i32, i32
  }
  func.func @transform_4(%arg0: i32) -> (i32, i32) {
    %c0_i32 = arith.constant 0 : i32
    %c0_i32_0 = arith.constant 0 : i32
    return %arg0, %c0_i32 : i32, i32
  }
}

module attributes {stable_mosaic.version = 11 : i64} {
  func.func @_affine_relu_kernel(%arg0: i32, %arg1: memref<1024x128xbf16, #tpu.memory_space<vmem>>, %arg2: memref<1x128xf32, #tpu.memory_space<vmem>>, %arg3: memref<1x128xf32, #tpu.memory_space<vmem>>, %arg4: memref<1024x128xbf16, #tpu.memory_space<vmem>>) attributes {dimension_semantics = [#tpu.dimension_semantics<parallel>], iteration_bounds = array<i64: 2>, scalar_prefetch = 0 : i64, scratch_operands = 0 : i64, tpu.core_type = #tpu.core_type<tc>, window_params = [{transform_indices = @transform_0, window_bounds = array<i64: 1024, 128>}, {pipeline_mode = #tpu.pipeline_mode<synchronous>, transform_indices = @transform_1, window_bounds = array<i64: 1, 128>}, {pipeline_mode = #tpu.pipeline_mode<synchronous>, transform_indices = @transform_2, window_bounds = array<i64: 1, 128>}, {transform_indices = @transform_3, window_bounds = array<i64: 1024, 128>}]} {
    %c0 = arith.constant 0 : index
    %c0_0 = arith.constant 0 : index
    %0 = vector.load %arg1[%c0, %c0_0] : memref<1024x128xbf16, #tpu.memory_space<vmem>>, vector<1024x128xbf16>
    %1 = arith.extf %0 : vector<1024x128xbf16> to vector<1024x128xf32>
    %c0_1 = arith.constant 0 : index
    %c0_2 = arith.constant 0 : index
    %2 = vector.load %arg2[%c0_1, %c0_2] : memref<1x128xf32, #tpu.memory_space<vmem>>, vector<1x128xf32>
    %3 = vector.broadcast %2 : vector<1x128xf32> to vector<1024x128xf32>
    %4 = arith.mulf %1, %3 : vector<1024x128xf32>
    %c0_3 = arith.constant 0 : index
    %c0_4 = arith.constant 0 : index
    %5 = vector.load %arg3[%c0_3, %c0_4] : memref<1x128xf32, #tpu.memory_space<vmem>>, vector<1x128xf32>
    %6 = vector.broadcast %5 : vector<1x128xf32> to vector<1024x128xf32>
    %7 = arith.addf %4, %6 : vector<1024x128xf32>
    %cst = arith.constant 0.000000e+00 : f32
    %8 = vector.broadcast %cst : f32 to vector<1024x128xf32>
    %9 = arith.maximumf %7, %8 : vector<1024x128xf32>
    %10 = arith.truncf %9 : vector<1024x128xf32> to vector<1024x128xbf16>
    %c0_5 = arith.constant 0 : index
    %c0_6 = arith.constant 0 : index
    %11 = vector.load %arg4[%c0_5, %c0_6] : memref<1024x128xbf16, #tpu.memory_space<vmem>>, vector<1024x128xbf16>
    tpu.vector_store %arg4[%c0_5, %c0_6], %10 {strides = array<i32>} : memref<1024x128xbf16, #tpu.memory_space<vmem>>, vector<1024x128xbf16>,
    return
  }
  func.func @transform_0(%arg0: i32) -> (i32, i32) {
    %c0_i32 = arith.constant 0 : i32
    %c0_i32_0 = arith.constant 0 : i32
    return %arg0, %c0_i32 : i32, i32
  }
  func.func @transform_1(%arg0: i32) -> (i32, i32) {
    %c0_i32 = arith.constant 0 : i32
    %c0_i32_0 = arith.constant 0 : i32
    %c0_i32_1 = arith.constant 0 : i32
    return %c0_i32, %c0_i32_0 : i32, i32
  }
  func.func @transform_2(%arg0: i32) -> (i32, i32) {
    %c0_i32 = arith.constant 0 : i32
    %c0_i32_0 = arith.constant 0 : i32
    %c0_i32_1 = arith.constant 0 : i32
    return %c0_i32, %c0_i32_0 : i32, i32
  }
  func.func @transform_3(%arg0: i32) -> (i32, i32) {
    %c0_i32 = arith.constant 0 : i32
    %c0_i32_0 = arith.constant 0 : i32
    return %arg0, %c0_i32 : i32, i32
  }
}

module attributes {stable_mosaic.version = 11 : i64} {
  func.func @_gemm_stats_kernel(%arg0: i32, %arg1: memref<512x128xbf16, #tpu.memory_space<vmem>>, %arg2: memref<128x128xbf16, #tpu.memory_space<vmem>>, %arg3: memref<512x128xbf16, #tpu.memory_space<vmem>>, %arg4: memref<8x128xf32, #tpu.memory_space<vmem>>, %arg5: memref<8x128xf32, #tpu.memory_space<vmem>>) attributes {dimension_semantics = [#tpu.dimension_semantics<parallel>], iteration_bounds = array<i64: 1>, scalar_prefetch = 0 : i64, scratch_operands = 0 : i64, tpu.core_type = #tpu.core_type<tc>, window_params = [{transform_indices = @transform_0, window_bounds = array<i64: 512, 128>}, {pipeline_mode = #tpu.pipeline_mode<synchronous>, transform_indices = @transform_1, window_bounds = array<i64: 128, 128>}, {transform_indices = @transform_2, window_bounds = array<i64: 512, 128>}, {transform_indices = @transform_3, window_bounds = array<i64: 8, 128>}, {transform_indices = @transform_4, window_bounds = array<i64: 8, 128>}]} {
    %c0 = arith.constant 0 : index
    %c0_0 = arith.constant 0 : index
    %0 = vector.load %arg1[%c0, %c0_0] : memref<512x128xbf16, #tpu.memory_space<vmem>>, vector<512x128xbf16>
    %c0_1 = arith.constant 0 : index
    %c0_2 = arith.constant 0 : index
    %1 = vector.load %arg2[%c0_1, %c0_2] : memref<128x128xbf16, #tpu.memory_space<vmem>>, vector<128x128xbf16>
    %cst = arith.constant dense<0.000000e+00> : vector<512x128xf32>
    %2 = tpu.matmul %0, %1, %cst {dimension_numbers = #tpu.dot_dimension_numbers<[1], [0], [0], [1], [0, 0, 1, 1], [], []>} : vector<512x128xbf16>, vector<128x128xbf16>, vector<512x128xf32> -> vector<512x128xf32>
    %3 = arith.truncf %2 : vector<512x128xf32> to vector<512x128xbf16>
    %c0_3 = arith.constant 0 : index
    %c0_4 = arith.constant 0 : index
    %4 = vector.load %arg3[%c0_3, %c0_4] : memref<512x128xbf16, #tpu.memory_space<vmem>>, vector<512x128xbf16>
    tpu.vector_store %arg3[%c0_3, %c0_4], %3 {strides = array<i32>} : memref<512x128xbf16, #tpu.memory_space<vmem>>, vector<512x128xbf16>,
    %cst_5 = arith.constant dense<0.000000e+00> : vector<128xf32>
    %5 = vector.multi_reduction <add>, %2, %cst_5 [0] : vector<512x128xf32> to vector<128xf32>
    %6 = vector.shape_cast %5 : vector<128xf32> to vector<1x128xf32>
    %7 = arith.mulf %2, %2 : vector<512x128xf32>
    %cst_6 = arith.constant dense<0.000000e+00> : vector<128xf32>
    %8 = vector.multi_reduction <add>, %7, %cst_6 [0] : vector<512x128xf32> to vector<128xf32>
    %9 = vector.shape_cast %8 : vector<128xf32> to vector<1x128xf32>
    %10 = vector.shape_cast %6 : vector<1x128xf32> to vector<1x128xf32>
    %11 = vector.broadcast %10 : vector<1x128xf32> to vector<8x128xf32>
    %c0_7 = arith.constant 0 : index
    %c0_8 = arith.constant 0 : index
    %12 = vector.load %arg4[%c0_7, %c0_8] : memref<8x128xf32, #tpu.memory_space<vmem>>, vector<8x128xf32>
    tpu.vector_store %arg4[%c0_7, %c0_8], %11 {strides = array<i32>} : memref<8x128xf32, #tpu.memory_space<vmem>>, vector<8x128xf32>,
    %13 = vector.shape_cast %9 : vector<1x128xf32> to vector<1x128xf32>
    %14 = vector.broadcast %13 : vector<1x128xf32> to vector<8x128xf32>
    %c0_9 = arith.constant 0 : index
    %c0_10 = arith.constant 0 : index
    %15 = vector.load %arg5[%c0_9, %c0_10] : memref<8x128xf32, #tpu.memory_space<vmem>>, vector<8x128xf32>
    tpu.vector_store %arg5[%c0_9, %c0_10], %14 {strides = array<i32>} : memref<8x128xf32, #tpu.memory_space<vmem>>, vector<8x128xf32>,
    return
  }
  func.func @transform_0(%arg0: i32) -> (i32, i32) {
    %c0_i32 = arith.constant 0 : i32
    %c0_i32_0 = arith.constant 0 : i32
    return %arg0, %c0_i32 : i32, i32
  }
  func.func @transform_1(%arg0: i32) -> (i32, i32) {
    %c0_i32 = arith.constant 0 : i32
    %c0_i32_0 = arith.constant 0 : i32
    %c0_i32_1 = arith.constant 0 : i32
    return %c0_i32, %c0_i32_0 : i32, i32
  }
  func.func @transform_2(%arg0: i32) -> (i32, i32) {
    %c0_i32 = arith.constant 0 : i32
    %c0_i32_0 = arith.constant 0 : i32
    return %arg0, %c0_i32 : i32, i32
  }
  func.func @transform_3(%arg0: i32) -> (i32, i32) {
    %c0_i32 = arith.constant 0 : i32
    %c0_i32_0 = arith.constant 0 : i32
    return %arg0, %c0_i32 : i32, i32
  }
  func.func @transform_4(%arg0: i32) -> (i32, i32) {
    %c0_i32 = arith.constant 0 : i32
    %c0_i32_0 = arith.constant 0 : i32
    return %arg0, %c0_i32 : i32, i32
  }
}

module attributes {stable_mosaic.version = 11 : i64} {
  func.func @_affine_relu_kernel(%arg0: i32, %arg1: memref<512x128xbf16, #tpu.memory_space<vmem>>, %arg2: memref<1x128xf32, #tpu.memory_space<vmem>>, %arg3: memref<1x128xf32, #tpu.memory_space<vmem>>, %arg4: memref<512x128xbf16, #tpu.memory_space<vmem>>) attributes {dimension_semantics = [#tpu.dimension_semantics<parallel>], iteration_bounds = array<i64: 1>, scalar_prefetch = 0 : i64, scratch_operands = 0 : i64, tpu.core_type = #tpu.core_type<tc>, window_params = [{transform_indices = @transform_0, window_bounds = array<i64: 512, 128>}, {pipeline_mode = #tpu.pipeline_mode<synchronous>, transform_indices = @transform_1, window_bounds = array<i64: 1, 128>}, {pipeline_mode = #tpu.pipeline_mode<synchronous>, transform_indices = @transform_2, window_bounds = array<i64: 1, 128>}, {transform_indices = @transform_3, window_bounds = array<i64: 512, 128>}]} {
    %c0 = arith.constant 0 : index
    %c0_0 = arith.constant 0 : index
    %0 = vector.load %arg1[%c0, %c0_0] : memref<512x128xbf16, #tpu.memory_space<vmem>>, vector<512x128xbf16>
    %1 = arith.extf %0 : vector<512x128xbf16> to vector<512x128xf32>
    %c0_1 = arith.constant 0 : index
    %c0_2 = arith.constant 0 : index
    %2 = vector.load %arg2[%c0_1, %c0_2] : memref<1x128xf32, #tpu.memory_space<vmem>>, vector<1x128xf32>
    %3 = vector.broadcast %2 : vector<1x128xf32> to vector<512x128xf32>
    %4 = arith.mulf %1, %3 : vector<512x128xf32>
    %c0_3 = arith.constant 0 : index
    %c0_4 = arith.constant 0 : index
    %5 = vector.load %arg3[%c0_3, %c0_4] : memref<1x128xf32, #tpu.memory_space<vmem>>, vector<1x128xf32>
    %6 = vector.broadcast %5 : vector<1x128xf32> to vector<512x128xf32>
    %7 = arith.addf %4, %6 : vector<512x128xf32>
    %cst = arith.constant 0.000000e+00 : f32
    %8 = vector.broadcast %cst : f32 to vector<512x128xf32>
    %9 = arith.maximumf %7, %8 : vector<512x128xf32>
    %10 = arith.truncf %9 : vector<512x128xf32> to vector<512x128xbf16>
    %c0_5 = arith.constant 0 : index
    %c0_6 = arith.constant 0 : index
    %11 = vector.load %arg4[%c0_5, %c0_6] : memref<512x128xbf16, #tpu.memory_space<vmem>>, vector<512x128xbf16>
    tpu.vector_store %arg4[%c0_5, %c0_6], %10 {strides = array<i32>} : memref<512x128xbf16, #tpu.memory_space<vmem>>, vector<512x128xbf16>,
    return
  }
  func.func @transform_0(%arg0: i32) -> (i32, i32) {
    %c0_i32 = arith.constant 0 : i32
    %c0_i32_0 = arith.constant 0 : i32
    return %arg0, %c0_i32 : i32, i32
  }
  func.func @transform_1(%arg0: i32) -> (i32, i32) {
    %c0_i32 = arith.constant 0 : i32
    %c0_i32_0 = arith.constant 0 : i32
    %c0_i32_1 = arith.constant 0 : i32
    return %c0_i32, %c0_i32_0 : i32, i32
  }
  func.func @transform_2(%arg0: i32) -> (i32, i32) {
    %c0_i32 = arith.constant 0 : i32
    %c0_i32_0 = arith.constant 0 : i32
    %c0_i32_1 = arith.constant 0 : i32
    return %c0_i32, %c0_i32_0 : i32, i32
  }
  func.func @transform_3(%arg0: i32) -> (i32, i32) {
    %c0_i32 = arith.constant 0 : i32
    %c0_i32_0 = arith.constant 0 : i32
    return %arg0, %c0_i32 : i32, i32
  }
}

module attributes {stable_mosaic.version = 11 : i64} {
  func.func @_gemm_bias_relu_kernel(%arg0: i32, %arg1: memref<128x256xbf16, #tpu.memory_space<vmem>>, %arg2: memref<256x128xbf16, #tpu.memory_space<vmem>>, %arg3: memref<1x128xf32, #tpu.memory_space<vmem>>, %arg4: memref<128x128xf32, #tpu.memory_space<vmem>>) attributes {dimension_semantics = [#tpu.dimension_semantics<parallel>], iteration_bounds = array<i64: 1>, scalar_prefetch = 0 : i64, scratch_operands = 0 : i64, tpu.core_type = #tpu.core_type<tc>, window_params = [{transform_indices = @transform_0, window_bounds = array<i64: 128, 256>}, {pipeline_mode = #tpu.pipeline_mode<synchronous>, transform_indices = @transform_1, window_bounds = array<i64: 256, 128>}, {pipeline_mode = #tpu.pipeline_mode<synchronous>, transform_indices = @transform_2, window_bounds = array<i64: 1, 128>}, {transform_indices = @transform_3, window_bounds = array<i64: 128, 128>}]} {
    %c0 = arith.constant 0 : index
    %c0_0 = arith.constant 0 : index
    %0 = vector.load %arg1[%c0, %c0_0] : memref<128x256xbf16, #tpu.memory_space<vmem>>, vector<128x256xbf16>
    %c0_1 = arith.constant 0 : index
    %c0_2 = arith.constant 0 : index
    %1 = vector.load %arg2[%c0_1, %c0_2] : memref<256x128xbf16, #tpu.memory_space<vmem>>, vector<256x128xbf16>
    %cst = arith.constant dense<0.000000e+00> : vector<128x128xf32>
    %2 = tpu.matmul %0, %1, %cst {dimension_numbers = #tpu.dot_dimension_numbers<[1], [0], [0], [1], [0, 0, 1, 1], [], []>} : vector<128x256xbf16>, vector<256x128xbf16>, vector<128x128xf32> -> vector<128x128xf32>
    %c0_3 = arith.constant 0 : index
    %c0_4 = arith.constant 0 : index
    %3 = vector.load %arg3[%c0_3, %c0_4] : memref<1x128xf32, #tpu.memory_space<vmem>>, vector<1x128xf32>
    %4 = vector.broadcast %3 : vector<1x128xf32> to vector<128x128xf32>
    %5 = arith.addf %2, %4 : vector<128x128xf32>
    %cst_5 = arith.constant 0.000000e+00 : f32
    %6 = vector.broadcast %cst_5 : f32 to vector<128x128xf32>
    %7 = arith.maximumf %5, %6 : vector<128x128xf32>
    %c0_6 = arith.constant 0 : index
    %c0_7 = arith.constant 0 : index
    %8 = vector.load %arg4[%c0_6, %c0_7] : memref<128x128xf32, #tpu.memory_space<vmem>>, vector<128x128xf32>
    tpu.vector_store %arg4[%c0_6, %c0_7], %7 {strides = array<i32>} : memref<128x128xf32, #tpu.memory_space<vmem>>, vector<128x128xf32>,
    return
  }
  func.func @transform_0(%arg0: i32) -> (i32, i32) {
    %c0_i32 = arith.constant 0 : i32
    %c0_i32_0 = arith.constant 0 : i32
    return %arg0, %c0_i32 : i32, i32
  }
  func.func @transform_1(%arg0: i32) -> (i32, i32) {
    %c0_i32 = arith.constant 0 : i32
    %c0_i32_0 = arith.constant 0 : i32
    %c0_i32_1 = arith.constant 0 : i32
    return %c0_i32, %c0_i32_0 : i32, i32
  }
  func.func @transform_2(%arg0: i32) -> (i32, i32) {
    %c0_i32 = arith.constant 0 : i32
    %c0_i32_0 = arith.constant 0 : i32
    %c0_i32_1 = arith.constant 0 : i32
    return %c0_i32, %c0_i32_0 : i32, i32
  }
  func.func @transform_3(%arg0: i32) -> (i32, i32) {
    %c0_i32 = arith.constant 0 : i32
    %c0_i32_0 = arith.constant 0 : i32
    return %arg0, %c0_i32 : i32, i32
  }
}

</mosaic_0001>

<bundles_post_ra>
// kernel: encoder_forward.6
= control target key start
LH: loop header
LB: loop body
LE: loop exit
PB: predicated region body
PF: predicated region fallthrough
CT: control target
= control target key end

     0   :  { %s2533_s12 = smov 0   ;;  %s2965_s0 = inlined_call_operand.vmem [shape: bf16[2048,128], index: 0, kind: input, shape index: {}]   ;;  %s2966_s1 = inlined_call_operand.vmem [shape: f32[1,128], index: 1, kind: input, shape index: {}]   ;;  %s2967_s2 = inlined_call_operand.vmem [shape: f32[1,128], index: 2, kind: input, shape index: {}]   ;;  %s2968_s3 = inlined_call_operand.vmem [shape: bf16[2048,128], index: 3, kind: output, shape index: {}]  }
   0x1 LB: > { %s1524_s13 = sadd.s32 4294967295, %s2511_s12   ;;  %p1528_p0 = scmp.ge.s32.totalorder %s2511_s12, 1  ;;  %s2511_s12 = sphi %s2533_s12, %s13_s12  }
   0x2   : > { %p138_p1 = scmp.lt.s32.totalorder %s2511_s12, 3 }
   0x4   : > { %p139_p2 = pnand %p1528_p0, %p138_p1 }
   0x5   : > { %s1529_s14 = sshll.u32 (!%p139_p2), %s1524_s13, 7  ;;  %v2554_v0 = vld [vmem:[%s2966_s1] ss:$0 sm:$0xff] (!%p139_p2) }
   0x6   : > { %142 = sbr.rel (%p139_p2) target bundleno = 167 (0xa7), region = 32  ;;  %p163_p3 = scmp.lt.s32.totalorder (!%p139_p2), %s1529_s14, 255  ;;  %v2563_v9 = vld [vmem:[%s2967_s2] ss:$0 sm:$0xff] (!%p139_p2) }
   0xd   : > { %s2970_s14 = smov (!%p163_p3, %s1529_s14), 255 }
   0xe   : > { %s1530_s15 = sshll.u32 %s2970_s14, 2 }
   0xf   : > { %s2549_s18 = scalar_lea.vmem %s2965_s0, %s1530_s15  ;;  %s2588_s25 = scalar_lea.vmem %s2968_s3, %s1530_s15 }
  0x10   : > { %v1794_v1 = vld [vmem:[%s2549_s18] sm:$0xff]   ;;  %v2369_v2 = vld [vmem:[%s2549_s18 + $0x8] sm:$0xff]   ;;  %v2370_v3 = vld [vmem:[%s2549_s18 + $0x10] sm:$0xff]  }
  0x11   : > { %v1795_v4 = vunpack.c.l.bf16 %v1794_v1  ;;  %v1796_v5 = vunpack.c.h.bf16 %v1794_v1  ;;  %v1799_v6 = vunpack.c.l.bf16 %v2369_v2  ;;  %v1800_v7 = vunpack.c.h.bf16 %v2369_v2  ;;  %v2371_v8 = vld [vmem:[%s2549_s18 + $0x18] sm:$0xff]   ;;  %v2372_v30 = vld [vmem:[%s2549_s18 + $0x20] sm:$0xff]   ;;  %v2373_v35 = vld [vmem:[%s2549_s18 + $0x28] sm:$0xff]  }
  0x12   : > { %v1803_v10 = vunpack.c.l.bf16 %v2370_v3  ;;  %v1804_v11 = vunpack.c.h.bf16 %v2370_v3  ;;  %v1807_v12 = vunpack.c.l.bf16 %v2371_v8  ;;  %v1808_v13 = vunpack.c.h.bf16 %v2371_v8  ;;  %v2374_v40 = vld [vmem:[%s2549_s18 + $0x30] sm:$0xff]   ;;  %v2375_v45 = vld [vmem:[%s2549_s18 + $0x38] sm:$0xff]   ;;  %v2376_v3 = vld [vmem:[%s2549_s18 + $0x40] sm:$0xff]  }
  0x13   : > { %v437_v14 = vmul.f32 %v1795_v4, %v2554_v0  ;;  %v438_v15 = vmul.f32 %v1796_v5, %v2554_v0  ;;  %v439_v16 = vmul.f32 %v1799_v6, %v2554_v0  ;;  %v440_v17 = vmul.f32 %v1800_v7, %v2554_v0 }
  0x14   : > { %v441_v18 = vmul.f32 %v1803_v10, %v2554_v0  ;;  %v442_v19 = vmul.f32 %v1804_v11, %v2554_v0  ;;  %v443_v20 = vmul.f32 %v1807_v12, %v2554_v0  ;;  %v444_v21 = vmul.f32 %v1808_v13, %v2554_v0  ;;  %v2377_v13 = vld [vmem:[%s2549_s18 + $0x48] sm:$0xff]  }
  0x15   : > { %v572_v22 = vadd.f32 %v2563_v9, %v437_v14  ;;  %v573_v23 = vadd.f32 %v2563_v9, %v438_v15  ;;  %v574_v24 = vadd.f32 %v2563_v9, %v439_v16  ;;  %v575_v25 = vadd.f32 %v2563_v9, %v440_v17 }
  0x16   : > { %v576_v26 = vadd.f32 %v2563_v9, %v441_v18  ;;  %v577_v27 = vadd.f32 %v2563_v9, %v442_v19  ;;  %v578_v28 = vadd.f32 %v2563_v9, %v443_v20  ;;  %v579_v29 = vadd.f32 %v2563_v9, %v444_v21  ;;  %v2378_v18 = vld [vmem:[%s2549_s18 + $0x50] sm:$0xff]  }
  0x17   : > { %v700_v31 = vmax.f32 %v572_v22, 0.0  ;;  %v701_v32 = vmax.f32 %v573_v23, 0.0  ;;  %v702_v33 = vmax.f32 %v574_v24, 0.0  ;;  %v703_v34 = vmax.f32 %v575_v25, 0.0  ;;  %v2379_v23 = vld [vmem:[%s2549_s18 + $0x58] sm:$0xff]  }
  0x18   : > { %v704_v36 = vmax.f32 %v576_v26, 0.0  ;;  %v705_v37 = vmax.f32 %v577_v27, 0.0  ;;  %v706_v38 = vmax.f32 %v578_v28, 0.0  ;;  %v707_v39 = vmax.f32 %v579_v29, 0.0 }
  0x19   : > { %v2052_v41 = vpack.c.bf16 %v701_v32, %v700_v31  ;;  %v2057_v42 = vpack.c.bf16 %v703_v34, %v702_v33  ;;  %v1811_v43 = vunpack.c.l.bf16 %v2372_v30  ;;  %v1812_v44 = vunpack.c.h.bf16 %v2372_v30 }
  0x1a   : > { %v2062_v46 = vpack.c.bf16 %v705_v37, %v704_v36  ;;  %v2067_v47 = vpack.c.bf16 %v707_v39, %v706_v38  ;;  %v1815_v48 = vunpack.c.l.bf16 %v2373_v35  ;;  %v1816_v49 = vunpack.c.h.bf16 %v2373_v35 }
  0x1b   : > { %2053 = vst [vmem:[%s2588_s25] sm:$0xff] %v2052_v41   ;;  %2432 = vst [vmem:[%s2588_s25 + $0x8] sm:$0xff] %v2057_v42   ;;  %v445_v50 = vmul.f32 %v1811_v43, %v2554_v0  ;;  %v446_v51 = vmul.f32 %v1812_v44, %v2554_v0  ;;  %v1819_v52 = vunpack.c.l.bf16 %v2374_v40  ;;  %v1820_v53 = vunpack.c.h.bf16 %v2374_v40  ;;  %v2380_v40 = vld [vmem:[%s2549_s18 + $0x60] sm:$0xff]  }
  0x1c   : > { %2433 = vst [vmem:[%s2588_s25 + $0x10] sm:$0xff] %v2062_v46   ;;  %2434 = vst [vmem:[%s2588_s25 + $0x18] sm:$0xff] %v2067_v47   ;;  %v447_v54 = vmul.f32 %v1815_v48, %v2554_v0  ;;  %v448_v55 = vmul.f32 %v1816_v49, %v2554_v0  ;;  %v1823_v56 = vunpack.c.l.bf16 %v2375_v45  ;;  %v1824_v57 = vunpack.c.h.bf16 %v2375_v45 }
  0x1d   : > { %v580_v58 = vadd.f32 %v2563_v9, %v445_v50  ;;  %v581_v59 = vadd.f32 %v2563_v9, %v446_v51  ;;  %v449_v60 = vmul.f32 %v1819_v52, %v2554_v0  ;;  %v450_v61 = vmul.f32 %v1820_v53, %v2554_v0  ;;  %v2381_v53 = vld [vmem:[%s2549_s18 + $0x68] sm:$0xff]  }
  0x1e   : > { %v582_v62 = vadd.f32 %v2563_v9, %v447_v54  ;;  %v583_v63 = vadd.f32 %v2563_v9, %v448_v55  ;;  %v451_v1 = vmul.f32 %v1823_v56, %v2554_v0  ;;  %v452_v2 = vmul.f32 %v1824_v57, %v2554_v0 }
  0x1f   : > { %v708_v4 = vmax.f32 %v580_v58, 0.0  ;;  %v709_v5 = vmax.f32 %v581_v59, 0.0  ;;  %v584_v6 = vadd.f32 %v2563_v9, %v449_v60  ;;  %v585_v7 = vadd.f32 %v2563_v9, %v450_v61  ;;  %v2382_v58 = vld [vmem:[%s2549_s18 + $0x70] sm:$0xff]  }
  0x20   : > { %v710_v8 = vmax.f32 %v582_v62, 0.0  ;;  %v711_v10 = vmax.f32 %v583_v63, 0.0  ;;  %v586_v11 = vadd.f32 %v2563_v9, %v451_v1  ;;  %v587_v12 = vadd.f32 %v2563_v9, %v452_v2  ;;  %v2383_v63 = vld [vmem:[%s2549_s18 + $0x78] sm:$0xff]  }
  0x21   : > { %v2072_v14 = vpack.c.bf16 %v709_v5, %v708_v4  ;;  %v712_v15 = vmax.f32 %v584_v6, 0.0  ;;  %v713_v16 = vmax.f32 %v585_v7, 0.0  ;;  %v1827_v17 = vunpack.c.l.bf16 %v2376_v3 }
  0x22   : > { %v2077_v19 = vpack.c.bf16 %v711_v10, %v710_v8  ;;  %v714_v20 = vmax.f32 %v586_v11, 0.0  ;;  %v715_v21 = vmax.f32 %v587_v12, 0.0  ;;  %v1828_v22 = vunpack.c.h.bf16 %v2376_v3 }
  0x23   : > { %2435 = vst [vmem:[%s2588_s25 + $0x20] sm:$0xff] %v2072_v14   ;;  %v2082_v24 = vpack.c.bf16 %v713_v16, %v712_v15  ;;  %v453_v25 = vmul.f32 %v1827_v17, %v2554_v0  ;;  %v1831_v26 = vunpack.c.l.bf16 %v2377_v13  ;;  %v1832_v27 = vunpack.c.h.bf16 %v2377_v13  ;;  %v2384_v14 = vld [vmem:[%s2549_s18 + $0x80] sm:$0xff]  }
  0x24   : > { %2436 = vst [vmem:[%s2588_s25 + $0x28] sm:$0xff] %v2077_v19   ;;  %v2087_v28 = vpack.c.bf16 %v715_v21, %v714_v20  ;;  %v454_v29 = vmul.f32 %v1828_v22, %v2554_v0  ;;  %v1835_v30 = vunpack.c.l.bf16 %v2378_v18  ;;  %v1836_v31 = vunpack.c.h.bf16 %v2378_v18 }
  0x25   : > { %2437 = vst [vmem:[%s2588_s25 + $0x30] sm:$0xff] %v2082_v24   ;;  %v588_v32 = vadd.f32 %v2563_v9, %v453_v25  ;;  %v455_v33 = vmul.f32 %v1831_v26, %v2554_v0  ;;  %v456_v34 = vmul.f32 %v1832_v27, %v2554_v0  ;;  %v1839_v35 = vunpack.c.l.bf16 %v2379_v23 }
  0x26   : > { %2438 = vst [vmem:[%s2588_s25 + $0x38] sm:$0xff] %v2087_v28   ;;  %v589_v36 = vadd.f32 %v2563_v9, %v454_v29  ;;  %v457_v37 = vmul.f32 %v1835_v30, %v2554_v0  ;;  %v458_v38 = vmul.f32 %v1836_v31, %v2554_v0  ;;  %v1840_v39 = vunpack.c.h.bf16 %v2379_v23  ;;  %v2385_v31 = vld [vmem:[%s2549_s18 + $0x88] sm:$0xff]  }
  0x27   : > { %v716_v41 = vmax.f32 %v588_v32, 0.0  ;;  %v590_v42 = vadd.f32 %v2563_v9, %v455_v33  ;;  %v591_v43 = vadd.f32 %v2563_v9, %v456_v34  ;;  %v459_v44 = vmul.f32 %v1839_v35, %v2554_v0 }
  0x28   : > { %v717_v45 = vmax.f32 %v589_v36, 0.0  ;;  %v592_v46 = vadd.f32 %v2563_v9, %v457_v37  ;;  %v593_v47 = vadd.f32 %v2563_v9, %v458_v38  ;;  %v460_v48 = vmul.f32 %v1840_v39, %v2554_v0  ;;  %v2386_v36 = vld [vmem:[%s2549_s18 + $0x90] sm:$0xff]  }
  0x29   : > { %v718_v49 = vmax.f32 %v590_v42, 0.0  ;;  %v719_v50 = vmax.f32 %v591_v43, 0.0  ;;  %v594_v51 = vadd.f32 %v2563_v9, %v459_v44  ;;  %v1843_v52 = vunpack.c.l.bf16 %v2380_v40 }
  0x2a   : > { %v2092_v54 = vpack.c.bf16 %v717_v45, %v716_v41  ;;  %v720_v55 = vmax.f32 %v592_v46, 0.0  ;;  %v721_v56 = vmax.f32 %v593_v47, 0.0  ;;  %v595_v57 = vadd.f32 %v2563_v9, %v460_v48  ;;  %v2387_v41 = vld [vmem:[%s2549_s18 + $0x98] sm:$0xff]  }
  0x2b   : > { %v2097_v59 = vpack.c.bf16 %v719_v50, %v718_v49  ;;  %v722_v60 = vmax.f32 %v594_v51, 0.0  ;;  %v1844_v61 = vunpack.c.h.bf16 %v2380_v40  ;;  %v461_v62 = vmul.f32 %v1843_v52, %v2554_v0 }
  0x2c   : > { %2439 = vst [vmem:[%s2588_s25 + $0x40] sm:$0xff] %v2092_v54   ;;  %v2102_v1 = vpack.c.bf16 %v721_v56, %v720_v55  ;;  %v723_v2 = vmax.f32 %v595_v57, 0.0  ;;  %v1847_v3 = vunpack.c.l.bf16 %v2381_v53  ;;  %v1848_v4 = vunpack.c.h.bf16 %v2381_v53  ;;  %v2388_v54 = vld [vmem:[%s2549_s18 + $0xa0] sm:$0xff]  }
  0x2d   : > { %2440 = vst [vmem:[%s2588_s25 + $0x48] sm:$0xff] %v2097_v59   ;;  %v462_v5 = vmul.f32 %v1844_v61, %v2554_v0  ;;  %v596_v6 = vadd.f32 %v2563_v9, %v461_v62  ;;  %v1851_v7 = vunpack.c.l.bf16 %v2382_v58  ;;  %v1852_v8 = vunpack.c.h.bf16 %v2382_v58 }
  0x2e   : > { %2441 = vst [vmem:[%s2588_s25 + $0x50] sm:$0xff] %v2102_v1   ;;  %v2107_v10 = vpack.c.bf16 %v723_v2, %v722_v60  ;;  %v463_v11 = vmul.f32 %v1847_v3, %v2554_v0  ;;  %v464_v12 = vmul.f32 %v1848_v4, %v2554_v0  ;;  %v1855_v13 = vunpack.c.l.bf16 %v2383_v63  ;;  %v2389_v4 = vld [vmem:[%s2549_s18 + $0xa8] sm:$0xff]  }
  0x2f   : > { %v597_v15 = vadd.f32 %v2563_v9, %v462_v5  ;;  %v724_v16 = vmax.f32 %v596_v6, 0.0  ;;  %v465_v17 = vmul.f32 %v1851_v7, %v2554_v0  ;;  %v466_v18 = vmul.f32 %v1852_v8, %v2554_v0 }
  0x30   : > { %2442 = vst [vmem:[%s2588_s25 + $0x58] sm:$0xff] %v2107_v10   ;;  %v598_v19 = vadd.f32 %v2563_v9, %v463_v11  ;;  %v599_v20 = vadd.f32 %v2563_v9, %v464_v12  ;;  %v1856_v21 = vunpack.c.h.bf16 %v2383_v63  ;;  %v467_v22 = vmul.f32 %v1855_v13, %v2554_v0 }
  0x31   : > { %v725_v23 = vmax.f32 %v597_v15, 0.0  ;;  %v600_v24 = vadd.f32 %v2563_v9, %v465_v17  ;;  %v601_v25 = vadd.f32 %v2563_v9, %v466_v18  ;;  %v1859_v26 = vunpack.c.l.bf16 %v2384_v14 }
  0x32   : > { %v726_v27 = vmax.f32 %v598_v19, 0.0  ;;  %v727_v28 = vmax.f32 %v599_v20, 0.0  ;;  %v468_v29 = vmul.f32 %v1856_v21, %v2554_v0  ;;  %v602_v30 = vadd.f32 %v2563_v9, %v467_v22  ;;  %v2391_v19 = vld [vmem:[%s2549_s18 + $0xb8] sm:$0xff]  }
  0x33   : > { %v2112_v32 = vpack.c.bf16 %v725_v23, %v724_v16  ;;  %v728_v33 = vmax.f32 %v600_v24, 0.0  ;;  %v729_v34 = vmax.f32 %v601_v25, 0.0  ;;  %v1860_v35 = vunpack.c.h.bf16 %v2384_v14  ;;  %v2390_v14 = vld [vmem:[%s2549_s18 + $0xb0] sm:$0xff]  }
  0x34   : > { %v2117_v37 = vpack.c.bf16 %v727_v28, %v726_v27  ;;  %v603_v38 = vadd.f32 %v2563_v9, %v468_v29  ;;  %v730_v39 = vmax.f32 %v602_v30, 0.0  ;;  %v469_v40 = vmul.f32 %v1859_v26, %v2554_v0 }
  0x35   : > { %2443 = vst [vmem:[%s2588_s25 + $0x60] sm:$0xff] %v2112_v32   ;;  %v2122_v42 = vpack.c.bf16 %v729_v34, %v728_v33  ;;  %v470_v43 = vmul.f32 %v1860_v35, %v2554_v0  ;;  %v1863_v44 = vunpack.c.l.bf16 %v2385_v31  ;;  %v1864_v45 = vunpack.c.h.bf16 %v2385_v31  ;;  %v2392_v32 = vld [vmem:[%s2549_s18 + $0xc0] sm:$0xff]  }
  0x36   : > { %2444 = vst [vmem:[%s2588_s25 + $0x68] sm:$0xff] %v2117_v37   ;;  %v731_v46 = vmax.f32 %v603_v38, 0.0  ;;  %v604_v47 = vadd.f32 %v2563_v9, %v469_v40  ;;  %v1867_v48 = vunpack.c.l.bf16 %v2386_v36  ;;  %v1868_v49 = vunpack.c.h.bf16 %v2386_v36 }
  0x37   : > { %2445 = vst [vmem:[%s2588_s25 + $0x70] sm:$0xff] %v2122_v42   ;;  %v605_v50 = vadd.f32 %v2563_v9, %v470_v43  ;;  %v471_v51 = vmul.f32 %v1863_v44, %v2554_v0  ;;  %v472_v52 = vmul.f32 %v1864_v45, %v2554_v0  ;;  %v1871_v53 = vunpack.c.l.bf16 %v2387_v41  ;;  %v2393_v45 = vld [vmem:[%s2549_s18 + $0xc8] sm:$0xff]  }
  0x38   : > { %v2127_v55 = vpack.c.bf16 %v731_v46, %v730_v39  ;;  %v732_v56 = vmax.f32 %v604_v47, 0.0  ;;  %v473_v57 = vmul.f32 %v1867_v48, %v2554_v0  ;;  %v474_v58 = vmul.f32 %v1868_v49, %v2554_v0 }
  0x39   : > { %v733_v59 = vmax.f32 %v605_v50, 0.0  ;;  %v606_v60 = vadd.f32 %v2563_v9, %v471_v51  ;;  %v607_v61 = vadd.f32 %v2563_v9, %v472_v52  ;;  %v1872_v62 = vunpack.c.h.bf16 %v2387_v41 }
  0x3a   : > { %2446 = vst [vmem:[%s2588_s25 + $0x78] sm:$0xff] %v2127_v55   ;;  %v608_v63 = vadd.f32 %v2563_v9, %v473_v57  ;;  %v609_v1 = vadd.f32 %v2563_v9, %v474_v58  ;;  %v475_v2 = vmul.f32 %v1871_v53, %v2554_v0  ;;  %v1875_v3 = vunpack.c.l.bf16 %v2388_v54 }
  0x3b   : > { %v2132_v5 = vpack.c.bf16 %v733_v59, %v732_v56  ;;  %v734_v6 = vmax.f32 %v606_v60, 0.0  ;;  %v735_v7 = vmax.f32 %v607_v61, 0.0  ;;  %v476_v8 = vmul.f32 %v1872_v62, %v2554_v0 }
  0x3c   : > { %v736_v10 = vmax.f32 %v608_v63, 0.0  ;;  %v737_v11 = vmax.f32 %v609_v1, 0.0  ;;  %v610_v12 = vadd.f32 %v2563_v9, %v475_v2  ;;  %v1876_v13 = vunpack.c.h.bf16 %v2388_v54  ;;  %v2394_v54 = vld [vmem:[%s2549_s18 + $0xd0] sm:$0xff]   ;;  %v2395_v63 = vld [vmem:[%s2549_s18 + $0xd8] sm:$0xff]  }
  0x3d   : > { %2447 = vst [vmem:[%s2588_s25 + $0x80] sm:$0xff] %v2132_v5   ;;  %v2137_v15 = vpack.c.bf16 %v735_v7, %v734_v6  ;;  %v611_v16 = vadd.f32 %v2563_v9, %v476_v8  ;;  %v477_v17 = vmul.f32 %v1875_v3, %v2554_v0  ;;  %v1879_v18 = vunpack.c.l.bf16 %v2389_v4 }
  0x3e   : > { %v2142_v20 = vpack.c.bf16 %v737_v11, %v736_v10  ;;  %v738_v21 = vmax.f32 %v610_v12, 0.0  ;;  %v478_v22 = vmul.f32 %v1876_v13, %v2554_v0  ;;  %v1880_v23 = vunpack.c.h.bf16 %v2389_v4  ;;  %v2396_v10 = vld [vmem:[%s2549_s18 + $0xe0] sm:$0xff]  }
  0x3f   : > { %2448 = vst [vmem:[%s2588_s25 + $0x88] sm:$0xff] %v2137_v15   ;;  %v739_v24 = vmax.f32 %v611_v16, 0.0  ;;  %v612_v25 = vadd.f32 %v2563_v9, %v477_v17  ;;  %v479_v26 = vmul.f32 %v1879_v18, %v2554_v0  ;;  %v1883_v27 = vunpack.c.l.bf16 %v2390_v14 }
  0x40   : > { %2449 = vst [vmem:[%s2588_s25 + $0x90] sm:$0xff] %v2142_v20   ;;  %v613_v28 = vadd.f32 %v2563_v9, %v478_v22  ;;  %v480_v29 = vmul.f32 %v1880_v23, %v2554_v0  ;;  %v1884_v30 = vunpack.c.h.bf16 %v2390_v14  ;;  %v1887_v31 = vunpack.c.l.bf16 %v2391_v19  ;;  %v2397_v23 = vld [vmem:[%s2549_s18 + $0xe8] sm:$0xff]  }
  0x41   : > { %v2147_v33 = vpack.c.bf16 %v739_v24, %v738_v21  ;;  %v740_v34 = vmax.f32 %v612_v25, 0.0  ;;  %v614_v35 = vadd.f32 %v2563_v9, %v479_v26  ;;  %v481_v36 = vmul.f32 %v1883_v27, %v2554_v0 }
  0x42   : > { %v741_v37 = vmax.f32 %v613_v28, 0.0  ;;  %v615_v38 = vadd.f32 %v2563_v9, %v480_v29  ;;  %v482_v39 = vmul.f32 %v1884_v30, %v2554_v0  ;;  %v1888_v40 = vunpack.c.h.bf16 %v2391_v19 }
  0x43   : > { %2450 = vst [vmem:[%s2588_s25 + $0x98] sm:$0xff] %v2147_v33   ;;  %v742_v41 = vmax.f32 %v614_v35, 0.0  ;;  %v616_v42 = vadd.f32 %v2563_v9, %v481_v36  ;;  %v483_v43 = vmul.f32 %v1887_v31, %v2554_v0  ;;  %v1891_v44 = vunpack.c.l.bf16 %v2392_v32 }
  0x44   : > { %v2152_v46 = vpack.c.bf16 %v741_v37, %v740_v34  ;;  %v743_v47 = vmax.f32 %v615_v38, 0.0  ;;  %v617_v48 = vadd.f32 %v2563_v9, %v482_v39  ;;  %v484_v49 = vmul.f32 %v1888_v40, %v2554_v0 }
  0x45   : > { %v744_v50 = vmax.f32 %v616_v42, 0.0  ;;  %v618_v51 = vadd.f32 %v2563_v9, %v483_v43  ;;  %v1892_v52 = vunpack.c.h.bf16 %v2392_v32  ;;  %v485_v53 = vmul.f32 %v1891_v44, %v2554_v0  ;;  %v2398_v32 = vld [vmem:[%s2549_s18 + $0xf0] sm:$0xff]  }
  0x46   : > { %2451 = vst [vmem:[%s2588_s25 + $0xa0] sm:$0xff] %v2152_v46   ;;  %v2157_v55 = vpack.c.bf16 %v743_v47, %v742_v41  ;;  %v745_v56 = vmax.f32 %v617_v48, 0.0  ;;  %v619_v57 = vadd.f32 %v2563_v9, %v484_v49  ;;  %v1895_v58 = vunpack.c.l.bf16 %v2393_v45  ;;  %v2399_v41 = vld [vmem:[%s2549_s18 + $0xf8] sm:$0xff]  }
  0x47   : > { %v746_v59 = vmax.f32 %v618_v51, 0.0  ;;  %v486_v60 = vmul.f32 %v1892_v52, %v2554_v0  ;;  %v620_v61 = vadd.f32 %v2563_v9, %v485_v53  ;;  %v1896_v62 = vunpack.c.h.bf16 %v2393_v45 }
  0x48   : > { %2452 = vst [vmem:[%s2588_s25 + $0xa8] sm:$0xff] %v2157_v55   ;;  %v2162_v1 = vpack.c.bf16 %v745_v56, %v744_v50  ;;  %v747_v2 = vmax.f32 %v619_v57, 0.0  ;;  %v487_v3 = vmul.f32 %v1895_v58, %v2554_v0  ;;  %v1899_v4 = vunpack.c.l.bf16 %v2394_v54  ;;  %v2400_v50 = vld [vmem:[%s2549_s18 + $0x100] sm:$0xff]  }
  0x49   : > { %v621_v5 = vadd.f32 %v2563_v9, %v486_v60  ;;  %v748_v6 = vmax.f32 %v620_v61, 0.0  ;;  %v488_v7 = vmul.f32 %v1896_v62, %v2554_v0  ;;  %v1900_v8 = vunpack.c.h.bf16 %v2394_v54 }
  0x4a   : > { %2453 = vst [vmem:[%s2588_s25 + $0xb0] sm:$0xff] %v2162_v1   ;;  %v2167_v11 = vpack.c.bf16 %v747_v2, %v746_v59  ;;  %v622_v12 = vadd.f32 %v2563_v9, %v487_v3  ;;  %v489_v13 = vmul.f32 %v1899_v4, %v2554_v0  ;;  %v1903_v14 = vunpack.c.l.bf16 %v2395_v63 }
  0x4b   : > { %v749_v15 = vmax.f32 %v621_v5, 0.0  ;;  %v623_v16 = vadd.f32 %v2563_v9, %v488_v7  ;;  %v490_v17 = vmul.f32 %v1900_v8, %v2554_v0  ;;  %v1904_v18 = vunpack.c.h.bf16 %v2395_v63  ;;  %v2401_v63 = vld [vmem:[%s2549_s18 + $0x108] sm:$0xff]  }
  0x4c   : > { %2454 = vst [vmem:[%s2588_s25 + $0xb8] sm:$0xff] %v2167_v11   ;;  %v750_v19 = vmax.f32 %v622_v12, 0.0  ;;  %v624_v20 = vadd.f32 %v2563_v9, %v489_v13  ;;  %v491_v21 = vmul.f32 %v1903_v14, %v2554_v0  ;;  %v1907_v22 = vunpack.c.l.bf16 %v2396_v10 }
  0x4d   : > { %v2172_v24 = vpack.c.bf16 %v749_v15, %v748_v6  ;;  %v751_v25 = vmax.f32 %v623_v16, 0.0  ;;  %v625_v26 = vadd.f32 %v2563_v9, %v490_v17  ;;  %v492_v27 = vmul.f32 %v1904_v18, %v2554_v0 }
  0x4e   : > { %v752_v28 = vmax.f32 %v624_v20, 0.0  ;;  %v626_v29 = vadd.f32 %v2563_v9, %v491_v21  ;;  %v1908_v30 = vunpack.c.h.bf16 %v2396_v10  ;;  %v493_v31 = vmul.f32 %v1907_v22, %v2554_v0  ;;  %v2402_v10 = vld [vmem:[%s2549_s18 + $0x110] sm:$0xff]  }
  0x4f   : > { %2455 = vst [vmem:[%s2588_s25 + $0xc0] sm:$0xff] %v2172_v24   ;;  %v2177_v33 = vpack.c.bf16 %v751_v25, %v750_v19  ;;  %v753_v34 = vmax.f32 %v625_v26, 0.0  ;;  %v627_v35 = vadd.f32 %v2563_v9, %v492_v27  ;;  %v1911_v36 = vunpack.c.l.bf16 %v2397_v23  ;;  %v2403_v19 = vld [vmem:[%s2549_s18 + $0x118] sm:$0xff]  }
  0x50   : > { %v754_v37 = vmax.f32 %v626_v29, 0.0  ;;  %v494_v38 = vmul.f32 %v1908_v30, %v2554_v0  ;;  %v628_v39 = vadd.f32 %v2563_v9, %v493_v31  ;;  %v1912_v40 = vunpack.c.h.bf16 %v2397_v23 }
  0x51   : > { %2456 = vst [vmem:[%s2588_s25 + $0xc8] sm:$0xff] %v2177_v33   ;;  %v2182_v42 = vpack.c.bf16 %v753_v34, %v752_v28  ;;  %v755_v43 = vmax.f32 %v627_v35, 0.0  ;;  %v495_v44 = vmul.f32 %v1911_v36, %v2554_v0  ;;  %v1915_v45 = vunpack.c.l.bf16 %v2398_v32  ;;  %v2404_v28 = vld [vmem:[%s2549_s18 + $0x120] sm:$0xff]  }
  0x52   : > { %v629_v46 = vadd.f32 %v2563_v9, %v494_v38  ;;  %v756_v47 = vmax.f32 %v628_v39, 0.0  ;;  %v496_v48 = vmul.f32 %v1912_v40, %v2554_v0  ;;  %v1916_v49 = vunpack.c.h.bf16 %v2398_v32 }
  0x53   : > { %2457 = vst [vmem:[%s2588_s25 + $0xd0] sm:$0xff] %v2182_v42   ;;  %v2187_v51 = vpack.c.bf16 %v755_v43, %v754_v37  ;;  %v630_v52 = vadd.f32 %v2563_v9, %v495_v44  ;;  %v497_v53 = vmul.f32 %v1915_v45, %v2554_v0  ;;  %v1919_v54 = vunpack.c.l.bf16 %v2399_v41 }
  0x54   : > { %v757_v55 = vmax.f32 %v629_v46, 0.0  ;;  %v631_v56 = vadd.f32 %v2563_v9, %v496_v48  ;;  %v498_v57 = vmul.f32 %v1916_v49, %v2554_v0  ;;  %v1920_v58 = vunpack.c.h.bf16 %v2399_v41  ;;  %v2405_v41 = vld [vmem:[%s2549_s18 + $0x128] sm:$0xff]  }
  0x55   : > { %2458 = vst [vmem:[%s2588_s25 + $0xd8] sm:$0xff] %v2187_v51   ;;  %v758_v59 = vmax.f32 %v630_v52, 0.0  ;;  %v632_v60 = vadd.f32 %v2563_v9, %v497_v53  ;;  %v499_v61 = vmul.f32 %v1919_v54, %v2554_v0  ;;  %v1923_v62 = vunpack.c.l.bf16 %v2400_v50 }
  0x56   : > { %v2192_v1 = vpack.c.bf16 %v757_v55, %v756_v47  ;;  %v759_v2 = vmax.f32 %v631_v56, 0.0  ;;  %v633_v3 = vadd.f32 %v2563_v9, %v498_v57  ;;  %v500_v4 = vmul.f32 %v1920_v58, %v2554_v0 }
  0x57   : > { %v760_v5 = vmax.f32 %v632_v60, 0.0  ;;  %v634_v6 = vadd.f32 %v2563_v9, %v499_v61  ;;  %v1924_v7 = vunpack.c.h.bf16 %v2400_v50  ;;  %v501_v8 = vmul.f32 %v1923_v62, %v2554_v0  ;;  %v2406_v50 = vld [vmem:[%s2549_s18 + $0x130] sm:$0xff]  }
  0x58   : > { %2459 = vst [vmem:[%s2588_s25 + $0xe0] sm:$0xff] %v2192_v1   ;;  %v2197_v11 = vpack.c.bf16 %v759_v2, %v758_v59  ;;  %v761_v12 = vmax.f32 %v633_v3, 0.0  ;;  %v635_v13 = vadd.f32 %v2563_v9, %v500_v4  ;;  %v1927_v14 = vunpack.c.l.bf16 %v2401_v63  ;;  %v2407_v59 = vld [vmem:[%s2549_s18 + $0x138] sm:$0xff]  }
  0x59   : > { %v762_v15 = vmax.f32 %v634_v6, 0.0  ;;  %v502_v16 = vmul.f32 %v1924_v7, %v2554_v0  ;;  %v636_v17 = vadd.f32 %v2563_v9, %v501_v8  ;;  %v1928_v18 = vunpack.c.h.bf16 %v2401_v63 }
  0x5a   : > { %2460 = vst [vmem:[%s2588_s25 + $0xe8] sm:$0xff] %v2197_v11   ;;  %v2202_v20 = vpack.c.bf16 %v761_v12, %v760_v5  ;;  %v763_v21 = vmax.f32 %v635_v13, 0.0  ;;  %v503_v22 = vmul.f32 %v1927_v14, %v2554_v0  ;;  %v1931_v23 = vunpack.c.l.bf16 %v2402_v10  ;;  %v2408_v5 = vld [vmem:[%s2549_s18 + $0x140] sm:$0xff]  }
  0x5b   : > { %v637_v24 = vadd.f32 %v2563_v9, %v502_v16  ;;  %v764_v25 = vmax.f32 %v636_v17, 0.0  ;;  %v504_v26 = vmul.f32 %v1928_v18, %v2554_v0  ;;  %v1932_v27 = vunpack.c.h.bf16 %v2402_v10 }
  0x5c   : > { %2461 = vst [vmem:[%s2588_s25 + $0xf0] sm:$0xff] %v2202_v20   ;;  %v2207_v29 = vpack.c.bf16 %v763_v21, %v762_v15  ;;  %v638_v30 = vadd.f32 %v2563_v9, %v503_v22  ;;  %v505_v31 = vmul.f32 %v1931_v23, %v2554_v0  ;;  %v1935_v32 = vunpack.c.l.bf16 %v2403_v19 }
  0x5d   : > { %v765_v33 = vmax.f32 %v637_v24, 0.0  ;;  %v639_v34 = vadd.f32 %v2563_v9, %v504_v26  ;;  %v506_v35 = vmul.f32 %v1932_v27, %v2554_v0  ;;  %v1936_v36 = vunpack.c.h.bf16 %v2403_v19  ;;  %v2409_v19 = vld [vmem:[%s2549_s18 + $0x148] sm:$0xff]  }
  0x5e   : > { %2462 = vst [vmem:[%s2588_s25 + $0xf8] sm:$0xff] %v2207_v29   ;;  %v766_v37 = vmax.f32 %v638_v30, 0.0  ;;  %v640_v38 = vadd.f32 %v2563_v9, %v505_v31  ;;  %v507_v39 = vmul.f32 %v1935_v32, %v2554_v0  ;;  %v1939_v40 = vunpack.c.l.bf16 %v2404_v28 }
  0x5f   : > { %v2212_v42 = vpack.c.bf16 %v765_v33, %v764_v25  ;;  %v767_v43 = vmax.f32 %v639_v34, 0.0  ;;  %v641_v44 = vadd.f32 %v2563_v9, %v506_v35  ;;  %v508_v45 = vmul.f32 %v1936_v36, %v2554_v0 }
  0x60   : > { %v768_v46 = vmax.f32 %v640_v38, 0.0  ;;  %v642_v47 = vadd.f32 %v2563_v9, %v507_v39  ;;  %v1940_v48 = vunpack.c.h.bf16 %v2404_v28  ;;  %v509_v49 = vmul.f32 %v1939_v40, %v2554_v0  ;;  %v2410_v28 = vld [vmem:[%s2549_s18 + $0x150] sm:$0xff]  }
  0x61   : > { %2463 = vst [vmem:[%s2588_s25 + $0x100] sm:$0xff] %v2212_v42   ;;  %v2217_v51 = vpack.c.bf16 %v767_v43, %v766_v37  ;;  %v769_v52 = vmax.f32 %v641_v44, 0.0  ;;  %v643_v53 = vadd.f32 %v2563_v9, %v508_v45  ;;  %v1943_v54 = vunpack.c.l.bf16 %v2405_v41  ;;  %v2411_v37 = vld [vmem:[%s2549_s18 + $0x158] sm:$0xff]  }
  0x62   : > { %v770_v55 = vmax.f32 %v642_v47, 0.0  ;;  %v510_v56 = vmul.f32 %v1940_v48, %v2554_v0  ;;  %v644_v57 = vadd.f32 %v2563_v9, %v509_v49  ;;  %v1944_v58 = vunpack.c.h.bf16 %v2405_v41 }
  0x63   : > { %2464 = vst [vmem:[%s2588_s25 + $0x108] sm:$0xff] %v2217_v51   ;;  %v2222_v60 = vpack.c.bf16 %v769_v52, %v768_v46  ;;  %v771_v61 = vmax.f32 %v643_v53, 0.0  ;;  %v511_v62 = vmul.f32 %v1943_v54, %v2554_v0  ;;  %v1947_v63 = vunpack.c.l.bf16 %v2406_v50  ;;  %v2412_v46 = vld [vmem:[%s2549_s18 + $0x160] sm:$0xff]  }
  0x64   : > { %v645_v1 = vadd.f32 %v2563_v9, %v510_v56  ;;  %v772_v2 = vmax.f32 %v644_v57, 0.0  ;;  %v512_v3 = vmul.f32 %v1944_v58, %v2554_v0  ;;  %v1948_v4 = vunpack.c.h.bf16 %v2406_v50 }
  0x65   : > { %2465 = vst [vmem:[%s2588_s25 + $0x110] sm:$0xff] %v2222_v60   ;;  %v2227_v6 = vpack.c.bf16 %v771_v61, %v770_v55  ;;  %v646_v7 = vadd.f32 %v2563_v9, %v511_v62  ;;  %v513_v8 = vmul.f32 %v1947_v63, %v2554_v0  ;;  %v1951_v10 = vunpack.c.l.bf16 %v2407_v59 }
  0x66   : > { %v773_v11 = vmax.f32 %v645_v1, 0.0  ;;  %v647_v12 = vadd.f32 %v2563_v9, %v512_v3  ;;  %v514_v13 = vmul.f32 %v1948_v4, %v2554_v0  ;;  %v1952_v14 = vunpack.c.h.bf16 %v2407_v59  ;;  %v2413_v59 = vld [vmem:[%s2549_s18 + $0x168] sm:$0xff]  }
  0x67   : > { %2466 = vst [vmem:[%s2588_s25 + $0x118] sm:$0xff] %v2227_v6   ;;  %v774_v15 = vmax.f32 %v646_v7, 0.0  ;;  %v648_v16 = vadd.f32 %v2563_v9, %v513_v8  ;;  %v515_v17 = vmul.f32 %v1951_v10, %v2554_v0  ;;  %v1955_v18 = vunpack.c.l.bf16 %v2408_v5 }
  0x68   : > { %v2232_v20 = vpack.c.bf16 %v773_v11, %v772_v2  ;;  %v775_v21 = vmax.f32 %v647_v12, 0.0  ;;  %v649_v22 = vadd.f32 %v2563_v9, %v514_v13  ;;  %v516_v23 = vmul.f32 %v1952_v14, %v2554_v0 }
  0x69   : > { %v776_v24 = vmax.f32 %v648_v16, 0.0  ;;  %v650_v25 = vadd.f32 %v2563_v9, %v515_v17  ;;  %v1956_v26 = vunpack.c.h.bf16 %v2408_v5  ;;  %v517_v27 = vmul.f32 %v1955_v18, %v2554_v0  ;;  %v2414_v5 = vld [vmem:[%s2549_s18 + $0x170] sm:$0xff]  }
  0x6a   : > { %2467 = vst [vmem:[%s2588_s25 + $0x120] sm:$0xff] %v2232_v20   ;;  %v2237_v29 = vpack.c.bf16 %v775_v21, %v774_v15  ;;  %v777_v30 = vmax.f32 %v649_v22, 0.0  ;;  %v651_v31 = vadd.f32 %v2563_v9, %v516_v23  ;;  %v1959_v32 = vunpack.c.l.bf16 %v2409_v19  ;;  %v2415_v15 = vld [vmem:[%s2549_s18 + $0x178] sm:$0xff]  }
  0x6b   : > { %v778_v33 = vmax.f32 %v650_v25, 0.0  ;;  %v518_v34 = vmul.f32 %v1956_v26, %v2554_v0  ;;  %v652_v35 = vadd.f32 %v2563_v9, %v517_v27  ;;  %v1960_v36 = vunpack.c.h.bf16 %v2409_v19 }
  0x6c   : > { %2468 = vst [vmem:[%s2588_s25 + $0x128] sm:$0xff] %v2237_v29   ;;  %v2242_v38 = vpack.c.bf16 %v777_v30, %v776_v24  ;;  %v779_v39 = vmax.f32 %v651_v31, 0.0  ;;  %v519_v40 = vmul.f32 %v1959_v32, %v2554_v0  ;;  %v1963_v41 = vunpack.c.l.bf16 %v2410_v28  ;;  %v2416_v24 = vld [vmem:[%s2549_s18 + $0x180] sm:$0xff]  }
  0x6d   : > { %v653_v42 = vadd.f32 %v2563_v9, %v518_v34  ;;  %v780_v43 = vmax.f32 %v652_v35, 0.0  ;;  %v520_v44 = vmul.f32 %v1960_v36, %v2554_v0  ;;  %v1964_v45 = vunpack.c.h.bf16 %v2410_v28  ;;  %v2851_v35 = vld [vmem:[%s2966_s1] ss:$0 sm:$0xff] }
  0x6e   : > { %2469 = vst [vmem:[%s2588_s25 + $0x130] sm:$0xff] %v2242_v38   ;;  %v2247_v47 = vpack.c.bf16 %v779_v39, %v778_v33  ;;  %v654_v48 = vadd.f32 %v2563_v9, %v519_v40  ;;  %v521_v49 = vmul.f32 %v1963_v41, %v2554_v0  ;;  %v1967_v50 = vunpack.c.l.bf16 %v2411_v37  ;;  %v2417_v38 = vld [vmem:[%s2549_s18 + $0x188] sm:$0xff]  }
  0x6f   : > { %v781_v51 = vmax.f32 %v653_v42, 0.0  ;;  %v655_v52 = vadd.f32 %v2563_v9, %v520_v44  ;;  %v522_v53 = vmul.f32 %v1964_v45, %v2554_v0  ;;  %v1968_v54 = vunpack.c.h.bf16 %v2411_v37 }
  0x70   : > { %2470 = vst [vmem:[%s2588_s25 + $0x138] sm:$0xff] %v2247_v47   ;;  %v782_v55 = vmax.f32 %v654_v48, 0.0  ;;  %v656_v56 = vadd.f32 %v2563_v9, %v521_v49  ;;  %v523_v57 = vmul.f32 %v1967_v50, %v2554_v0  ;;  %v1971_v58 = vunpack.c.l.bf16 %v2412_v46  ;;  %v2418_v47 = vld [vmem:[%s2549_s18 + $0x190] sm:$0xff]  }
  0x71   : > { %v2252_v60 = vpack.c.bf16 %v781_v51, %v780_v43  ;;  %v783_v61 = vmax.f32 %v655_v52, 0.0  ;;  %v657_v62 = vadd.f32 %v2563_v9, %v522_v53  ;;  %v524_v63 = vmul.f32 %v1968_v54, %v2554_v0  ;;  %v2860_v43 = vld [vmem:[%s2967_s2] ss:$0 sm:$0xff] }
  0x72   : > { %v784_v1 = vmax.f32 %v656_v56, 0.0  ;;  %v658_v2 = vadd.f32 %v2563_v9, %v523_v57  ;;  %v1972_v3 = vunpack.c.h.bf16 %v2412_v46  ;;  %v525_v4 = vmul.f32 %v1971_v58, %v2554_v0 }
  0x73   : > { %2471 = vst [vmem:[%s2588_s25 + $0x140] sm:$0xff] %v2252_v60   ;;  %v2257_v6 = vpack.c.bf16 %v783_v61, %v782_v55  ;;  %v785_v7 = vmax.f32 %v657_v62, 0.0  ;;  %v659_v8 = vadd.f32 %v2563_v9, %v524_v63  ;;  %v1975_v10 = vunpack.c.l.bf16 %v2413_v59  ;;  %v2419_v55 = vld [vmem:[%s2549_s18 + $0x198] sm:$0xff]  }
  0x74   : > { %v786_v11 = vmax.f32 %v658_v2, 0.0  ;;  %v526_v12 = vmul.f32 %v1972_v3, %v2554_v0  ;;  %v660_v13 = vadd.f32 %v2563_v9, %v525_v4  ;;  %v1976_v14 = vunpack.c.h.bf16 %v2413_v59 }
  0x75   : > { %2472 = vst [vmem:[%s2588_s25 + $0x148] sm:$0xff] %v2257_v6   ;;  %v2262_v16 = vpack.c.bf16 %v785_v7, %v784_v1  ;;  %v787_v17 = vmax.f32 %v659_v8, 0.0  ;;  %v527_v18 = vmul.f32 %v1975_v10, %v2554_v0  ;;  %v1979_v19 = vunpack.c.l.bf16 %v2414_v5  ;;  %v2420_v1 = vld [vmem:[%s2549_s18 + $0x1a0] sm:$0xff]  }
  0x76   : > { %v661_v20 = vadd.f32 %v2563_v9, %v526_v12  ;;  %v788_v21 = vmax.f32 %v660_v13, 0.0  ;;  %v528_v22 = vmul.f32 %v1976_v14, %v2554_v0  ;;  %v1980_v23 = vunpack.c.h.bf16 %v2414_v5 }
  0x77   : > { %2473 = vst [vmem:[%s2588_s25 + $0x150] sm:$0xff] %v2262_v16   ;;  %v2267_v25 = vpack.c.bf16 %v787_v17, %v786_v11  ;;  %v662_v26 = vadd.f32 %v2563_v9, %v527_v18  ;;  %v529_v27 = vmul.f32 %v1979_v19, %v2554_v0  ;;  %v1983_v28 = vunpack.c.l.bf16 %v2415_v15 }
  0x78   : > { %v789_v29 = vmax.f32 %v661_v20, 0.0  ;;  %v663_v30 = vadd.f32 %v2563_v9, %v528_v22  ;;  %v530_v31 = vmul.f32 %v1980_v23, %v2554_v0  ;;  %v1984_v32 = vunpack.c.h.bf16 %v2415_v15  ;;  %v2421_v15 = vld [vmem:[%s2549_s18 + $0x1a8] sm:$0xff]  }
  0x79   : > { %2474 = vst [vmem:[%s2588_s25 + $0x158] sm:$0xff] %v2267_v25   ;;  %v790_v33 = vmax.f32 %v662_v26, 0.0  ;;  %v664_v34 = vadd.f32 %v2563_v9, %v529_v27  ;;  %v531_v36 = vmul.f32 %v2851_v35, %v1983_v28  ;;  %v1987_v37 = vunpack.c.l.bf16 %v2416_v24 }
  0x7a   : > { %v2272_v39 = vpack.c.bf16 %v789_v29, %v788_v21  ;;  %v791_v40 = vmax.f32 %v663_v30, 0.0  ;;  %v665_v0 = vadd.f32 %v2563_v9, %v530_v31  ;;  %v532_v41 = vmul.f32 %v2851_v35, %v1984_v32 }
  0x7b   : > { %v792_v42 = vmax.f32 %v664_v34, 0.0  ;;  %v666_v44 = vadd.f32 %v2860_v43, %v531_v36  ;;  %v1988_v45 = vunpack.c.h.bf16 %v2416_v24  ;;  %v533_v46 = vmul.f32 %v2851_v35, %v1987_v37  ;;  %v2422_v24 = vld [vmem:[%s2549_s18 + $0x1b0] sm:$0xff]  }
  0x7c   : > { %2475 = vst [vmem:[%s2588_s25 + $0x160] sm:$0xff] %v2272_v39   ;;  %v2277_v48 = vpack.c.bf16 %v791_v40, %v790_v33  ;;  %v793_v49 = vmax.f32 %v665_v0, 0.0  ;;  %v667_v9 = vadd.f32 %v2860_v43, %v532_v41  ;;  %v1991_v50 = vunpack.c.l.bf16 %v2417_v38  ;;  %v2423_v33 = vld [vmem:[%s2549_s18 + $0x1b8] sm:$0xff]  }
  0x7d   : > { %v794_v51 = vmax.f32 %v666_v44, 0.0  ;;  %v534_v52 = vmul.f32 %v2851_v35, %v1988_v45  ;;  %v668_v53 = vadd.f32 %v2860_v43, %v533_v46  ;;  %v1992_v54 = vunpack.c.h.bf16 %v2417_v38 }
  0x7e   : > { %2476 = vst [vmem:[%s2588_s25 + $0x168] sm:$0xff] %v2277_v48   ;;  %v2282_v56 = vpack.c.bf16 %v793_v49, %v792_v42  ;;  %v795_v57 = vmax.f32 %v667_v9, 0.0  ;;  %v535_v58 = vmul.f32 %v2851_v35, %v1991_v50  ;;  %v1995_v59 = vunpack.c.l.bf16 %v2418_v47  ;;  %v2424_v42 = vld [vmem:[%s2549_s18 + $0x1c0] sm:$0xff]  }
  0x7f   : > { %v669_v60 = vadd.f32 %v2860_v43, %v534_v52  ;;  %v796_v61 = vmax.f32 %v668_v53, 0.0  ;;  %v536_v62 = vmul.f32 %v2851_v35, %v1992_v54  ;;  %v1996_v63 = vunpack.c.h.bf16 %v2418_v47 }
  0x80   : > { %2477 = vst [vmem:[%s2588_s25 + $0x170] sm:$0xff] %v2282_v56   ;;  %v2287_v2 = vpack.c.bf16 %v795_v57, %v794_v51  ;;  %v670_v3 = vadd.f32 %v2860_v43, %v535_v58  ;;  %v537_v4 = vmul.f32 %v2851_v35, %v1995_v59  ;;  %v1999_v5 = vunpack.c.l.bf16 %v2419_v55 }
  0x81   : > { %v797_v6 = vmax.f32 %v669_v60, 0.0  ;;  %v671_v7 = vadd.f32 %v2860_v43, %v536_v62  ;;  %v538_v8 = vmul.f32 %v2851_v35, %v1996_v63  ;;  %v2000_v10 = vunpack.c.h.bf16 %v2419_v55  ;;  %v2425_v55 = vld [vmem:[%s2549_s18 + $0x1c8] sm:$0xff]  }
  0x82   : > { %2478 = vst [vmem:[%s2588_s25 + $0x178] sm:$0xff] %v2287_v2   ;;  %v798_v11 = vmax.f32 %v670_v3, 0.0  ;;  %v672_v12 = vadd.f32 %v2860_v43, %v537_v4  ;;  %v539_v13 = vmul.f32 %v2851_v35, %v1999_v5  ;;  %v2003_v14 = vunpack.c.l.bf16 %v2420_v1 }
  0x83   : > { %v2292_v16 = vpack.c.bf16 %v797_v6, %v796_v61  ;;  %v799_v17 = vmax.f32 %v671_v7, 0.0  ;;  %v673_v18 = vadd.f32 %v2860_v43, %v538_v8  ;;  %v540_v19 = vmul.f32 %v2851_v35, %v2000_v10 }
  0x84   : > { %v800_v20 = vmax.f32 %v672_v12, 0.0  ;;  %v674_v21 = vadd.f32 %v2860_v43, %v539_v13  ;;  %v2004_v22 = vunpack.c.h.bf16 %v2420_v1  ;;  %v541_v23 = vmul.f32 %v2851_v35, %v2003_v14  ;;  %v2426_v1 = vld [vmem:[%s2549_s18 + $0x1d0] sm:$0xff]  }
  0x85   : > { %2479 = vst [vmem:[%s2588_s25 + $0x180] sm:$0xff] %v2292_v16   ;;  %v2297_v25 = vpack.c.bf16 %v799_v17, %v798_v11  ;;  %v801_v26 = vmax.f32 %v673_v18, 0.0  ;;  %v675_v27 = vadd.f32 %v2860_v43, %v540_v19  ;;  %v2007_v28 = vunpack.c.l.bf16 %v2421_v15  ;;  %v2427_v11 = vld [vmem:[%s2549_s18 + $0x1d8] sm:$0xff]  }
  0x86   : > { %v802_v29 = vmax.f32 %v674_v21, 0.0  ;;  %v542_v30 = vmul.f32 %v2851_v35, %v2004_v22  ;;  %v676_v31 = vadd.f32 %v2860_v43, %v541_v23  ;;  %v2008_v32 = vunpack.c.h.bf16 %v2421_v15 }
  0x87   : > { %2480 = vst [vmem:[%s2588_s25 + $0x188] sm:$0xff] %v2297_v25   ;;  %v2302_v34 = vpack.c.bf16 %v801_v26, %v800_v20  ;;  %v803_v36 = vmax.f32 %v675_v27, 0.0  ;;  %v543_v37 = vmul.f32 %v2851_v35, %v2007_v28  ;;  %v2011_v38 = vunpack.c.l.bf16 %v2422_v24  ;;  %v2428_v20 = vld [vmem:[%s2549_s18 + $0x1e0] sm:$0xff]  }
  0x88   : > { %v677_v39 = vadd.f32 %v2860_v43, %v542_v30  ;;  %v804_v40 = vmax.f32 %v676_v31, 0.0  ;;  %v544_v0 = vmul.f32 %v2851_v35, %v2008_v32  ;;  %v2012_v41 = vunpack.c.h.bf16 %v2422_v24 }
  0x89   : > { %2481 = vst [vmem:[%s2588_s25 + $0x190] sm:$0xff] %v2302_v34   ;;  %v2307_v44 = vpack.c.bf16 %v803_v36, %v802_v29  ;;  %v678_v45 = vadd.f32 %v2860_v43, %v543_v37  ;;  %v545_v46 = vmul.f32 %v2851_v35, %v2011_v38  ;;  %v2015_v47 = vunpack.c.l.bf16 %v2423_v33 }
  0x8a   : > { %v805_v48 = vmax.f32 %v677_v39, 0.0  ;;  %v679_v49 = vadd.f32 %v2860_v43, %v544_v0  ;;  %v546_v9 = vmul.f32 %v2851_v35, %v2012_v41  ;;  %v2016_v50 = vunpack.c.h.bf16 %v2423_v33  ;;  %v2429_v33 = vld [vmem:[%s2549_s18 + $0x1e8] sm:$0xff]  }
  0x8b   : > { %2482 = vst [vmem:[%s2588_s25 + $0x198] sm:$0xff] %v2307_v44   ;;  %v806_v51 = vmax.f32 %v678_v45, 0.0  ;;  %v680_v52 = vadd.f32 %v2860_v43, %v545_v46  ;;  %v547_v53 = vmul.f32 %v2851_v35, %v2015_v47  ;;  %v2019_v54 = vunpack.c.l.bf16 %v2424_v42 }
  0x8c   : > { %v2312_v56 = vpack.c.bf16 %v805_v48, %v804_v40  ;;  %v807_v57 = vmax.f32 %v679_v49, 0.0  ;;  %v681_v58 = vadd.f32 %v2860_v43, %v546_v9  ;;  %v548_v59 = vmul.f32 %v2851_v35, %v2016_v50 }
  0x8d   : > { %v808_v60 = vmax.f32 %v680_v52, 0.0  ;;  %v682_v61 = vadd.f32 %v2860_v43, %v547_v53  ;;  %v2020_v62 = vunpack.c.h.bf16 %v2424_v42  ;;  %v549_v63 = vmul.f32 %v2851_v35, %v2019_v54  ;;  %v2430_v42 = vld [vmem:[%s2549_s18 + $0x1f0] sm:$0xff]  }
  0x8e   : > { %2483 = vst [vmem:[%s2588_s25 + $0x1a0] sm:$0xff] %v2312_v56   ;;  %v2317_v2 = vpack.c.bf16 %v807_v57, %v806_v51  ;;  %v809_v3 = vmax.f32 %v681_v58, 0.0  ;;  %v683_v4 = vadd.f32 %v2860_v43, %v548_v59  ;;  %v2023_v5 = vunpack.c.l.bf16 %v2425_v55  ;;  %v2431_v51 = vld [vmem:[%s2549_s18 + $0x1f8] sm:$0xff]  }
  0x8f   : > { %v810_v6 = vmax.f32 %v682_v61, 0.0  ;;  %v550_v7 = vmul.f32 %v2851_v35, %v2020_v62  ;;  %v684_v8 = vadd.f32 %v2860_v43, %v549_v63  ;;  %v2024_v10 = vunpack.c.h.bf16 %v2425_v55 }
  0x90   : > { %2484 = vst [vmem:[%s2588_s25 + $0x1a8] sm:$0xff] %v2317_v2   ;;  %v2322_v12 = vpack.c.bf16 %v809_v3, %v808_v60  ;;  %v811_v13 = vmax.f32 %v683_v4, 0.0  ;;  %v551_v14 = vmul.f32 %v2851_v35, %v2023_v5  ;;  %v2027_v15 = vunpack.c.l.bf16 %v2426_v1 }
  0x91   : > { %v685_v16 = vadd.f32 %v2860_v43, %v550_v7  ;;  %v812_v17 = vmax.f32 %v684_v8, 0.0  ;;  %v552_v18 = vmul.f32 %v2851_v35, %v2024_v10  ;;  %v2028_v19 = vunpack.c.h.bf16 %v2426_v1 }
  0x92   : > { %2485 = vst [vmem:[%s2588_s25 + $0x1b0] sm:$0xff] %v2322_v12   ;;  %v2327_v21 = vpack.c.bf16 %v811_v13, %v810_v6  ;;  %v686_v22 = vadd.f32 %v2860_v43, %v551_v14  ;;  %v553_v23 = vmul.f32 %v2851_v35, %v2027_v15  ;;  %v2031_v24 = vunpack.c.l.bf16 %v2427_v11 }
  0x93   : > { %v813_v25 = vmax.f32 %v685_v16, 0.0  ;;  %v687_v26 = vadd.f32 %v2860_v43, %v552_v18  ;;  %v554_v27 = vmul.f32 %v2851_v35, %v2028_v19  ;;  %v2032_v28 = vunpack.c.h.bf16 %v2427_v11 }
  0x94   : > { %2486 = vst [vmem:[%s2588_s25 + $0x1b8] sm:$0xff] %v2327_v21   ;;  %v814_v29 = vmax.f32 %v686_v22, 0.0  ;;  %v688_v30 = vadd.f32 %v2860_v43, %v553_v23  ;;  %v555_v31 = vmul.f32 %v2851_v35, %v2031_v24  ;;  %v2035_v32 = vunpack.c.l.bf16 %v2428_v20 }
  0x95   : > { %v2332_v34 = vpack.c.bf16 %v813_v25, %v812_v17  ;;  %v815_v36 = vmax.f32 %v687_v26, 0.0  ;;  %v689_v37 = vadd.f32 %v2860_v43, %v554_v27  ;;  %v556_v38 = vmul.f32 %v2851_v35, %v2032_v28 }
  0x96   : > { %v816_v39 = vmax.f32 %v688_v30, 0.0  ;;  %v690_v40 = vadd.f32 %v2860_v43, %v555_v31  ;;  %v2036_v0 = vunpack.c.h.bf16 %v2428_v20  ;;  %v557_v41 = vmul.f32 %v2851_v35, %v2035_v32 }
  0x97   : > { %2487 = vst [vmem:[%s2588_s25 + $0x1c0] sm:$0xff] %v2332_v34   ;;  %v2337_v44 = vpack.c.bf16 %v815_v36, %v814_v29  ;;  %v817_v45 = vmax.f32 %v689_v37, 0.0  ;;  %v691_v46 = vadd.f32 %v2860_v43, %v556_v38  ;;  %v2039_v47 = vunpack.c.l.bf16 %v2429_v33 }
  0x98   : > { %v818_v48 = vmax.f32 %v690_v40, 0.0  ;;  %v558_v49 = vmul.f32 %v2851_v35, %v2036_v0  ;;  %v692_v9 = vadd.f32 %v2860_v43, %v557_v41  ;;  %v2040_v50 = vunpack.c.h.bf16 %v2429_v33 }
  0x99   : > { %2488 = vst [vmem:[%s2588_s25 + $0x1c8] sm:$0xff] %v2337_v44   ;;  %v2342_v52 = vpack.c.bf16 %v817_v45, %v816_v39  ;;  %v819_v53 = vmax.f32 %v691_v46, 0.0  ;;  %v559_v54 = vmul.f32 %v2851_v35, %v2039_v47  ;;  %v2043_v55 = vunpack.c.l.bf16 %v2430_v42 }
  0x9a   : > { %v693_v56 = vadd.f32 %v2860_v43, %v558_v49  ;;  %v820_v57 = vmax.f32 %v692_v9, 0.0  ;;  %v560_v58 = vmul.f32 %v2851_v35, %v2040_v50  ;;  %v2044_v59 = vunpack.c.h.bf16 %v2430_v42 }
  0x9b   : > { %2489 = vst [vmem:[%s2588_s25 + $0x1d0] sm:$0xff] %v2342_v52   ;;  %v2347_v60 = vpack.c.bf16 %v819_v53, %v818_v48  ;;  %v694_v61 = vadd.f32 %v2860_v43, %v559_v54  ;;  %v561_v62 = vmul.f32 %v2851_v35, %v2043_v55  ;;  %v2047_v63 = vunpack.c.l.bf16 %v2431_v51 }
  0x9c   : > { %v821_v1 = vmax.f32 %v693_v56, 0.0  ;;  %v695_v2 = vadd.f32 %v2860_v43, %v560_v58  ;;  %v562_v3 = vmul.f32 %v2851_v35, %v2044_v59  ;;  %v2048_v4 = vunpack.c.h.bf16 %v2431_v51 }
  0x9d   : > { %2490 = vst [vmem:[%s2588_s25 + $0x1d8] sm:$0xff] %v2347_v60   ;;  %v822_v5 = vmax.f32 %v694_v61, 0.0  ;;  %v696_v6 = vadd.f32 %v2860_v43, %v561_v62  ;;  %v563_v7 = vmul.f32 %v2851_v35, %v2047_v63 }
  0x9e   : > { %v2352_v8 = vpack.c.bf16 %v821_v1, %v820_v57  ;;  %v823_v10 = vmax.f32 %v695_v2, 0.0  ;;  %v697_v11 = vadd.f32 %v2860_v43, %v562_v3  ;;  %v564_v12 = vmul.f32 %v2851_v35, %v2048_v4 }
  0x9f   : > { %v824_v13 = vmax.f32 %v696_v6, 0.0  ;;  %v698_v14 = vadd.f32 %v2860_v43, %v563_v7 }
  0xa0   : > { %2491 = vst [vmem:[%s2588_s25 + $0x1e0] sm:$0xff] %v2352_v8   ;;  %v2357_v15 = vpack.c.bf16 %v823_v10, %v822_v5  ;;  %v825_v16 = vmax.f32 %v697_v11, 0.0  ;;  %v699_v17 = vadd.f32 %v2860_v43, %v564_v12 }
  0xa1   : > { %v826_v18 = vmax.f32 %v698_v14, 0.0 }
  0xa2   : > { %2492 = vst [vmem:[%s2588_s25 + $0x1e8] sm:$0xff] %v2357_v15   ;;  %v2362_v19 = vpack.c.bf16 %v825_v16, %v824_v13  ;;  %v827_v20 = vmax.f32 %v699_v17, 0.0 }
  0xa4   : > { %2493 = vst [vmem:[%s2588_s25 + $0x1f0] sm:$0xff] %v2362_v19   ;;  %v2367_v21 = vpack.c.bf16 %v827_v20, %v826_v18 }
  0xa6   : > { %2494 = vst [vmem:[%s2588_s25 + $0x1f8] sm:$0xff] %v2367_v21  }
  0xa7 PF: > { %s13_s12 = sadd.s32 1, %s2511_s12  }
  0xa8   : > { %p10_p4 = scmp.ge.s32.totalorder %s13_s12, 4  }
  0xaa   :  { %12 = sbr.rel (!%p10_p4) target bundleno = 1 (0x1), region = 62 }

// kernel: encoder_forward.5
= control target key start
LH: loop header
LB: loop body
LE: loop exit
PB: predicated region body
PF: predicated region fallthrough
CT: control target
= control target key end

     0   :  { %s3700_s15 = smov 0   ;;  %s4327_s0 = inlined_call_operand.vmem [shape: bf16[2048,64], index: 0, kind: input, shape index: {}]   ;;  %s4328_s1 = inlined_call_operand.vmem [shape: bf16[64,128], index: 1, kind: input, shape index: {}]   ;;  %s4329_s2 = inlined_call_operand.vmem [shape: bf16[2048,128], index: 2, kind: output, shape index: {0}]   ;;  %s4330_s3 = inlined_call_operand.vmem [shape: f32[16,128], index: 3, kind: output, shape index: {1}]   ;;  %s4331_s4 = inlined_call_operand.vmem [shape: f32[16,128], index: 4, kind: output, shape index: {2}]  }
   0x1 LB: > { %s3706_s16 = sadd.s32 4294967295, %s3673_s15   ;;  %p2599_p0 = scmp.ge.s32.totalorder %s3673_s15, 1  ;;  %s3673_s15 = sphi %s3700_s15, %s15_s15  }
   0x2   : > { %p168_p1 = scmp.lt.s32.totalorder %s3673_s15, 3 }
   0x4   : > { %p169_p2 = pnand %p2599_p0, %p168_p1 }
   0x6   : > { %172 = sbr.rel (%p169_p2) target bundleno = 514 (0x202), region = 28 }
   0xd   : > { %v3599_v0 = vld [vmem:[%s4328_s1] sm:$0xff]   ;;  %s2600_s19 = sshll.u32 %s3706_s16, 7  ;;  %v3600_v1 = vld [vmem:[%s4328_s1 + $0x8] sm:$0xff]   ;;  %v3601_v2 = vld [vmem:[%s4328_s1 + $0x10] sm:$0xff]   ;;  %vm703_vm0 = vcmask 523264   ;;  %p214_p4 = scmp.lt.s32.totalorder %s3706_s16, 1 }
   0xe   : > { %p203_p3 = scmp.lt.s32.totalorder %s2600_s19, 255  ;;  %3447 = vmatprep.subr.bf16.mxu0 %v3599_v0  ;;  %3583 = vmatprep.subr.bf16.mxu1 %v3599_v0  ;;  %v3602_v4 = vld [vmem:[%s4328_s1 + $0x18] sm:$0xff]  }
   0xf   : > { %3448 = vmatpush3.bf16.msra.mxu0 %v3599_v0  ;;  %3587 = vmatpush3.bf16.msra.mxu1 %v3599_v0  ;;  %s4367_s16 = smov (!%p214_p4, %s3706_s16), 1 }
  0x10   : > { %s4365_s19 = smov (!%p203_p3, %s2600_s19), 255  ;;  %3449 = vmatprep.subr.bf16.mxu0 %v3600_v1  ;;  %3584 = vmatprep.subr.bf16.mxu1 %v3600_v1  ;;  %s2604_s7 = sshll.u32 %s4367_s16, 3 }
  0x11   : > { %s2601_s24 = sshll.u32 %s4365_s19, 2  ;;  %s217_s10 = scalar_lea.vmem %s4330_s3, %s2604_s7 }
  0x12   : > { %s3728_s27 = scalar_lea.vmem %s4327_s0, %s2601_s24  ;;  %s3866_s6 = scalar_lea.vmem %s4329_s2, %s2601_s24 }
  0x13   : > { %3450 = vmatpush3.bf16.msra.mxu0 %v3600_v1  ;;  %v3603_v3 = vld [vmem:[%s3728_s27] sm:$0xff]   ;;  %3588 = vmatpush3.bf16.msra.mxu1 %v3600_v1  ;;  %v3604_v5 = vld [vmem:[%s3728_s27 + $0x8] sm:$0xff]   ;;  %v3605_v6 = vld [vmem:[%s3728_s27 + $0x10] sm:$0xff]   ;;  %s221_s13 = scalar_lea.vmem %s4331_s4, %s2604_s7 }
  0x14   : > { %3451 = vmatprep.subr.bf16.mxu0 %v3601_v2  ;;  %3585 = vmatprep.subr.bf16.mxu1 %v3601_v2  ;;  %v3606_v7 = vld [vmem:[%s3728_s27 + $0x18] sm:$0xff]   ;;  %v3607_v8 = vld [vmem:[%s3728_s27 + $0x20] sm:$0xff]   ;;  %v3608_v9 = vld [vmem:[%s3728_s27 + $0x28] sm:$0xff]  }
  0x15   : > { %3455 = vmatprep.mubr.msk.bf16.mxu0 %vm703_vm0, %v3603_v3  ;;  %v3609_v10 = vld [vmem:[%s3728_s27 + $0x30] sm:$0xff]   ;;  %v3610_v11 = vld [vmem:[%s3728_s27 + $0x38] sm:$0xff]   ;;  %v3611_v12 = vld [vmem:[%s3728_s27 + $0x40] sm:$0xff]  }
  0x16   : > { %v3635_v13 = vld [vmem:[%s3728_s27 + $0x100] sm:$0xff]   ;;  %v3636_v14 = vld [vmem:[%s3728_s27 + $0x108] sm:$0xff]   ;;  %v3637_v15 = vld [vmem:[%s3728_s27 + $0x110] sm:$0xff]  }
  0x17   : > { %3452 = vmatpush3.bf16.msra.mxu0 %v3601_v2  ;;  %3589 = vmatpush3.bf16.msra.mxu1 %v3601_v2  ;;  %v3612_v16 = vld [vmem:[%s3728_s27 + $0x48] sm:$0xff]   ;;  %v3613_v17 = vld [vmem:[%s3728_s27 + $0x50] sm:$0xff]   ;;  %v3638_v18 = vld [vmem:[%s3728_s27 + $0x118] sm:$0xff]  }
  0x18   : > { %3453 = vmatprep.subr.bf16.mxu0 %v3602_v4  ;;  %3586 = vmatprep.subr.bf16.mxu1 %v3602_v4  ;;  %v3639_v19 = vld [vmem:[%s3728_s27 + $0x120] sm:$0xff]   ;;  %v3614_v20 = vld [vmem:[%s3728_s27 + $0x58] sm:$0xff]   ;;  %v3640_v22 = vld [vmem:[%s3728_s27 + $0x128] sm:$0xff]  }
  0x19   : > { %3519 = vmatprep.mubr.msk.bf16.mxu1 %vm703_vm0, %v3635_v13  ;;  %v3615_v21 = vld [vmem:[%s3728_s27 + $0x60] sm:$0xff]   ;;  %v3641_v23 = vld [vmem:[%s3728_s27 + $0x130] sm:$0xff]   ;;  %v3616_v24 = vld [vmem:[%s3728_s27 + $0x68] sm:$0xff]  }
  0x1a   : > { %v3642_v25 = vld [vmem:[%s3728_s27 + $0x138] sm:$0xff]   ;;  %v3617_v26 = vld [vmem:[%s3728_s27 + $0x70] sm:$0xff]   ;;  %v3643_v27 = vld [vmem:[%s3728_s27 + $0x140] sm:$0xff]  }
  0x1b   : > { %3454 = vmatpush3.bf16.msra.mxu0 %v3602_v4  ;;  %3590 = vmatpush3.bf16.msra.mxu1 %v3602_v4  ;;  %v3618_v28 = vld [vmem:[%s3728_s27 + $0x78] sm:$0xff]   ;;  %v3644_v29 = vld [vmem:[%s3728_s27 + $0x148] sm:$0xff]   ;;  %v3619_v30 = vld [vmem:[%s3728_s27 + $0x80] sm:$0xff]  }
  0x1c   : > { %v3645_v31 = vld [vmem:[%s3728_s27 + $0x150] sm:$0xff]   ;;  %v3620_v32 = vld [vmem:[%s3728_s27 + $0x88] sm:$0xff]   ;;  %v3646_v33 = vld [vmem:[%s3728_s27 + $0x158] sm:$0xff]  }
  0x1d   : > { %v3621_v34 = vld [vmem:[%s3728_s27 + $0x90] sm:$0xff]   ;;  %v3647_v35 = vld [vmem:[%s3728_s27 + $0x160] sm:$0xff]   ;;  %v3622_v36 = vld [vmem:[%s3728_s27 + $0x98] sm:$0xff]  }
  0x1e   : > { %3456 = vmatmul.mubr.msk.bf16.vlgmr.msra.gmra.mrb[0].mxu0 %vm703_vm0, %v3604_v5  ;;  %3520 = vmatmul.mubr.msk.bf16.vlgmr.msra.gmra.mrb[0].mxu1 %vm703_vm0, %v3636_v14  ;;  %v3648_v37 = vld [vmem:[%s3728_s27 + $0x168] sm:$0xff]   ;;  %v3623_v38 = vld [vmem:[%s3728_s27 + $0xa0] sm:$0xff]   ;;  %v3649_v39 = vld [vmem:[%s3728_s27 + $0x170] sm:$0xff]  }
  0x1f   : > { %3459 = vmatprep.mubr.msk.bf16.mxu0 %vm703_vm0, %v3605_v6  ;;  %3523 = vmatprep.mubr.msk.bf16.mxu1 %vm703_vm0, %v3637_v15  ;;  %v3624_v40 = vld [vmem:[%s3728_s27 + $0xa8] sm:$0xff]   ;;  %v3650_v41 = vld [vmem:[%s3728_s27 + $0x178] sm:$0xff]   ;;  %v3625_v42 = vld [vmem:[%s3728_s27 + $0xb0] sm:$0xff]  }
  0x20   : > { %v3651_v43 = vld [vmem:[%s3728_s27 + $0x180] sm:$0xff]   ;;  %v3626_v44 = vld [vmem:[%s3728_s27 + $0xb8] sm:$0xff]   ;;  %v3652_v45 = vld [vmem:[%s3728_s27 + $0x188] sm:$0xff]  }
  0x21   : > { %v3627_v46 = vld [vmem:[%s3728_s27 + $0xc0] sm:$0xff]   ;;  %v3653_v47 = vld [vmem:[%s3728_s27 + $0x190] sm:$0xff]   ;;  %v3628_v48 = vld [vmem:[%s3728_s27 + $0xc8] sm:$0xff]  }
  0x22   : > { %v3654_v49 = vld [vmem:[%s3728_s27 + $0x198] sm:$0xff]   ;;  %v3629_v50 = vld [vmem:[%s3728_s27 + $0xd0] sm:$0xff]   ;;  %v3655_v51 = vld [vmem:[%s3728_s27 + $0x1a0] sm:$0xff]  }
  0x23   : > { %v3630_v52 = vld [vmem:[%s3728_s27 + $0xd8] sm:$0xff]   ;;  %v3656_v53 = vld [vmem:[%s3728_s27 + $0x1a8] sm:$0xff]   ;;  %v3631_v54 = vld [vmem:[%s3728_s27 + $0xe0] sm:$0xff]  }
  0x24   : > { %v3657_v55 = vld [vmem:[%s3728_s27 + $0x1b0] sm:$0xff]   ;;  %v3632_v56 = vld [vmem:[%s3728_s27 + $0xe8] sm:$0xff]   ;;  %v3658_v57 = vld [vmem:[%s3728_s27 + $0x1b8] sm:$0xff]  }
  0x25   : > { %v3633_v58 = vld [vmem:[%s3728_s27 + $0xf0] sm:$0xff]   ;;  %v3659_v59 = vld [vmem:[%s3728_s27 + $0x1c0] sm:$0xff]   ;;  %v3634_v60 = vld [vmem:[%s3728_s27 + $0xf8] sm:$0xff]  }
  0x26   : > { %3460 = vmatmul.mubr.msk.bf16.gmra.mrb[4].mxu0 %vm703_vm0, %v3606_v7  ;;  %3524 = vmatmul.mubr.msk.bf16.gmra.mrb[4].mxu1 %vm703_vm0, %v3638_v18  ;;  %v3660_v61 = vld [vmem:[%s3728_s27 + $0x1c8] sm:$0xff]   ;;  %v3661_v62 = vld [vmem:[%s3728_s27 + $0x1d0] sm:$0xff]   ;;  %v3662_v63 = vld [vmem:[%s3728_s27 + $0x1d8] sm:$0xff]  }
  0x27   : > { %3463 = vmatprep.mubr.msk.bf16.mxu0 %vm703_vm0, %v3607_v8  ;;  %3527 = vmatprep.mubr.msk.bf16.mxu1 %vm703_vm0, %v3639_v19  ;;  %v3663_v0 = vld [vmem:[%s3728_s27 + $0x1e0] sm:$0xff]   ;;  %v3664_v1 = vld [vmem:[%s3728_s27 + $0x1e8] sm:$0xff]   ;;  %v3665_v2 = vld [vmem:[%s3728_s27 + $0x1f0] sm:$0xff]  }
  0x28   : > { %v3666_v3 = vld [vmem:[%s3728_s27 + $0x1f8] sm:$0xff]  }
  0x2e   : > { %3464 = vmatmul.mubr.msk.bf16.gmra.mrb[8].mxu0 %vm703_vm0, %v3608_v9  ;;  %3528 = vmatmul.mubr.msk.bf16.gmra.mrb[8].mxu1 %vm703_vm0, %v3640_v22 }
  0x2f   : > { %3467 = vmatprep.mubr.msk.bf16.mxu0 %vm703_vm0, %v3609_v10  ;;  %3531 = vmatprep.mubr.msk.bf16.mxu1 %vm703_vm0, %v3641_v23 }
  0x36   : > { %3468 = vmatmul.mubr.msk.bf16.gmra.mrb[12].mxu0 %vm703_vm0, %v3610_v11  ;;  %3532 = vmatmul.mubr.msk.bf16.gmra.mrb[12].mxu1 %vm703_vm0, %v3642_v25 }
  0x37   : > { %3471 = vmatprep.mubr.msk.bf16.mxu0 %vm703_vm0, %v3611_v12  ;;  %3535 = vmatprep.mubr.msk.bf16.mxu1 %vm703_vm0, %v3643_v27 }
  0x3e   : > { %3472 = vmatmul.mubr.msk.bf16.gmra.mrb[16].mxu0 %vm703_vm0, %v3612_v16  ;;  %3536 = vmatmul.mubr.msk.bf16.gmra.mrb[16].mxu1 %vm703_vm0, %v3644_v29 }
  0x3f   : > { %3475 = vmatprep.mubr.msk.bf16.mxu0 %vm703_vm0, %v3613_v17  ;;  %3539 = vmatprep.mubr.msk.bf16.mxu1 %vm703_vm0, %v3645_v31 }
  0x46   : > { %3476 = vmatmul.mubr.msk.bf16.gmra.mrb[20].mxu0 %vm703_vm0, %v3614_v20  ;;  %3540 = vmatmul.mubr.msk.bf16.gmra.mrb[20].mxu1 %vm703_vm0, %v3646_v33 }
  0x47   : > { %3479 = vmatprep.mubr.msk.bf16.mxu0 %vm703_vm0, %v3615_v21  ;;  %3543 = vmatprep.mubr.msk.bf16.mxu1 %vm703_vm0, %v3647_v35 }
  0x4e   : > { %3480 = vmatmul.mubr.msk.bf16.gmra.mrb[24].mxu0 %vm703_vm0, %v3616_v24  ;;  %3544 = vmatmul.mubr.msk.bf16.gmra.mrb[24].mxu1 %vm703_vm0, %v3648_v37 }
  0x4f   : > { %3483 = vmatprep.mubr.msk.bf16.mxu0 %vm703_vm0, %v3617_v26  ;;  %3547 = vmatprep.mubr.msk.bf16.mxu1 %vm703_vm0, %v3649_v39 }
  0x56   : > { %3484 = vmatmul.mubr.msk.bf16.gmra.mrb[28].mxu0 %vm703_vm0, %v3618_v28  ;;  %3548 = vmatmul.mubr.msk.bf16.gmra.mrb[28].mxu1 %vm703_vm0, %v3650_v41 }
  0x57   : > { %3487 = vmatprep.mubr.msk.bf16.mxu0 %vm703_vm0, %v3619_v30  ;;  %3551 = vmatprep.mubr.msk.bf16.mxu1 %vm703_vm0, %v3651_v43 }
  0x5e   : > { %3488 = vmatmul.mubr.msk.bf16.gmra.mrb[32].mxu0 %vm703_vm0, %v3620_v32  ;;  %3552 = vmatmul.mubr.msk.bf16.gmra.mrb[32].mxu1 %vm703_vm0, %v3652_v45 }
  0x5f   : > { %3491 = vmatprep.mubr.msk.bf16.mxu0 %vm703_vm0, %v3621_v34  ;;  %3555 = vmatprep.mubr.msk.bf16.mxu1 %vm703_vm0, %v3653_v47 }
  0x66   : > { %3492 = vmatmul.mubr.msk.bf16.gmra.mrb[36].mxu0 %vm703_vm0, %v3622_v36  ;;  %3556 = vmatmul.mubr.msk.bf16.gmra.mrb[36].mxu1 %vm703_vm0, %v3654_v49 }
  0x67   : > { %3495 = vmatprep.mubr.msk.bf16.mxu0 %vm703_vm0, %v3623_v38  ;;  %3559 = vmatprep.mubr.msk.bf16.mxu1 %vm703_vm0, %v3655_v51 }
  0x6e   : > { %3496 = vmatmul.mubr.msk.bf16.gmra.mrb[40].mxu0 %vm703_vm0, %v3624_v40  ;;  %3560 = vmatmul.mubr.msk.bf16.gmra.mrb[40].mxu1 %vm703_vm0, %v3656_v53 }
  0x6f   : > { %3499 = vmatprep.mubr.msk.bf16.mxu0 %vm703_vm0, %v3625_v42  ;;  %3563 = vmatprep.mubr.msk.bf16.mxu1 %vm703_vm0, %v3657_v55 }
  0x76   : > { %3500 = vmatmul.mubr.msk.bf16.gmra.mrb[44].mxu0 %vm703_vm0, %v3626_v44  ;;  %3564 = vmatmul.mubr.msk.bf16.gmra.mrb[44].mxu1 %vm703_vm0, %v3658_v57 }
  0x77   : > { %3503 = vmatprep.mubr.msk.bf16.mxu0 %vm703_vm0, %v3627_v46  ;;  %3567 = vmatprep.mubr.msk.bf16.mxu1 %vm703_vm0, %v3659_v59 }
  0x7e   : > { %3504 = vmatmul.mubr.msk.bf16.gmra.mrb[48].mxu0 %vm703_vm0, %v3628_v48  ;;  %3568 = vmatmul.mubr.msk.bf16.gmra.mrb[48].mxu1 %vm703_vm0, %v3660_v61 }
  0x7f   : > { %3507 = vmatprep.mubr.msk.bf16.mxu0 %vm703_vm0, %v3629_v50  ;;  %3571 = vmatprep.mubr.msk.bf16.mxu1 %vm703_vm0, %v3661_v62 }
  0x86   : > { %3508 = vmatmul.mubr.msk.bf16.gmra.mrb[52].mxu0 %vm703_vm0, %v3630_v52  ;;  %3572 = vmatmul.mubr.msk.bf16.gmra.mrb[52].mxu1 %vm703_vm0, %v3662_v63 }
  0x87   : > { %3511 = vmatprep.mubr.msk.bf16.mxu0 %vm703_vm0, %v3631_v54  ;;  %3575 = vmatprep.mubr.msk.bf16.mxu1 %vm703_vm0, %v3663_v0 }
  0x8e   : > { %3512 = vmatmul.mubr.msk.bf16.gmra.mrb[56].mxu0 %vm703_vm0, %v3632_v56  ;;  %3576 = vmatmul.mubr.msk.bf16.gmra.mrb[56].mxu1 %vm703_vm0, %v3664_v1 }
  0x8f   : > { %3515 = vmatprep.mubr.msk.bf16.mxu0 %vm703_vm0, %v3633_v58  ;;  %3579 = vmatprep.mubr.msk.bf16.mxu1 %vm703_vm0, %v3665_v2 }
  0x96   : > { %3516 = vmatmul.mubr.msk.bf16.gmra.mrb[60].mxu0 %vm703_vm0, %v3634_v60  ;;  %3580 = vmatmul.mubr.msk.bf16.gmra.mrb[60].mxu1 %vm703_vm0, %v3666_v3 }
  0xf1   : > { %v3457_v4 = vpop.f32.mrb[0].mxu0  ;;  %v3874_v56 = vpop.f32.mrb[0].mxu1 }
  0xf2   : > { %v930_v5 = vpop.f32.mrb[1].mxu0  ;;  %v2216_v13 = vmul.f32 %v3457_v4, %v3457_v4  ;;  %v3876_v58 = vpop.f32.mrb[1].mxu1 }
  0xf3   : > { %v3458_v6 = vpop.f32.mrb[2].mxu0  ;;  %v2214_v9 = vmul.f32 %v930_v5, %v930_v5  ;;  %v3878_v63 = vpop.f32.mrb[2].mxu1 }
  0xf4   : > { %v3004_v7 = vpack.c.bf16 %v3458_v6, %v3457_v4  ;;  %v933_v8 = vpop.f32.mrb[3].mxu0  ;;  %v2217_v16 = vmul.f32 %v3458_v6, %v3458_v6  ;;  %v3164_v2 = vpack.c.bf16 %v3878_v63, %v3874_v56  ;;  %v3882_v3 = vpop.f32.mrb[3].mxu1 }
  0xf5   : > { %v2999_v10 = vpack.c.bf16 %v933_v8, %v930_v5  ;;  %v2081_v11 = vadd.f32 %v933_v8, %v930_v5  ;;  %v2215_v12 = vmul.f32 %v933_v8, %v933_v8  ;;  %v3159_v8 = vpack.c.bf16 %v3882_v3, %v3876_v58 }
  0xf6   : > { %3316 = vst [vmem:[%s3866_s6 + $0x8] sm:$0xff] %v3004_v7   ;;  %3348 = vst [vmem:[%s3866_s6 + $0x108] sm:$0xff] %v3164_v2  }
  0xf7   : > { %3000 = vst [vmem:[%s3866_s6] sm:$0xff] %v2999_v10   ;;  %v2082_v14 = vadd.f32 %v3457_v4, %v2081_v11  ;;  %v2342_v15 = vadd.f32 %v2215_v12, %v2214_v9  ;;  %3347 = vst [vmem:[%s3866_s6 + $0x100] sm:$0xff] %v3159_v8  }
  0xf9   : > { %v2343_v17 = vadd.f32 %v2342_v15, %v2216_v13  ;;  %v3461_v18 = vpop.f32.mrb[4].mxu0  ;;  %v2083_v19 = vadd.f32 %v3458_v6, %v2082_v14 }
  0xfa   : > { %v946_v20 = vpop.f32.mrb[5].mxu0  ;;  %v2220_v31 = vmul.f32 %v3461_v18, %v3461_v18 }
  0xfb   : > { %v2084_v21 = vadd.f32 %v2083_v19, %v946_v20  ;;  %v2218_v22 = vmul.f32 %v946_v20, %v946_v20  ;;  %v2344_v23 = vadd.f32 %v2343_v17, %v2217_v16  ;;  %v3462_v24 = vpop.f32.mrb[6].mxu0  ;;  %v3890_v16 = vpop.f32.mrb[4].mxu1 }
  0xfc   : > { %v3014_v25 = vpack.c.bf16 %v3462_v24, %v3461_v18  ;;  %v949_v26 = vpop.f32.mrb[7].mxu0  ;;  %v2221_v34 = vmul.f32 %v3462_v24, %v3462_v24 }
  0xfd   : > { %v2345_v27 = vadd.f32 %v2344_v23, %v2218_v22  ;;  %v3009_v28 = vpack.c.bf16 %v949_v26, %v946_v20  ;;  %v2085_v29 = vadd.f32 %v2084_v21, %v949_v26  ;;  %v2219_v30 = vmul.f32 %v949_v26, %v949_v26 }
  0xfe   : > { %3318 = vst [vmem:[%s3866_s6 + $0x18] sm:$0xff] %v3014_v25  }
  0xff   : > { %3317 = vst [vmem:[%s3866_s6 + $0x10] sm:$0xff] %v3009_v28   ;;  %v2086_v32 = vadd.f32 %v3461_v18, %v2085_v29  ;;  %v2346_v33 = vadd.f32 %v2345_v27, %v2219_v30  ;;  %v3892_v18 = vpop.f32.mrb[5].mxu1 }
 0x100   : > { %v3894_v23 = vpop.f32.mrb[6].mxu1 }
 0x101   : > { %v2347_v35 = vadd.f32 %v2346_v33, %v2220_v31  ;;  %v3465_v36 = vpop.f32.mrb[8].mxu0  ;;  %v2087_v37 = vadd.f32 %v3462_v24, %v2086_v32  ;;  %v3174_v26 = vpack.c.bf16 %v3894_v23, %v3890_v16  ;;  %v3898_v27 = vpop.f32.mrb[7].mxu1 }
 0x102   : > { %v962_v38 = vpop.f32.mrb[9].mxu0  ;;  %v2224_v49 = vmul.f32 %v3465_v36, %v3465_v36  ;;  %v3169_v32 = vpack.c.bf16 %v3898_v27, %v3892_v18 }
 0x103   : > { %v2088_v39 = vadd.f32 %v2087_v37, %v962_v38  ;;  %v2222_v40 = vmul.f32 %v962_v38, %v962_v38  ;;  %v2348_v41 = vadd.f32 %v2347_v35, %v2221_v34  ;;  %v3466_v42 = vpop.f32.mrb[10].mxu0  ;;  %3350 = vst [vmem:[%s3866_s6 + $0x118] sm:$0xff] %v3174_v26  }
 0x104   : > { %v3024_v43 = vpack.c.bf16 %v3466_v42, %v3465_v36  ;;  %v965_v44 = vpop.f32.mrb[11].mxu0  ;;  %v2225_v52 = vmul.f32 %v3466_v42, %v3466_v42  ;;  %3349 = vst [vmem:[%s3866_s6 + $0x110] sm:$0xff] %v3169_v32  }
 0x105   : > { %v2349_v45 = vadd.f32 %v2348_v41, %v2222_v40  ;;  %v3019_v46 = vpack.c.bf16 %v965_v44, %v962_v38  ;;  %v2089_v47 = vadd.f32 %v2088_v39, %v965_v44  ;;  %v2223_v48 = vmul.f32 %v965_v44, %v965_v44  ;;  %v3906_v40 = vpop.f32.mrb[8].mxu1 }
 0x106   : > { %3320 = vst [vmem:[%s3866_s6 + $0x28] sm:$0xff] %v3024_v43  }
 0x107   : > { %3319 = vst [vmem:[%s3866_s6 + $0x20] sm:$0xff] %v3019_v46   ;;  %v2090_v50 = vadd.f32 %v3465_v36, %v2089_v47  ;;  %v2350_v51 = vadd.f32 %v2349_v45, %v2223_v48 }
 0x109   : > { %v2351_v53 = vadd.f32 %v2350_v51, %v2224_v49  ;;  %v3469_v54 = vpop.f32.mrb[12].mxu0  ;;  %v2091_v55 = vadd.f32 %v3466_v42, %v2090_v50  ;;  %v3908_v42 = vpop.f32.mrb[9].mxu1 }
 0x10a   : > { %v978_v57 = vpop.f32.mrb[13].mxu0  ;;  %v2228_v9 = vmul.f32 %v3469_v54, %v3469_v54  ;;  %v3910_v47 = vpop.f32.mrb[10].mxu1 }
 0x10b   : > { %v2092_v59 = vadd.f32 %v2091_v55, %v978_v57  ;;  %v2226_v60 = vmul.f32 %v978_v57, %v978_v57  ;;  %v2352_v61 = vadd.f32 %v2351_v53, %v2225_v52  ;;  %v3470_v62 = vpop.f32.mrb[14].mxu0  ;;  %v3184_v50 = vpack.c.bf16 %v3910_v47, %v3906_v40  ;;  %v3914_v51 = vpop.f32.mrb[11].mxu1 }
 0x10c   : > { %v3034_v0 = vpack.c.bf16 %v3470_v62, %v3469_v54  ;;  %v981_v1 = vpop.f32.mrb[15].mxu0  ;;  %v2229_v12 = vmul.f32 %v3470_v62, %v3470_v62 }
 0x10d   : > { %v2353_v4 = vadd.f32 %v2352_v61, %v2226_v60  ;;  %v3029_v5 = vpack.c.bf16 %v981_v1, %v978_v57  ;;  %v2093_v6 = vadd.f32 %v2092_v59, %v981_v1  ;;  %v2227_v7 = vmul.f32 %v981_v1, %v981_v1  ;;  %3352 = vst [vmem:[%s3866_s6 + $0x128] sm:$0xff] %v3184_v50  }
 0x10e   : > { %3322 = vst [vmem:[%s3866_s6 + $0x38] sm:$0xff] %v3034_v0   ;;  %v3179_v57 = vpack.c.bf16 %v3914_v51, %v3908_v42 }
 0x10f   : > { %3321 = vst [vmem:[%s3866_s6 + $0x30] sm:$0xff] %v3029_v5   ;;  %v2094_v10 = vadd.f32 %v3469_v54, %v2093_v6  ;;  %v2354_v11 = vadd.f32 %v2353_v4, %v2227_v7  ;;  %v3922_v4 = vpop.f32.mrb[12].mxu1 }
 0x110   : > { %3351 = vst [vmem:[%s3866_s6 + $0x120] sm:$0xff] %v3179_v57   ;;  %v3924_v6 = vpop.f32.mrb[13].mxu1 }
 0x111   : > { %v2355_v13 = vadd.f32 %v2354_v11, %v2228_v9  ;;  %v3473_v14 = vpop.f32.mrb[16].mxu0  ;;  %v2095_v15 = vadd.f32 %v3470_v62, %v2094_v10  ;;  %v3926_v11 = vpop.f32.mrb[14].mxu1 }
 0x112   : > { %v994_v17 = vpop.f32.mrb[17].mxu0  ;;  %v2232_v33 = vmul.f32 %v3473_v14, %v3473_v14 }
 0x113   : > { %v2096_v19 = vadd.f32 %v2095_v15, %v994_v17  ;;  %v2230_v20 = vmul.f32 %v994_v17, %v994_v17  ;;  %v2356_v21 = vadd.f32 %v2355_v13, %v2229_v12  ;;  %v3474_v22 = vpop.f32.mrb[18].mxu0  ;;  %v3930_v15 = vpop.f32.mrb[15].mxu1 }
 0x114   : > { %v3044_v24 = vpack.c.bf16 %v3474_v22, %v3473_v14  ;;  %v997_v25 = vpop.f32.mrb[19].mxu0  ;;  %v2233_v36 = vmul.f32 %v3474_v22, %v3474_v22  ;;  %v3938_v32 = vpop.f32.mrb[16].mxu1 }
 0x115   : > { %v2357_v28 = vadd.f32 %v2356_v21, %v2230_v20  ;;  %v3039_v29 = vpack.c.bf16 %v997_v25, %v994_v17  ;;  %v2097_v30 = vadd.f32 %v2096_v19, %v997_v25  ;;  %v2231_v31 = vmul.f32 %v997_v25, %v997_v25 }
 0x116   : > { %3324 = vst [vmem:[%s3866_s6 + $0x48] sm:$0xff] %v3044_v24  }
 0x117   : > { %3323 = vst [vmem:[%s3866_s6 + $0x40] sm:$0xff] %v3039_v29   ;;  %v2098_v34 = vadd.f32 %v3473_v14, %v2097_v30  ;;  %v2358_v35 = vadd.f32 %v2357_v28, %v2231_v31  ;;  %v3194_v14 = vpack.c.bf16 %v3926_v11, %v3922_v4 }
 0x119   : > { %v2359_v37 = vadd.f32 %v2358_v35, %v2232_v33  ;;  %v3477_v38 = vpop.f32.mrb[20].mxu0  ;;  %v2099_v39 = vadd.f32 %v3474_v22, %v2098_v34  ;;  %3354 = vst [vmem:[%s3866_s6 + $0x138] sm:$0xff] %v3194_v14   ;;  %v3189_v22 = vpack.c.bf16 %v3930_v15, %v3924_v6  ;;  %v3940_v34 = vpop.f32.mrb[17].mxu1 }
 0x11a   : > { %v1010_v41 = vpop.f32.mrb[21].mxu0  ;;  %v2236_v59 = vmul.f32 %v3477_v38, %v3477_v38 }
 0x11b   : > { %v2100_v43 = vadd.f32 %v2099_v39, %v1010_v41  ;;  %v2234_v44 = vmul.f32 %v1010_v41, %v1010_v41  ;;  %v2360_v45 = vadd.f32 %v2359_v37, %v2233_v36  ;;  %v3478_v46 = vpop.f32.mrb[22].mxu0  ;;  %3353 = vst [vmem:[%s3866_s6 + $0x130] sm:$0xff] %v3189_v22   ;;  %v3942_v39 = vpop.f32.mrb[18].mxu1 }
 0x11c   : > { %v3054_v48 = vpack.c.bf16 %v3478_v46, %v3477_v38  ;;  %v1013_v49 = vpop.f32.mrb[23].mxu0  ;;  %v2237_v62 = vmul.f32 %v3478_v46, %v3478_v46 }
 0x11d   : > { %v2361_v52 = vadd.f32 %v2360_v45, %v2234_v44  ;;  %v3049_v53 = vpack.c.bf16 %v1013_v49, %v1010_v41  ;;  %v2101_v54 = vadd.f32 %v2100_v43, %v1013_v49  ;;  %v2235_v55 = vmul.f32 %v1013_v49, %v1013_v49  ;;  %v3946_v45 = vpop.f32.mrb[19].mxu1 }
 0x11e   : > { %3326 = vst [vmem:[%s3866_s6 + $0x58] sm:$0xff] %v3054_v48   ;;  %v3204_v44 = vpack.c.bf16 %v3942_v39, %v3938_v32 }
 0x11f   : > { %3325 = vst [vmem:[%s3866_s6 + $0x50] sm:$0xff] %v3049_v53   ;;  %v2102_v60 = vadd.f32 %v3477_v38, %v2101_v54  ;;  %v2362_v61 = vadd.f32 %v2361_v52, %v2235_v55  ;;  %v3199_v52 = vpack.c.bf16 %v3946_v45, %v3940_v34 }
 0x120   : > { %3356 = vst [vmem:[%s3866_s6 + $0x148] sm:$0xff] %v3204_v44  }
 0x121   : > { %v2363_v0 = vadd.f32 %v2362_v61, %v2236_v59  ;;  %v3481_v1 = vpop.f32.mrb[24].mxu0  ;;  %v2103_v2 = vadd.f32 %v3478_v46, %v2102_v60  ;;  %3355 = vst [vmem:[%s3866_s6 + $0x140] sm:$0xff] %v3199_v52  }
 0x122   : > { %v1026_v5 = vpop.f32.mrb[25].mxu0  ;;  %v2240_v24 = vmul.f32 %v3481_v1, %v3481_v1 }
 0x123   : > { %v2104_v7 = vadd.f32 %v2103_v2, %v1026_v5  ;;  %v2238_v8 = vmul.f32 %v1026_v5, %v1026_v5  ;;  %v2364_v9 = vadd.f32 %v2363_v0, %v2237_v62  ;;  %v3482_v10 = vpop.f32.mrb[26].mxu0  ;;  %v3954_v62 = vpop.f32.mrb[20].mxu1 }
 0x124   : > { %v3064_v12 = vpack.c.bf16 %v3482_v10, %v3481_v1  ;;  %v1029_v13 = vpop.f32.mrb[27].mxu0  ;;  %v2241_v28 = vmul.f32 %v3482_v10, %v3482_v10 }
 0x125   : > { %v2365_v17 = vadd.f32 %v2364_v9, %v2238_v8  ;;  %v3059_v19 = vpack.c.bf16 %v1029_v13, %v1026_v5  ;;  %v2105_v20 = vadd.f32 %v2104_v7, %v1029_v13  ;;  %v2239_v21 = vmul.f32 %v1029_v13, %v1029_v13 }
 0x126   : > { %3328 = vst [vmem:[%s3866_s6 + $0x68] sm:$0xff] %v3064_v12  }
 0x127   : > { %3327 = vst [vmem:[%s3866_s6 + $0x60] sm:$0xff] %v3059_v19   ;;  %v2106_v25 = vadd.f32 %v3481_v1, %v2105_v20  ;;  %v2366_v26 = vadd.f32 %v2365_v17, %v2239_v21  ;;  %v3956_v1 = vpop.f32.mrb[21].mxu1 }
 0x128   : > { %v3958_v9 = vpop.f32.mrb[22].mxu1 }
 0x129   : > { %v2367_v29 = vadd.f32 %v2366_v26, %v2240_v24  ;;  %v3485_v30 = vpop.f32.mrb[28].mxu0  ;;  %v2107_v31 = vadd.f32 %v3482_v10, %v2106_v25  ;;  %v3214_v13 = vpack.c.bf16 %v3958_v9, %v3954_v62  ;;  %v3962_v14 = vpop.f32.mrb[23].mxu1 }
 0x12a   : > { %v1042_v33 = vpop.f32.mrb[29].mxu0  ;;  %v2244_v53 = vmul.f32 %v3485_v30, %v3485_v30  ;;  %v3209_v22 = vpack.c.bf16 %v3962_v14, %v3956_v1 }
 0x12b   : > { %v2108_v35 = vadd.f32 %v2107_v31, %v1042_v33  ;;  %v2242_v36 = vmul.f32 %v1042_v33, %v1042_v33  ;;  %v2368_v37 = vadd.f32 %v2367_v29, %v2241_v28  ;;  %v3486_v38 = vpop.f32.mrb[30].mxu0  ;;  %3358 = vst [vmem:[%s3866_s6 + $0x158] sm:$0xff] %v3214_v13  }
 0x12c   : > { %v3074_v41 = vpack.c.bf16 %v3486_v38, %v3485_v30  ;;  %v1045_v43 = vpop.f32.mrb[31].mxu0  ;;  %v2245_v57 = vmul.f32 %v3486_v38, %v3486_v38  ;;  %3357 = vst [vmem:[%s3866_s6 + $0x150] sm:$0xff] %v3209_v22  }
 0x12d   : > { %v2369_v46 = vadd.f32 %v2368_v37, %v2242_v36  ;;  %v3069_v48 = vpack.c.bf16 %v1045_v43, %v1042_v33  ;;  %v2109_v49 = vadd.f32 %v2108_v35, %v1045_v43  ;;  %v2243_v50 = vmul.f32 %v1045_v43, %v1045_v43  ;;  %v3970_v33 = vpop.f32.mrb[24].mxu1 }
 0x12e   : > { %3330 = vst [vmem:[%s3866_s6 + $0x78] sm:$0xff] %v3074_v41   ;;  %v3972_v36 = vpop.f32.mrb[25].mxu1 }
 0x12f   : > { %3329 = vst [vmem:[%s3866_s6 + $0x70] sm:$0xff] %v3069_v48   ;;  %v2110_v54 = vadd.f32 %v3485_v30, %v2109_v49  ;;  %v2370_v55 = vadd.f32 %v2369_v46, %v2243_v50  ;;  %v3974_v44 = vpop.f32.mrb[26].mxu1 }
 0x130   : > { %v3224_v49 = vpack.c.bf16 %v3974_v44, %v3970_v33  ;;  %v3978_v50 = vpop.f32.mrb[27].mxu1 }
 0x131   : > { %v2371_v59 = vadd.f32 %v2370_v55, %v2244_v53  ;;  %v3489_v60 = vpop.f32.mrb[32].mxu0  ;;  %v2111_v61 = vadd.f32 %v3486_v38, %v2110_v54 }
 0x132   : > { %v1058_v0 = vpop.f32.mrb[33].mxu0  ;;  %v2248_v24 = vmul.f32 %v3489_v60, %v3489_v60  ;;  %3360 = vst [vmem:[%s3866_s6 + $0x168] sm:$0xff] %v3224_v49  }
 0x133   : > { %v2112_v2 = vadd.f32 %v2111_v61, %v1058_v0  ;;  %v2246_v5 = vmul.f32 %v1058_v0, %v1058_v0  ;;  %v2372_v7 = vadd.f32 %v2371_v59, %v2245_v57  ;;  %v3490_v8 = vpop.f32.mrb[34].mxu0  ;;  %v3219_v57 = vpack.c.bf16 %v3978_v50, %v3972_v36 }
 0x134   : > { %v3084_v10 = vpack.c.bf16 %v3490_v8, %v3489_v60  ;;  %v1061_v12 = vpop.f32.mrb[35].mxu0  ;;  %v2249_v28 = vmul.f32 %v3490_v8, %v3490_v8 }
 0x135   : > { %v2373_v17 = vadd.f32 %v2372_v7, %v2246_v5  ;;  %v3079_v19 = vpack.c.bf16 %v1061_v12, %v1058_v0  ;;  %v2113_v20 = vadd.f32 %v2112_v2, %v1061_v12  ;;  %v2247_v21 = vmul.f32 %v1061_v12, %v1061_v12  ;;  %3359 = vst [vmem:[%s3866_s6 + $0x160] sm:$0xff] %v3219_v57  }
 0x136   : > { %3332 = vst [vmem:[%s3866_s6 + $0x88] sm:$0xff] %v3084_v10  }
 0x137   : > { %3331 = vst [vmem:[%s3866_s6 + $0x80] sm:$0xff] %v3079_v19   ;;  %v2114_v25 = vadd.f32 %v3489_v60, %v2113_v20  ;;  %v2374_v26 = vadd.f32 %v2373_v17, %v2247_v21 }
 0x139   : > { %v2375_v29 = vadd.f32 %v2374_v26, %v2248_v24  ;;  %v3493_v30 = vpop.f32.mrb[36].mxu0  ;;  %v2115_v31 = vadd.f32 %v3490_v8, %v2114_v25  ;;  %v3986_v8 = vpop.f32.mrb[28].mxu1 }
 0x13a   : > { %v1074_v35 = vpop.f32.mrb[37].mxu0  ;;  %v2252_v59 = vmul.f32 %v3493_v30, %v3493_v30  ;;  %v3988_v12 = vpop.f32.mrb[29].mxu1 }
 0x13b   : > { %v2116_v37 = vadd.f32 %v2115_v31, %v1074_v35  ;;  %v2250_v38 = vmul.f32 %v1074_v35, %v1074_v35  ;;  %v2376_v41 = vadd.f32 %v2375_v29, %v2249_v28  ;;  %v3494_v43 = vpop.f32.mrb[38].mxu0  ;;  %v3990_v21 = vpop.f32.mrb[30].mxu1 }
 0x13c   : > { %v3094_v46 = vpack.c.bf16 %v3494_v43, %v3493_v30  ;;  %v1077_v48 = vpop.f32.mrb[39].mxu0  ;;  %v2253_v0 = vmul.f32 %v3494_v43, %v3494_v43  ;;  %v3234_v25 = vpack.c.bf16 %v3990_v21, %v3986_v8  ;;  %v3994_v26 = vpop.f32.mrb[31].mxu1 }
 0x13d   : > { %v2377_v52 = vadd.f32 %v2376_v41, %v2250_v38  ;;  %v3089_v53 = vpack.c.bf16 %v1077_v48, %v1074_v35  ;;  %v2117_v54 = vadd.f32 %v2116_v37, %v1077_v48  ;;  %v2251_v55 = vmul.f32 %v1077_v48, %v1077_v48 }
 0x13e   : > { %3334 = vst [vmem:[%s3866_s6 + $0x98] sm:$0xff] %v3094_v46   ;;  %3362 = vst [vmem:[%s3866_s6 + $0x178] sm:$0xff] %v3234_v25   ;;  %v3229_v35 = vpack.c.bf16 %v3994_v26, %v3988_v12 }
 0x13f   : > { %3333 = vst [vmem:[%s3866_s6 + $0x90] sm:$0xff] %v3089_v53   ;;  %v2118_v60 = vadd.f32 %v3493_v30, %v2117_v54  ;;  %v2378_v61 = vadd.f32 %v2377_v52, %v2251_v55  ;;  %v4002_v52 = vpop.f32.mrb[32].mxu1 }
 0x140   : > { %3361 = vst [vmem:[%s3866_s6 + $0x170] sm:$0xff] %v3229_v35   ;;  %v4004_v54 = vpop.f32.mrb[33].mxu1 }
 0x141   : > { %v2379_v2 = vadd.f32 %v2378_v61, %v2252_v59  ;;  %v3497_v5 = vpop.f32.mrb[40].mxu0  ;;  %v2119_v7 = vadd.f32 %v3494_v43, %v2118_v60  ;;  %v4006_v61 = vpop.f32.mrb[34].mxu1 }
 0x142   : > { %v1090_v10 = vpop.f32.mrb[41].mxu0  ;;  %v2256_v37 = vmul.f32 %v3497_v5, %v3497_v5 }
 0x143   : > { %v2120_v13 = vadd.f32 %v2119_v7, %v1090_v10  ;;  %v2254_v17 = vmul.f32 %v1090_v10, %v1090_v10  ;;  %v2380_v19 = vadd.f32 %v2379_v2, %v2253_v0  ;;  %v3498_v20 = vpop.f32.mrb[42].mxu0  ;;  %v4010_v7 = vpop.f32.mrb[35].mxu1 }
 0x144   : > { %v3104_v22 = vpack.c.bf16 %v3498_v20, %v3497_v5  ;;  %v1093_v24 = vpop.f32.mrb[43].mxu0  ;;  %v2257_v43 = vmul.f32 %v3498_v20, %v3498_v20  ;;  %v4018_v35 = vpop.f32.mrb[36].mxu1 }
 0x145   : > { %v2381_v28 = vadd.f32 %v2380_v19, %v2254_v17  ;;  %v3099_v29 = vpack.c.bf16 %v1093_v24, %v1090_v10  ;;  %v2121_v30 = vadd.f32 %v2120_v13, %v1093_v24  ;;  %v2255_v31 = vmul.f32 %v1093_v24, %v1093_v24 }
 0x146   : > { %3336 = vst [vmem:[%s3866_s6 + $0xa8] sm:$0xff] %v3104_v22  }
 0x147   : > { %3335 = vst [vmem:[%s3866_s6 + $0xa0] sm:$0xff] %v3099_v29   ;;  %v2122_v38 = vadd.f32 %v3497_v5, %v2121_v30  ;;  %v2382_v41 = vadd.f32 %v2381_v28, %v2255_v31  ;;  %v3244_v5 = vpack.c.bf16 %v4006_v61, %v4002_v52 }
 0x149   : > { %v2383_v46 = vadd.f32 %v2382_v41, %v2256_v37  ;;  %v3501_v48 = vpop.f32.mrb[44].mxu0  ;;  %v2123_v49 = vadd.f32 %v3498_v20, %v2122_v38  ;;  %3364 = vst [vmem:[%s3866_s6 + $0x188] sm:$0xff] %v3244_v5   ;;  %v3239_v20 = vpack.c.bf16 %v4010_v7, %v4004_v54  ;;  %v4020_v38 = vpop.f32.mrb[37].mxu1 }
 0x14a   : > { %v1106_v53 = vpop.f32.mrb[45].mxu0  ;;  %v2260_v22 = vmul.f32 %v3501_v48, %v3501_v48 }
 0x14b   : > { %v2124_v55 = vadd.f32 %v2123_v49, %v1106_v53  ;;  %v2258_v57 = vmul.f32 %v1106_v53, %v1106_v53  ;;  %v2384_v59 = vadd.f32 %v2383_v46, %v2257_v43  ;;  %v3502_v60 = vpop.f32.mrb[46].mxu0  ;;  %3363 = vst [vmem:[%s3866_s6 + $0x180] sm:$0xff] %v3239_v20  }
 0x14c   : > { %v3114_v0 = vpack.c.bf16 %v3502_v60, %v3501_v48  ;;  %v1109_v2 = vpop.f32.mrb[47].mxu0  ;;  %v2261_v28 = vmul.f32 %v3502_v60, %v3502_v60 }
 0x14d   : > { %v2385_v10 = vadd.f32 %v2384_v59, %v2258_v57  ;;  %v3109_v13 = vpack.c.bf16 %v1109_v2, %v1106_v53  ;;  %v2125_v17 = vadd.f32 %v2124_v55, %v1109_v2  ;;  %v2259_v19 = vmul.f32 %v1109_v2, %v1109_v2  ;;  %v4022_v53 = vpop.f32.mrb[38].mxu1 }
 0x14e   : > { %3338 = vst [vmem:[%s3866_s6 + $0xb8] sm:$0xff] %v3114_v0   ;;  %v3254_v57 = vpack.c.bf16 %v4022_v53, %v4018_v35  ;;  %v4026_v59 = vpop.f32.mrb[39].mxu1 }
 0x14f   : > { %3337 = vst [vmem:[%s3866_s6 + $0xb0] sm:$0xff] %v3109_v13   ;;  %v2126_v24 = vadd.f32 %v3501_v48, %v2125_v17  ;;  %v2386_v25 = vadd.f32 %v2385_v10, %v2259_v19  ;;  %v3249_v10 = vpack.c.bf16 %v4026_v59, %v4020_v38 }
 0x150   : > { %3366 = vst [vmem:[%s3866_s6 + $0x198] sm:$0xff] %v3254_v57  }
 0x151   : > { %v2387_v29 = vadd.f32 %v2386_v25, %v2260_v22  ;;  %v3505_v30 = vpop.f32.mrb[48].mxu0  ;;  %v2127_v31 = vadd.f32 %v3502_v60, %v2126_v24  ;;  %3365 = vst [vmem:[%s3866_s6 + $0x190] sm:$0xff] %v3249_v10  }
 0x152   : > { %v1122_v37 = vpop.f32.mrb[49].mxu0  ;;  %v2264_v13 = vmul.f32 %v3505_v30, %v3505_v30 }
 0x153   : > { %v2128_v41 = vadd.f32 %v2127_v31, %v1122_v37  ;;  %v2262_v43 = vmul.f32 %v1122_v37, %v1122_v37  ;;  %v2388_v46 = vadd.f32 %v2387_v29, %v2261_v28  ;;  %v3506_v49 = vpop.f32.mrb[50].mxu0  ;;  %v4034_v28 = vpop.f32.mrb[40].mxu1 }
 0x154   : > { %v3124_v48 = vpack.c.bf16 %v3506_v49, %v3505_v30  ;;  %v1125_v55 = vpop.f32.mrb[51].mxu0  ;;  %v2265_v20 = vmul.f32 %v3506_v49, %v3506_v49  ;;  %4348 = vst [vmem:[#allocation2_spill] sm:$0xff] %v4034_v28  ;;  %v4036_v31 = vpop.f32.mrb[41].mxu1 }
 0x155   : > { %v2389_v60 = vadd.f32 %v2388_v46, %v2262_v43  ;;  %v3119_v0 = vpack.c.bf16 %v1125_v55, %v1122_v37  ;;  %v2129_v2 = vadd.f32 %v2128_v41, %v1125_v55  ;;  %v2263_v5 = vmul.f32 %v1125_v55, %v1125_v55  ;;  %4349 = vst [vmem:[#allocation3_spill] sm:$0xff] %v4036_v31 }
 0x156   : > { %3340 = vst [vmem:[%s3866_s6 + $0xc8] sm:$0xff] %v3124_v48   ;;  %v4038_v48 = vpop.f32.mrb[42].mxu1 }
 0x157   : > { %3339 = vst [vmem:[%s3866_s6 + $0xc0] sm:$0xff] %v3119_v0   ;;  %v2130_v17 = vadd.f32 %v3505_v30, %v2129_v2  ;;  %v2390_v19 = vadd.f32 %v2389_v60, %v2263_v5  ;;  %4350 = vst [vmem:[#allocation4_spill] sm:$0xff] %v4038_v48  ;;  %v4042_v57 = vpop.f32.mrb[43].mxu1 }
 0x158   : > { %4351 = vst [vmem:[#allocation5_spill] sm:$0xff] %v4042_v57  ;;  %v3259_v10 = vpack.c.bf16 %v4042_v57, %v4036_v31 }
 0x159   : > { %v2391_v22 = vadd.f32 %v2390_v19, %v2264_v13  ;;  %v3509_v24 = vpop.f32.mrb[52].mxu0  ;;  %v2131_v25 = vadd.f32 %v3506_v49, %v2130_v17  ;;  %v3264_v49 = vpack.c.bf16 %v4038_v48, %v4034_v28  ;;  %v4050_v28 = vpop.f32.mrb[44].mxu1 }
 0x15a   : > { %v1138_v29 = vpop.f32.mrb[53].mxu0  ;;  %v2268_v13 = vmul.f32 %v3509_v24, %v3509_v24  ;;  %3367 = vst [vmem:[%s3866_s6 + $0x1a0] sm:$0xff] %v3259_v10   ;;  %4352 = vst [vmem:[#allocation6_spill] sm:$0xff] %v4050_v28 }
 0x15b   : > { %v2132_v37 = vadd.f32 %v2131_v25, %v1138_v29  ;;  %v2266_v41 = vmul.f32 %v1138_v29, %v1138_v29  ;;  %v2392_v43 = vadd.f32 %v2391_v22, %v2265_v20  ;;  %v3510_v46 = vpop.f32.mrb[54].mxu0  ;;  %3368 = vst [vmem:[%s3866_s6 + $0x1a8] sm:$0xff] %v3264_v49  }
 0x15c   : > { %v3134_v30 = vpack.c.bf16 %v3510_v46, %v3509_v24  ;;  %v1141_v55 = vpop.f32.mrb[55].mxu0  ;;  %v2269_v20 = vmul.f32 %v3510_v46, %v3510_v46 }
 0x15d   : > { %v2393_v60 = vadd.f32 %v2392_v43, %v2266_v41  ;;  %v3129_v0 = vpack.c.bf16 %v1141_v55, %v1138_v29  ;;  %v2133_v2 = vadd.f32 %v2132_v37, %v1141_v55  ;;  %v2267_v5 = vmul.f32 %v1141_v55, %v1141_v55  ;;  %v4052_v37 = vpop.f32.mrb[45].mxu1 }
 0x15e   : > { %3342 = vst [vmem:[%s3866_s6 + $0xd8] sm:$0xff] %v3134_v30   ;;  %v4054_v49 = vpop.f32.mrb[46].mxu1 }
 0x15f   : > { %3341 = vst [vmem:[%s3866_s6 + $0xd0] sm:$0xff] %v3129_v0   ;;  %v2134_v17 = vadd.f32 %v3509_v24, %v2133_v2  ;;  %v2394_v19 = vadd.f32 %v2393_v60, %v2267_v5  ;;  %4353 = vst [vmem:[#allocation7_spill] sm:$0xff] %v4054_v49  ;;  %v4058_v0 = vpop.f32.mrb[47].mxu1 }
 0x160   : > { %4354 = vst [vmem:[#allocation8_spill] sm:$0xff] %v4058_v0 }
 0x161   : > { %v2395_v22 = vadd.f32 %v2394_v19, %v2268_v13  ;;  %v3513_v25 = vpop.f32.mrb[56].mxu0  ;;  %v2135_v48 = vadd.f32 %v3510_v46, %v2134_v17  ;;  %v3274_v46 = vpack.c.bf16 %v4054_v49, %v4050_v28  ;;  %v4066_v28 = vpop.f32.mrb[48].mxu1 }
 0x162   : > { %v1154_v29 = vpop.f32.mrb[57].mxu0  ;;  %v2272_v17 = vmul.f32 %v3513_v25, %v3513_v25 }
 0x163   : > { %v2136_v41 = vadd.f32 %v2135_v48, %v1154_v29  ;;  %v2270_v43 = vmul.f32 %v1154_v29, %v1154_v29  ;;  %v2396_v30 = vadd.f32 %v2395_v22, %v2269_v20  ;;  %v3514_v55 = vpop.f32.mrb[58].mxu0  ;;  %3370 = vst [vmem:[%s3866_s6 + $0x1b8] sm:$0xff] %v3274_v46   ;;  %v3269_v48 = vpack.c.bf16 %v4058_v0, %v4052_v37 }
 0x164   : > { %v3144_v24 = vpack.c.bf16 %v3514_v55, %v3513_v25  ;;  %v1157_v60 = vpop.f32.mrb[59].mxu0  ;;  %v2273_v22 = vmul.f32 %v3514_v55, %v3514_v55 }
 0x165   : > { %v2397_v2 = vadd.f32 %v2396_v30, %v2270_v43  ;;  %v3139_v5 = vpack.c.bf16 %v1157_v60, %v1154_v29  ;;  %v2137_v10 = vadd.f32 %v2136_v41, %v1157_v60  ;;  %v2271_v13 = vmul.f32 %v1157_v60, %v1157_v60  ;;  %3369 = vst [vmem:[%s3866_s6 + $0x1b0] sm:$0xff] %v3269_v48   ;;  %v4068_v41 = vpop.f32.mrb[49].mxu1 }
 0x166   : > { %3344 = vst [vmem:[%s3866_s6 + $0xe8] sm:$0xff] %v3144_v24   ;;  %v4070_v46 = vpop.f32.mrb[50].mxu1 }
 0x167   : > { %3343 = vst [vmem:[%s3866_s6 + $0xe0] sm:$0xff] %v3139_v5   ;;  %v2138_v19 = vadd.f32 %v3513_v25, %v2137_v10  ;;  %v2398_v20 = vadd.f32 %v2397_v2, %v2271_v13  ;;  %4355 = vst [vmem:[#allocation9_spill] sm:$0xff] %v4070_v46  ;;  %v4074_v5 = vpop.f32.mrb[51].mxu1 }
 0x169   : > { %v2399_v57 = vadd.f32 %v2398_v20, %v2272_v17  ;;  %v3517_v31 = vpop.f32.mrb[60].mxu0  ;;  %v2139_v49 = vadd.f32 %v3514_v55, %v2138_v19  ;;  %v3284_v55 = vpack.c.bf16 %v4070_v46, %v4066_v28 }
 0x16a   : > { %v1170_v29 = vpop.f32.mrb[61].mxu0 }
 0x16b   : > { %v2140_v43 = vadd.f32 %v2139_v49, %v1170_v29  ;;  %v2274_v30 = vmul.f32 %v1170_v29, %v1170_v29  ;;  %v2400_v24 = vadd.f32 %v2399_v57, %v2273_v22  ;;  %v3518_v60 = vpop.f32.mrb[62].mxu0  ;;  %3372 = vst [vmem:[%s3866_s6 + $0x1c8] sm:$0xff] %v3284_v55   ;;  %v3279_v57 = vpack.c.bf16 %v4074_v5, %v4068_v41 }
 0x16c   : > { %v3154_v25 = vpack.c.bf16 %v3518_v60, %v3517_v31  ;;  %v1173_v2 = vpop.f32.mrb[63].mxu0  ;;  %v2276_v49 = vmul.f32 %v3517_v31, %v3517_v31  ;;  %v2277_v22 = vmul.f32 %v3518_v60, %v3518_v60 }
 0x16d   : > { %v2401_v10 = vadd.f32 %v2400_v24, %v2274_v30  ;;  %v3149_v13 = vpack.c.bf16 %v1173_v2, %v1170_v29  ;;  %v2141_v48 = vadd.f32 %v2140_v43, %v1173_v2  ;;  %v2275_v17 = vmul.f32 %v1173_v2, %v1173_v2  ;;  %3371 = vst [vmem:[%s3866_s6 + $0x1c0] sm:$0xff] %v3279_v57   ;;  %v4084_v29 = vpop.f32.mrb[52].mxu1 }
 0x16e   : > { %3346 = vst [vmem:[%s3866_s6 + $0xf8] sm:$0xff] %v3154_v25   ;;  %v2278_v30 = vmul.f32 %v3876_v58, %v3876_v58  ;;  %v4086_v43 = vpop.f32.mrb[53].mxu1 }
 0x16f   : > { %3345 = vst [vmem:[%s3866_s6 + $0xf0] sm:$0xff] %v3149_v13   ;;  %v2142_v19 = vadd.f32 %v3517_v31, %v2141_v48  ;;  %v2402_v20 = vadd.f32 %v2401_v10, %v2275_v17  ;;  %v4089_v2 = vpop.f32.mrb[54].mxu1  ;;  %v2279_v13 = vmul.f32 %v3882_v3, %v3882_v3  ;;  %v2281_v17 = vmul.f32 %v3878_v63, %v3878_v63 }
 0x170   : > { %v3294_v31 = vpack.c.bf16 %v4089_v2, %v4084_v29  ;;  %v4093_v55 = vpop.f32.mrb[55].mxu1 }
 0x171   : > { %v2143_v0 = vadd.f32 %v3518_v60, %v2142_v19  ;;  %v2403_v46 = vadd.f32 %v2402_v20, %v2276_v49  ;;  %v3289_v48 = vpack.c.bf16 %v4093_v55, %v4086_v43  ;;  %v4110_v19 = vpop.f32.mrb[56].mxu1 }
 0x172   : > { %3374 = vst [vmem:[%s3866_s6 + $0x1d8] sm:$0xff] %v3294_v31   ;;  %v4112_v20 = vpop.f32.mrb[57].mxu1 }
 0x173   : > { %v2404_v24 = vadd.f32 %v2403_v46, %v2277_v22  ;;  %v2144_v25 = vadd.f32 %v2143_v0, %v3876_v58  ;;  %v2280_v58 = vmul.f32 %v3874_v56, %v3874_v56  ;;  %3373 = vst [vmem:[%s3866_s6 + $0x1d0] sm:$0xff] %v3289_v48  }
 0x175   : > { %v2405_v60 = vadd.f32 %v2404_v24, %v2278_v30  ;;  %v2145_v10 = vadd.f32 %v2144_v25, %v3882_v3  ;;  %v2282_v3 = vmul.f32 %v3892_v18, %v3892_v18  ;;  %v4115_v30 = vpop.f32.mrb[58].mxu1 }
 0x176   : > { %v3304_v24 = vpack.c.bf16 %v4115_v30, %v4110_v19  ;;  %v4119_v25 = vpop.f32.mrb[59].mxu1 }
 0x177   : > { %v2146_v0 = vadd.f32 %v3874_v56, %v2145_v10  ;;  %v2406_v46 = vadd.f32 %v2405_v60, %v2279_v13  ;;  %v2283_v60 = vmul.f32 %v3898_v27, %v3898_v27  ;;  %v3299_v10 = vpack.c.bf16 %v4119_v25, %v4112_v20 }
 0x178   : > { %3376 = vst [vmem:[%s3866_s6 + $0x1e8] sm:$0xff] %v3304_v24  }
 0x179   : > { %v2407_v57 = vadd.f32 %v2406_v46, %v2280_v58  ;;  %v2147_v49 = vadd.f32 %v3878_v63, %v2146_v0  ;;  %3375 = vst [vmem:[%s3866_s6 + $0x1e0] sm:$0xff] %v3299_v10   ;;  %v2285_v58 = vmul.f32 %v3894_v23, %v3894_v23 }
 0x17b   : > { %v2148_v22 = vadd.f32 %v2147_v49, %v3892_v18  ;;  %v2408_v56 = vadd.f32 %v2407_v57, %v2281_v17  ;;  %v2284_v18 = vmul.f32 %v3890_v16, %v3890_v16  ;;  %v4136_v17 = vpop.f32.mrb[60].mxu1 }
 0x17c   : > { %v4138_v57 = vpop.f32.mrb[61].mxu1 }
 0x17d   : > { %v2409_v31 = vadd.f32 %v2408_v56, %v2282_v3  ;;  %v2149_v63 = vadd.f32 %v2148_v22, %v3898_v27  ;;  %v2286_v27 = vmul.f32 %v3908_v42, %v3908_v42  ;;  %v4141_v3 = vpop.f32.mrb[62].mxu1 }
 0x17e   : > { %v3314_v22 = vpack.c.bf16 %v4141_v3, %v4136_v17  ;;  %v4145_v56 = vpop.f32.mrb[63].mxu1 }
 0x17f   : > { %v2150_v13 = vadd.f32 %v3890_v16, %v2149_v63  ;;  %v2410_v48 = vadd.f32 %v2409_v31, %v2283_v60  ;;  %v2287_v31 = vmul.f32 %v3914_v51, %v3914_v51  ;;  %v3309_v63 = vpack.c.bf16 %v4145_v56, %v4138_v57 }
 0x180   : > { %3378 = vst [vmem:[%s3866_s6 + $0x1f8] sm:$0xff] %v3314_v22  }
 0x181   : > { %v2411_v0 = vadd.f32 %v2410_v48, %v2284_v18  ;;  %v2151_v46 = vadd.f32 %v3894_v23, %v2150_v13  ;;  %3377 = vst [vmem:[%s3866_s6 + $0x1f0] sm:$0xff] %v3309_v63   ;;  %v2289_v18 = vmul.f32 %v3910_v47, %v3910_v47 }
 0x183   : > { %v2152_v49 = vadd.f32 %v2151_v46, %v3908_v42  ;;  %v2412_v16 = vadd.f32 %v2411_v0, %v2285_v58  ;;  %v2288_v42 = vmul.f32 %v3906_v40, %v3906_v40 }
 0x185   : > { %v2413_v24 = vadd.f32 %v2412_v16, %v2286_v27  ;;  %v2153_v23 = vadd.f32 %v2152_v49, %v3914_v51  ;;  %v2290_v51 = vmul.f32 %v3924_v6, %v3924_v6  ;;  %v2292_v49 = vmul.f32 %v3922_v4, %v3922_v4 }
 0x187   : > { %v2154_v60 = vadd.f32 %v3906_v40, %v2153_v23  ;;  %v2414_v10 = vadd.f32 %v2413_v24, %v2287_v31  ;;  %v2291_v40 = vmul.f32 %v3930_v15, %v3930_v15 }
 0x189   : > { %v2415_v13 = vadd.f32 %v2414_v10, %v2288_v42  ;;  %v2155_v48 = vadd.f32 %v3910_v47, %v2154_v60  ;;  %v2293_v47 = vmul.f32 %v3926_v11, %v3926_v11  ;;  %v2295_v60 = vmul.f32 %v3946_v45, %v3946_v45 }
 0x18b   : > { %v2156_v58 = vadd.f32 %v2155_v48, %v3924_v6  ;;  %v2416_v0 = vadd.f32 %v2415_v13, %v2289_v18  ;;  %v2294_v6 = vmul.f32 %v3940_v34, %v3940_v34 }
 0x18d   : > { %v2417_v46 = vadd.f32 %v2416_v0, %v2290_v51  ;;  %v2157_v27 = vadd.f32 %v2156_v58, %v3930_v15 }
 0x18f   : > { %v2158_v16 = vadd.f32 %v3922_v4, %v2157_v27  ;;  %v2418_v22 = vadd.f32 %v2417_v46, %v2291_v40  ;;  %v2296_v4 = vmul.f32 %v3938_v32, %v3938_v32  ;;  %v2299_v46 = vmul.f32 %v3962_v14, %v3962_v14 }
 0x191   : > { %v2419_v24 = vadd.f32 %v2418_v22, %v2292_v49  ;;  %v2159_v23 = vadd.f32 %v3926_v11, %v2158_v16  ;;  %v2297_v11 = vmul.f32 %v3942_v39, %v3942_v39 }
 0x193   : > { %v2160_v31 = vadd.f32 %v2159_v23, %v3940_v34  ;;  %v2420_v63 = vadd.f32 %v2419_v24, %v2293_v47  ;;  %v2298_v34 = vmul.f32 %v3956_v1, %v3956_v1  ;;  %v2303_v23 = vmul.f32 %v3978_v50, %v3978_v50 }
 0x195   : > { %v2421_v42 = vadd.f32 %v2420_v63, %v2294_v6  ;;  %v2161_v15 = vadd.f32 %v2160_v31, %v3946_v45 }
 0x197   : > { %v2162_v10 = vadd.f32 %v3938_v32, %v2161_v15  ;;  %v2422_v18 = vadd.f32 %v2421_v42, %v2295_v60  ;;  %v2300_v32 = vmul.f32 %v3954_v62, %v3954_v62 }
 0x199   : > { %v2423_v13 = vadd.f32 %v2422_v18, %v2296_v4  ;;  %v2163_v48 = vadd.f32 %v3942_v39, %v2162_v10  ;;  %v2301_v39 = vmul.f32 %v3958_v9, %v3958_v9  ;;  %v2307_v10 = vmul.f32 %v3994_v26, %v3994_v26 }
 0x19b   : > { %v2164_v51 = vadd.f32 %v2163_v48, %v3956_v1  ;;  %v2424_v58 = vadd.f32 %v2423_v13, %v2297_v11  ;;  %v2302_v1 = vmul.f32 %v3972_v36, %v3972_v36 }
 0x19d   : > { %v2425_v0 = vadd.f32 %v2424_v58, %v2298_v34  ;;  %v2165_v45 = vadd.f32 %v2164_v51, %v3962_v14 }
 0x19f   : > { %v2166_v27 = vadd.f32 %v3954_v62, %v2165_v45  ;;  %v2426_v40 = vadd.f32 %v2425_v0, %v2299_v46  ;;  %v2304_v62 = vmul.f32 %v3970_v33, %v3970_v33  ;;  %v2311_v0 = vmul.f32 %v4010_v7, %v4010_v7 }
 0x1a1   : > { %v2427_v49 = vadd.f32 %v2426_v40, %v2300_v32  ;;  %v2167_v16 = vadd.f32 %v3958_v9, %v2166_v27  ;;  %v2305_v9 = vmul.f32 %v3974_v44, %v3974_v44 }
 0x1a3   : > { %v2168_v22 = vadd.f32 %v2167_v16, %v3972_v36  ;;  %v2428_v47 = vadd.f32 %v2427_v49, %v2301_v39  ;;  %v2306_v36 = vmul.f32 %v3988_v12, %v3988_v12  ;;  %v2315_v16 = vmul.f32 %v4026_v59, %v4026_v59 }
 0x1a5   : > { %v2429_v24 = vadd.f32 %v2428_v47, %v2302_v1  ;;  %v2169_v14 = vadd.f32 %v2168_v22, %v3978_v50 }
 0x1a7   : > { %v2170_v6 = vadd.f32 %v3970_v33, %v2169_v14  ;;  %v2430_v31 = vadd.f32 %v2429_v24, %v2303_v23  ;;  %v2308_v33 = vmul.f32 %v3986_v8, %v3986_v8 }
 0x1a9   : > { %v2431_v63 = vadd.f32 %v2430_v31, %v2304_v62  ;;  %v2171_v42 = vadd.f32 %v3974_v44, %v2170_v6  ;;  %v2309_v44 = vmul.f32 %v3990_v21, %v3990_v21 }
 0x1ab   : > { %v2172_v15 = vadd.f32 %v2171_v42, %v3988_v12  ;;  %v2432_v60 = vadd.f32 %v2431_v63, %v2305_v9  ;;  %v2310_v12 = vmul.f32 %v4004_v54, %v4004_v54 }
 0x1ad   : > { %v2433_v4 = vadd.f32 %v2432_v60, %v2306_v36  ;;  %v2173_v50 = vadd.f32 %v2172_v15, %v3994_v26  ;;  %v4359_v15 = vld [vmem:[#allocation4_spill] sm:$0xff] }
 0x1af   : > { %v2174_v18 = vadd.f32 %v3986_v8, %v2173_v50  ;;  %v2434_v11 = vadd.f32 %v2433_v4, %v2307_v10  ;;  %v2312_v8 = vmul.f32 %v4002_v52, %v4002_v52  ;;  %v2322_v50 = vmul.f32 %v4052_v37, %v4052_v37 }
 0x1b1   : > { %v2435_v13 = vadd.f32 %v2434_v11, %v2308_v33  ;;  %v2175_v48 = vadd.f32 %v3990_v21, %v2174_v18  ;;  %v2313_v21 = vmul.f32 %v4006_v61, %v4006_v61  ;;  %v4360_v11 = vld [vmem:[#allocation8_spill] sm:$0xff] }
 0x1b3   : > { %v2176_v34 = vadd.f32 %v2175_v48, %v4004_v54  ;;  %v2436_v51 = vadd.f32 %v2435_v13, %v2309_v44  ;;  %v2314_v54 = vmul.f32 %v4020_v38, %v4020_v38  ;;  %v2323_v13 = vmul.f32 %v4360_v11, %v4360_v11  ;;  %v4361_v48 = vld [vmem:[#allocation6_spill] sm:$0xff] }
 0x1b5   : > { %v2437_v58 = vadd.f32 %v2436_v51, %v2310_v12  ;;  %v2177_v26 = vadd.f32 %v2176_v34, %v4010_v7  ;;  %v2324_v12 = vmul.f32 %v4361_v48, %v4361_v48 }
 0x1b7   : > { %v2178_v45 = vadd.f32 %v4002_v52, %v2177_v26  ;;  %v2438_v46 = vadd.f32 %v2437_v58, %v2311_v0  ;;  %v2316_v52 = vmul.f32 %v4018_v35, %v4018_v35  ;;  %v4362_v58 = vld [vmem:[#allocation7_spill] sm:$0xff] }
 0x1b8   : > { %v2325_v26 = vmul.f32 %v4362_v58, %v4362_v58 }
 0x1b9   : > { %v2439_v32 = vadd.f32 %v2438_v46, %v2312_v8  ;;  %v2179_v27 = vadd.f32 %v4006_v61, %v2178_v45  ;;  %v2317_v61 = vmul.f32 %v4022_v53, %v4022_v53 }
 0x1bb   : > { %v2180_v40 = vadd.f32 %v2179_v27, %v4020_v38  ;;  %v2440_v39 = vadd.f32 %v2439_v32, %v2313_v21  ;;  %v4356_v38 = vld [vmem:[#allocation3_spill] sm:$0xff]  ;;  %v2327_v27 = vmul.f32 %v4074_v5, %v4074_v5 }
 0x1bc   : > { %v2318_v14 = vmul.f32 %v4356_v38, %v4356_v38 }
 0x1bd   : > { %v2441_v49 = vadd.f32 %v2440_v39, %v2314_v54  ;;  %v2181_v7 = vadd.f32 %v2180_v40, %v4026_v59  ;;  %v4357_v59 = vld [vmem:[#allocation5_spill] sm:$0xff]  ;;  %v2328_v54 = vmul.f32 %v4066_v28, %v4066_v28 }
 0x1be   : > { %v2319_v9 = vmul.f32 %v4357_v59, %v4357_v59 }
 0x1bf   : > { %v2182_v1 = vadd.f32 %v4018_v35, %v2181_v7  ;;  %v2442_v22 = vadd.f32 %v2441_v49, %v2315_v16  ;;  %v4358_v35 = vld [vmem:[#allocation2_spill] sm:$0xff]  ;;  %v4363_v49 = vld [vmem:[#allocation9_spill] sm:$0xff] }
 0x1c0   : > { %v2320_v63 = vmul.f32 %v4358_v35, %v4358_v35  ;;  %v2329_v7 = vmul.f32 %v4363_v49, %v4363_v49 }
 0x1c1   : > { %v2443_v47 = vadd.f32 %v2442_v22, %v2316_v52  ;;  %v2183_v24 = vadd.f32 %v4022_v53, %v2182_v1  ;;  %v2321_v53 = vmul.f32 %v4359_v15, %v4359_v15 }
 0x1c3   : > { %v2184_v23 = vadd.f32 %v2183_v24, %v4356_v38  ;;  %v2444_v62 = vadd.f32 %v2443_v47, %v2317_v61  ;;  %v2331_v47 = vmul.f32 %v4093_v55, %v4093_v55 }
 0x1c5   : > { %v2445_v6 = vadd.f32 %v2444_v62, %v2318_v14  ;;  %v2185_v31 = vadd.f32 %v2184_v23, %v4357_v59  ;;  %v2333_v14 = vmul.f32 %v4089_v2, %v4089_v2 }
 0x1c7   : > { %v2186_v42 = vadd.f32 %v4358_v35, %v2185_v31  ;;  %v2446_v36 = vadd.f32 %v2445_v6, %v2319_v9  ;;  %v2335_v9 = vmul.f32 %v4119_v25, %v4119_v25 }
 0x1c9   : > { %v2447_v60 = vadd.f32 %v2446_v36, %v2320_v63  ;;  %v2187_v4 = vadd.f32 %v4359_v15, %v2186_v42  ;;  %v2338_v36 = vmul.f32 %v4138_v57, %v4138_v57 }
 0x1cb   : > { %v2188_v10 = vadd.f32 %v2187_v4, %v4052_v37  ;;  %v2448_v33 = vadd.f32 %v2447_v60, %v2321_v53  ;;  %v2326_v37 = vmul.f32 %v4068_v41, %v4068_v41  ;;  %v2340_v4 = vmul.f32 %v4136_v17, %v4136_v17 }
 0x1cd   : > { %v2449_v18 = vadd.f32 %v2448_v33, %v2322_v50  ;;  %v2189_v44 = vadd.f32 %v2188_v10, %v4360_v11 }
 0x1cf   : > { %v2190_v34 = vadd.f32 %v4361_v48, %v2189_v44  ;;  %v2450_v51 = vadd.f32 %v2449_v18, %v2323_v13 }
 0x1d1   : > { %v2451_v0 = vadd.f32 %v2450_v51, %v2324_v12  ;;  %v2191_v8 = vadd.f32 %v4362_v58, %v2190_v34 }
 0x1d3   : > { %v2192_v45 = vadd.f32 %v2191_v8, %v4068_v41  ;;  %v2452_v46 = vadd.f32 %v2451_v0, %v2325_v26  ;;  %v2330_v41 = vmul.f32 %v4086_v43, %v4086_v43 }
 0x1d5   : > { %v2453_v21 = vadd.f32 %v2452_v46, %v2326_v37  ;;  %v2193_v32 = vadd.f32 %v2192_v45, %v4074_v5 }
 0x1d7   : > { %v2194_v40 = vadd.f32 %v4066_v28, %v2193_v32  ;;  %v2454_v39 = vadd.f32 %v2453_v21, %v2327_v27  ;;  %v2332_v28 = vmul.f32 %v4084_v29, %v4084_v29 }
 0x1d9   : > { %v2455_v16 = vadd.f32 %v2454_v39, %v2328_v54  ;;  %v2195_v52 = vadd.f32 %v4363_v49, %v2194_v40 }
 0x1db   : > { %v2196_v1 = vadd.f32 %v2195_v52, %v4086_v43  ;;  %v2456_v22 = vadd.f32 %v2455_v16, %v2329_v7  ;;  %v2334_v43 = vmul.f32 %v4112_v20, %v4112_v20 }
 0x1dd   : > { %v2457_v61 = vadd.f32 %v2456_v22, %v2330_v41  ;;  %v2197_v5 = vadd.f32 %v2196_v1, %v4093_v55 }
 0x1df   : > { %v2198_v24 = vadd.f32 %v4084_v29, %v2197_v5  ;;  %v2458_v38 = vadd.f32 %v2457_v61, %v2331_v47  ;;  %v2336_v29 = vmul.f32 %v4110_v19, %v4110_v19 }
 0x1e1   : > { %v2459_v23 = vadd.f32 %v2458_v38, %v2332_v28  ;;  %v2199_v62 = vadd.f32 %v4089_v2, %v2198_v24  ;;  %v2337_v2 = vmul.f32 %v4115_v30, %v4115_v30 }
 0x1e3   : > { %v2200_v6 = vadd.f32 %v2199_v62, %v4112_v20  ;;  %v2460_v59 = vadd.f32 %v2459_v23, %v2333_v14 }
 0x1e5   : > { %v2461_v31 = vadd.f32 %v2460_v59, %v2334_v43  ;;  %v2201_v55 = vadd.f32 %v2200_v6, %v4119_v25 }
 0x1e7   : > { %v2202_v35 = vadd.f32 %v4110_v19, %v2201_v55  ;;  %v2462_v63 = vadd.f32 %v2461_v31, %v2335_v9  ;;  %v2339_v19 = vmul.f32 %v4145_v56, %v4145_v56 }
 0x1e9   : > { %v2463_v42 = vadd.f32 %v2462_v63, %v2336_v29  ;;  %v2203_v20 = vadd.f32 %v4115_v30, %v2202_v35  ;;  %v2341_v30 = vmul.f32 %v4141_v3, %v4141_v3 }
 0x1eb   : > { %v2204_v15 = vadd.f32 %v2203_v20, %v4138_v57  ;;  %v2464_v25 = vadd.f32 %v2463_v42, %v2337_v2 }
 0x1ed   : > { %v2465_v53 = vadd.f32 %v2464_v25, %v2338_v36  ;;  %v2205_v60 = vadd.f32 %v2204_v15, %v4145_v56 }
 0x1ef   : > { %v2206_v50 = vadd.f32 %v4136_v17, %v2205_v60  ;;  %v2466_v10 = vadd.f32 %v2465_v53, %v2339_v19 }
 0x1f1   : > { %v2207_v33 = vadd.f32 %v4141_v3, %v2206_v50  ;;  %v2467_v57 = vadd.f32 %v2466_v10, %v2340_v4 }
 0x1f3   : > { %v2208_v18 = vrot.slane %v2207_v33, 4  ;;  %v2468_v11 = vadd.f32 %v2467_v57, %v2341_v30 }
 0x1f5   : > { %v2209_v44 = vadd.f32 %v2208_v18, %v2207_v33  ;;  %v2469_v13 = vrot.slane %v2468_v11, 4 }
 0x1f7   : > { %v2210_v48 = vrot.slane %v2209_v44, 2  ;;  %v2470_v56 = vadd.f32 %v2469_v13, %v2468_v11 }
 0x1f9   : > { %v2211_v12 = vadd.f32 %v2210_v48, %v2209_v44  ;;  %v2471_v34 = vrot.slane %v2470_v56, 2 }
 0x1fb   : > { %v2212_v51 = vrot.slane %v2211_v12, 1  ;;  %v2472_v17 = vadd.f32 %v2471_v34, %v2470_v56 }
 0x1fd   : > { %v2213_v58 = vadd.f32 %v2212_v51, %v2211_v12  ;;  %v2473_v26 = vrot.slane %v2472_v17, 1 }
 0x1ff   : > { %v2474_v3 = vadd.f32 %v2473_v26, %v2472_v17  ;;  %2475 = vst [vmem:[%s217_s10] sm:$0xff] %v2213_v58 }
 0x201   : > { %2476 = vst [vmem:[%s221_s13] sm:$0xff] %v2474_v3 }
 0x202 PF: > { %s15_s15 = sadd.s32 1, %s3673_s15  }
 0x203   : > { %p12_p5 = scmp.ge.s32.totalorder %s15_s15, 4  }
 0x205   :  { %14 = sbr.rel (!%p12_p5) target bundleno = 1 (0x1), region = 82 }

// kernel: encoder_forward.8
= control target key start
LH: loop header
LB: loop body
LE: loop exit
PB: predicated region body
PF: predicated region fallthrough
CT: control target
= control target key end

     0   :  { %s1502_s0 = inlined_call_operand.vmem [shape: bf16[512,128], index: 0, kind: input, shape index: {}]   ;;  %s1503_s1 = inlined_call_operand.vmem [shape: f32[1,128], index: 1, kind: input, shape index: {}]   ;;  %s1504_s2 = inlined_call_operand.vmem [shape: f32[1,128], index: 2, kind: input, shape index: {}]   ;;  %s1505_s3 = inlined_call_operand.vmem [shape: bf16[512,128], index: 3, kind: output, shape index: {}]  }
   0x1   :  { %v803_v0 = vld [vmem:[%s1502_s0] sm:$0xff]   ;;  %v1090_v4 = vld [vmem:[%s1502_s0 + $0x8] sm:$0xff]   ;;  %v1091_v5 = vld [vmem:[%s1502_s0 + $0x10] sm:$0xff]  }
   0x2   :  { %v1178_v1 = vld [vmem:[%s1503_s1] ss:$0 sm:$0xff]  ;;  %v804_v2 = vunpack.c.l.bf16 %v803_v0  ;;  %v805_v3 = vunpack.c.h.bf16 %v803_v0  ;;  %v1092_v6 = vld [vmem:[%s1502_s0 + $0x18] sm:$0xff]   ;;  %v808_v8 = vunpack.c.l.bf16 %v1090_v4  ;;  %v809_v9 = vunpack.c.h.bf16 %v1090_v4  ;;  %v1094_v33 = vld [vmem:[%s1502_s0 + $0x28] sm:$0xff]  }
   0x3   :  { %v1192_v7 = vld [vmem:[%s1504_s2] ss:$0 sm:$0xff]  ;;  %v812_v10 = vunpack.c.l.bf16 %v1091_v5  ;;  %v813_v11 = vunpack.c.h.bf16 %v1091_v5  ;;  %v816_v14 = vunpack.c.l.bf16 %v1092_v6  ;;  %v817_v15 = vunpack.c.h.bf16 %v1092_v6  ;;  %v1095_v38 = vld [vmem:[%s1502_s0 + $0x30] sm:$0xff]   ;;  %v1096_v43 = vld [vmem:[%s1502_s0 + $0x38] sm:$0xff]  }
   0x4   :  { %v149_v12 = vmul.f32 %v804_v2, %v1178_v1  ;;  %v150_v13 = vmul.f32 %v805_v3, %v1178_v1  ;;  %v151_v16 = vmul.f32 %v808_v8, %v1178_v1  ;;  %v152_v17 = vmul.f32 %v809_v9, %v1178_v1  ;;  %v1093_v28 = vld [vmem:[%s1502_s0 + $0x20] sm:$0xff]  }
   0x5   :  { %v153_v18 = vmul.f32 %v812_v10, %v1178_v1  ;;  %v154_v19 = vmul.f32 %v813_v11, %v1178_v1  ;;  %v155_v22 = vmul.f32 %v816_v14, %v1178_v1  ;;  %v156_v23 = vmul.f32 %v817_v15, %v1178_v1  ;;  %v1097_v0 = vld [vmem:[%s1502_s0 + $0x40] sm:$0xff]   ;;  %v1098_v11 = vld [vmem:[%s1502_s0 + $0x48] sm:$0xff]  }
   0x6   :  { %v220_v20 = vadd.f32 %v1192_v7, %v149_v12  ;;  %v221_v21 = vadd.f32 %v1192_v7, %v150_v13  ;;  %v222_v24 = vadd.f32 %v1192_v7, %v151_v16  ;;  %v223_v25 = vadd.f32 %v1192_v7, %v152_v17  ;;  %v1099_v16 = vld [vmem:[%s1502_s0 + $0x50] sm:$0xff]  }
   0x7   :  { %v224_v26 = vadd.f32 %v1192_v7, %v153_v18  ;;  %v225_v27 = vadd.f32 %v1192_v7, %v154_v19  ;;  %v226_v31 = vadd.f32 %v1192_v7, %v155_v22  ;;  %v227_v32 = vadd.f32 %v1192_v7, %v156_v23 }
   0x8   :  { %v284_v29 = vmax.f32 %v220_v20, 0.0  ;;  %v285_v30 = vmax.f32 %v221_v21, 0.0  ;;  %v286_v34 = vmax.f32 %v222_v24, 0.0  ;;  %v287_v35 = vmax.f32 %v223_v25, 0.0  ;;  %v1100_v25 = vld [vmem:[%s1502_s0 + $0x58] sm:$0xff]  }
   0x9   :  { %v288_v36 = vmax.f32 %v224_v26, 0.0  ;;  %v289_v37 = vmax.f32 %v225_v27, 0.0  ;;  %v290_v40 = vmax.f32 %v226_v31, 0.0  ;;  %v291_v41 = vmax.f32 %v227_v32, 0.0 }
   0xa   :  { %v933_v39 = vpack.c.bf16 %v285_v30, %v284_v29  ;;  %v820_v42 = vunpack.c.l.bf16 %v1093_v28  ;;  %v938_v44 = vpack.c.bf16 %v287_v35, %v286_v34  ;;  %v821_v46 = vunpack.c.h.bf16 %v1093_v28 }
   0xb   :  { %v943_v45 = vpack.c.bf16 %v289_v37, %v288_v36  ;;  %v824_v47 = vunpack.c.l.bf16 %v1094_v33  ;;  %v948_v48 = vpack.c.bf16 %v291_v41, %v290_v40  ;;  %v825_v50 = vunpack.c.h.bf16 %v1094_v33 }
   0xc   :  { %934 = vst [vmem:[%s1505_s3] sm:$0xff] %v933_v39   ;;  %v157_v49 = vmul.f32 %v820_v42, %v1178_v1  ;;  %v828_v51 = vunpack.c.l.bf16 %v1095_v38  ;;  %1121 = vst [vmem:[%s1505_s3 + $0x8] sm:$0xff] %v938_v44   ;;  %v158_v52 = vmul.f32 %v821_v46, %v1178_v1  ;;  %v829_v54 = vunpack.c.h.bf16 %v1095_v38  ;;  %v1101_v38 = vld [vmem:[%s1502_s0 + $0x60] sm:$0xff]  }
   0xd   :  { %1122 = vst [vmem:[%s1505_s3 + $0x10] sm:$0xff] %v943_v45   ;;  %v159_v53 = vmul.f32 %v824_v47, %v1178_v1  ;;  %v832_v55 = vunpack.c.l.bf16 %v1096_v43  ;;  %1123 = vst [vmem:[%s1505_s3 + $0x18] sm:$0xff] %v948_v48   ;;  %v160_v57 = vmul.f32 %v825_v50, %v1178_v1  ;;  %v833_v59 = vunpack.c.h.bf16 %v1096_v43 }
   0xe   :  { %v228_v56 = vadd.f32 %v1192_v7, %v157_v49  ;;  %v161_v58 = vmul.f32 %v828_v51, %v1178_v1  ;;  %v229_v60 = vadd.f32 %v1192_v7, %v158_v52  ;;  %v162_v62 = vmul.f32 %v829_v54, %v1178_v1  ;;  %v1102_v51 = vld [vmem:[%s1502_s0 + $0x68] sm:$0xff]  }
   0xf   :  { %v230_v61 = vadd.f32 %v1192_v7, %v159_v53  ;;  %v163_v63 = vmul.f32 %v832_v55, %v1178_v1  ;;  %v231_v3 = vadd.f32 %v1192_v7, %v160_v57  ;;  %v164_v5 = vmul.f32 %v833_v59, %v1178_v1 }
  0x10   :  { %v292_v2 = vmax.f32 %v228_v56, 0.0  ;;  %v232_v4 = vadd.f32 %v1192_v7, %v161_v58  ;;  %v293_v6 = vmax.f32 %v229_v60, 0.0  ;;  %v233_v9 = vadd.f32 %v1192_v7, %v162_v62  ;;  %v1103_v60 = vld [vmem:[%s1502_s0 + $0x70] sm:$0xff]  }
  0x11   :  { %v294_v8 = vmax.f32 %v230_v61, 0.0  ;;  %v234_v10 = vadd.f32 %v1192_v7, %v163_v63  ;;  %v295_v12 = vmax.f32 %v231_v3, 0.0  ;;  %v235_v14 = vadd.f32 %v1192_v7, %v164_v5 }
  0x12   :  { %v296_v13 = vmax.f32 %v232_v4, 0.0  ;;  %v836_v15 = vunpack.c.l.bf16 %v1097_v0  ;;  %v953_v17 = vpack.c.bf16 %v293_v6, %v292_v2  ;;  %v297_v18 = vmax.f32 %v233_v9, 0.0  ;;  %v1104_v2 = vld [vmem:[%s1502_s0 + $0x78] sm:$0xff]  }
  0x13   :  { %v298_v19 = vmax.f32 %v234_v10, 0.0  ;;  %v837_v20 = vunpack.c.h.bf16 %v1097_v0  ;;  %v958_v21 = vpack.c.bf16 %v295_v12, %v294_v8  ;;  %v299_v22 = vmax.f32 %v235_v14, 0.0  ;;  %v1105_v12 = vld [vmem:[%s1502_s0 + $0x80] sm:$0xff]  }
  0x14   :  { %v165_v23 = vmul.f32 %v836_v15, %v1178_v1  ;;  %v840_v24 = vunpack.c.l.bf16 %v1098_v11  ;;  %1124 = vst [vmem:[%s1505_s3 + $0x20] sm:$0xff] %v953_v17   ;;  %v963_v26 = vpack.c.bf16 %v297_v18, %v296_v13  ;;  %v841_v28 = vunpack.c.h.bf16 %v1098_v11 }
  0x15   :  { %v166_v27 = vmul.f32 %v837_v20, %v1178_v1  ;;  %v844_v29 = vunpack.c.l.bf16 %v1099_v16  ;;  %1125 = vst [vmem:[%s1505_s3 + $0x28] sm:$0xff] %v958_v21   ;;  %v968_v30 = vpack.c.bf16 %v299_v22, %v298_v19  ;;  %v845_v33 = vunpack.c.h.bf16 %v1099_v16 }
  0x16   :  { %v236_v31 = vadd.f32 %v1192_v7, %v165_v23  ;;  %v167_v32 = vmul.f32 %v840_v24, %v1178_v1  ;;  %1126 = vst [vmem:[%s1505_s3 + $0x30] sm:$0xff] %v963_v26   ;;  %v168_v35 = vmul.f32 %v841_v28, %v1178_v1  ;;  %v848_v37 = vunpack.c.l.bf16 %v1100_v25 }
  0x17   :  { %v237_v34 = vadd.f32 %v1192_v7, %v166_v27  ;;  %v169_v36 = vmul.f32 %v844_v29, %v1178_v1  ;;  %1127 = vst [vmem:[%s1505_s3 + $0x38] sm:$0xff] %v968_v30   ;;  %v170_v41 = vmul.f32 %v845_v33, %v1178_v1  ;;  %v849_v42 = vunpack.c.h.bf16 %v1100_v25  ;;  %v1106_v29 = vld [vmem:[%s1502_s0 + $0x88] sm:$0xff]  }
  0x18   :  { %v300_v39 = vmax.f32 %v236_v31, 0.0  ;;  %v238_v40 = vadd.f32 %v1192_v7, %v167_v32  ;;  %v239_v44 = vadd.f32 %v1192_v7, %v168_v35  ;;  %v171_v46 = vmul.f32 %v848_v37, %v1178_v1 }
  0x19   :  { %v301_v43 = vmax.f32 %v237_v34, 0.0  ;;  %v240_v45 = vadd.f32 %v1192_v7, %v169_v36  ;;  %v241_v48 = vadd.f32 %v1192_v7, %v170_v41  ;;  %v172_v49 = vmul.f32 %v849_v42, %v1178_v1  ;;  %v1107_v34 = vld [vmem:[%s1502_s0 + $0x90] sm:$0xff]  }
  0x1a   :  { %v302_v47 = vmax.f32 %v238_v40, 0.0  ;;  %v852_v50 = vunpack.c.l.bf16 %v1101_v38  ;;  %v303_v53 = vmax.f32 %v239_v44, 0.0  ;;  %v242_v55 = vadd.f32 %v1192_v7, %v171_v46 }
  0x1b   :  { %v973_v52 = vpack.c.bf16 %v301_v43, %v300_v39  ;;  %v304_v54 = vmax.f32 %v240_v45, 0.0  ;;  %v305_v56 = vmax.f32 %v241_v48, 0.0  ;;  %v243_v57 = vadd.f32 %v1192_v7, %v172_v49  ;;  %v1108_v43 = vld [vmem:[%s1502_s0 + $0x98] sm:$0xff]  }
  0x1c   :  { %v853_v58 = vunpack.c.h.bf16 %v1101_v38  ;;  %v173_v59 = vmul.f32 %v852_v50, %v1178_v1  ;;  %v978_v61 = vpack.c.bf16 %v303_v53, %v302_v47  ;;  %v306_v62 = vmax.f32 %v242_v55, 0.0 }
  0x1d   :  { %1128 = vst [vmem:[%s1505_s3 + $0x40] sm:$0xff] %v973_v52   ;;  %v856_v63 = vunpack.c.l.bf16 %v1102_v51  ;;  %v857_v0 = vunpack.c.h.bf16 %v1102_v51  ;;  %v983_v3 = vpack.c.bf16 %v305_v56, %v304_v54  ;;  %v307_v4 = vmax.f32 %v243_v57, 0.0  ;;  %v1109_v56 = vld [vmem:[%s1502_s0 + $0xa0] sm:$0xff]  }
  0x1e   :  { %v174_v5 = vmul.f32 %v853_v58, %v1178_v1  ;;  %v244_v6 = vadd.f32 %v1192_v7, %v173_v59  ;;  %1129 = vst [vmem:[%s1505_s3 + $0x48] sm:$0xff] %v978_v61   ;;  %v860_v10 = vunpack.c.l.bf16 %v1103_v60  ;;  %v861_v11 = vunpack.c.h.bf16 %v1103_v60 }
  0x1f   :  { %v175_v8 = vmul.f32 %v856_v63, %v1178_v1  ;;  %v176_v9 = vmul.f32 %v857_v0, %v1178_v1  ;;  %1130 = vst [vmem:[%s1505_s3 + $0x50] sm:$0xff] %v983_v3   ;;  %v988_v13 = vpack.c.bf16 %v307_v4, %v306_v62  ;;  %v864_v16 = vunpack.c.l.bf16 %v1104_v2 }
  0x20   :  { %v245_v14 = vadd.f32 %v1192_v7, %v174_v5  ;;  %v308_v15 = vmax.f32 %v244_v6, 0.0  ;;  %v177_v19 = vmul.f32 %v860_v10, %v1178_v1  ;;  %v178_v20 = vmul.f32 %v861_v11, %v1178_v1 }
  0x21   :  { %v246_v17 = vadd.f32 %v1192_v7, %v175_v8  ;;  %v247_v18 = vadd.f32 %v1192_v7, %v176_v9  ;;  %1131 = vst [vmem:[%s1505_s3 + $0x58] sm:$0xff] %v988_v13   ;;  %v865_v22 = vunpack.c.h.bf16 %v1104_v2  ;;  %v179_v23 = vmul.f32 %v864_v16, %v1178_v1  ;;  %v1110_v2 = vld [vmem:[%s1502_s0 + $0xa8] sm:$0xff]   ;;  %v1111_v16 = vld [vmem:[%s1502_s0 + $0xb0] sm:$0xff]  }
  0x22   :  { %v309_v21 = vmax.f32 %v245_v14, 0.0  ;;  %v868_v24 = vunpack.c.l.bf16 %v1105_v12  ;;  %v248_v27 = vadd.f32 %v1192_v7, %v177_v19  ;;  %v249_v28 = vadd.f32 %v1192_v7, %v178_v20 }
  0x23   :  { %v310_v25 = vmax.f32 %v246_v17, 0.0  ;;  %v311_v26 = vmax.f32 %v247_v18, 0.0  ;;  %v180_v31 = vmul.f32 %v865_v22, %v1178_v1  ;;  %v250_v32 = vadd.f32 %v1192_v7, %v179_v23 }
  0x24   :  { %v993_v30 = vpack.c.bf16 %v309_v21, %v308_v15  ;;  %v869_v33 = vunpack.c.h.bf16 %v1105_v12  ;;  %v312_v36 = vmax.f32 %v248_v27, 0.0  ;;  %v313_v37 = vmax.f32 %v249_v28, 0.0  ;;  %v1112_v21 = vld [vmem:[%s1502_s0 + $0xb8] sm:$0xff]  }
  0x25   :  { %v998_v35 = vpack.c.bf16 %v311_v26, %v310_v25  ;;  %v181_v38 = vmul.f32 %v868_v24, %v1178_v1  ;;  %v251_v39 = vadd.f32 %v1192_v7, %v180_v31  ;;  %v314_v40 = vmax.f32 %v250_v32, 0.0 }
  0x26   :  { %1132 = vst [vmem:[%s1505_s3 + $0x60] sm:$0xff] %v993_v30   ;;  %v182_v41 = vmul.f32 %v869_v33, %v1178_v1  ;;  %v872_v42 = vunpack.c.l.bf16 %v1106_v29  ;;  %v1003_v44 = vpack.c.bf16 %v313_v37, %v312_v36  ;;  %v873_v46 = vunpack.c.h.bf16 %v1106_v29 }
  0x27   :  { %1133 = vst [vmem:[%s1505_s3 + $0x68] sm:$0xff] %v998_v35   ;;  %v252_v45 = vadd.f32 %v1192_v7, %v181_v38  ;;  %v876_v47 = vunpack.c.l.bf16 %v1107_v34  ;;  %v315_v48 = vmax.f32 %v251_v39, 0.0  ;;  %v877_v51 = vunpack.c.h.bf16 %v1107_v34  ;;  %v1113_v34 = vld [vmem:[%s1502_s0 + $0xc0] sm:$0xff]  }
  0x28   :  { %v253_v49 = vadd.f32 %v1192_v7, %v182_v41  ;;  %v183_v50 = vmul.f32 %v872_v42, %v1178_v1  ;;  %1134 = vst [vmem:[%s1505_s3 + $0x70] sm:$0xff] %v1003_v44   ;;  %v184_v53 = vmul.f32 %v873_v46, %v1178_v1  ;;  %v880_v55 = vunpack.c.l.bf16 %v1108_v43 }
  0x29   :  { %v316_v52 = vmax.f32 %v252_v45, 0.0  ;;  %v185_v54 = vmul.f32 %v876_v47, %v1178_v1  ;;  %v1008_v57 = vpack.c.bf16 %v315_v48, %v314_v40  ;;  %v186_v60 = vmul.f32 %v877_v51, %v1178_v1  ;;  %v1114_v47 = vld [vmem:[%s1502_s0 + $0xc8] sm:$0xff]  }
  0x2a   :  { %v317_v58 = vmax.f32 %v253_v49, 0.0  ;;  %v254_v59 = vadd.f32 %v1192_v7, %v183_v50  ;;  %v255_v61 = vadd.f32 %v1192_v7, %v184_v53  ;;  %v881_v63 = vunpack.c.h.bf16 %v1108_v43 }
  0x2b   :  { %v256_v62 = vadd.f32 %v1192_v7, %v185_v54  ;;  %v187_v0 = vmul.f32 %v880_v55, %v1178_v1  ;;  %1135 = vst [vmem:[%s1505_s3 + $0x78] sm:$0xff] %v1008_v57   ;;  %v257_v5 = vadd.f32 %v1192_v7, %v186_v60  ;;  %v884_v6 = vunpack.c.l.bf16 %v1109_v56 }
  0x2c   :  { %v1013_v3 = vpack.c.bf16 %v317_v58, %v316_v52  ;;  %v318_v4 = vmax.f32 %v254_v59, 0.0  ;;  %v319_v8 = vmax.f32 %v255_v61, 0.0  ;;  %v188_v10 = vmul.f32 %v881_v63, %v1178_v1  ;;  %v1115_v52 = vld [vmem:[%s1502_s0 + $0xd0] sm:$0xff]   ;;  %v1116_v61 = vld [vmem:[%s1502_s0 + $0xd8] sm:$0xff]  }
  0x2d   :  { %v320_v9 = vmax.f32 %v256_v62, 0.0  ;;  %v258_v11 = vadd.f32 %v1192_v7, %v187_v0  ;;  %v321_v12 = vmax.f32 %v257_v5, 0.0  ;;  %v885_v13 = vunpack.c.h.bf16 %v1109_v56 }
  0x2e   :  { %1136 = vst [vmem:[%s1505_s3 + $0x80] sm:$0xff] %v1013_v3   ;;  %v189_v14 = vmul.f32 %v884_v6, %v1178_v1  ;;  %v888_v15 = vunpack.c.l.bf16 %v1110_v2  ;;  %v1018_v17 = vpack.c.bf16 %v319_v8, %v318_v4  ;;  %v259_v18 = vadd.f32 %v1192_v7, %v188_v10 }
  0x2f   :  { %v322_v19 = vmax.f32 %v258_v11, 0.0  ;;  %v889_v20 = vunpack.c.h.bf16 %v1110_v2  ;;  %v1023_v22 = vpack.c.bf16 %v321_v12, %v320_v9  ;;  %v190_v23 = vmul.f32 %v885_v13, %v1178_v1  ;;  %v1117_v12 = vld [vmem:[%s1502_s0 + $0xe0] sm:$0xff]  }
  0x30   :  { %v260_v24 = vadd.f32 %v1192_v7, %v189_v14  ;;  %v191_v25 = vmul.f32 %v888_v15, %v1178_v1  ;;  %1137 = vst [vmem:[%s1505_s3 + $0x88] sm:$0xff] %v1018_v17   ;;  %v323_v26 = vmax.f32 %v259_v18, 0.0  ;;  %v892_v28 = vunpack.c.l.bf16 %v1111_v16 }
  0x31   :  { %v192_v27 = vmul.f32 %v889_v20, %v1178_v1  ;;  %v893_v29 = vunpack.c.h.bf16 %v1111_v16  ;;  %1138 = vst [vmem:[%s1505_s3 + $0x90] sm:$0xff] %v1023_v22   ;;  %v261_v30 = vadd.f32 %v1192_v7, %v190_v23  ;;  %v896_v33 = vunpack.c.l.bf16 %v1112_v21 }
  0x32   :  { %v324_v31 = vmax.f32 %v260_v24, 0.0  ;;  %v262_v32 = vadd.f32 %v1192_v7, %v191_v25  ;;  %v1028_v35 = vpack.c.bf16 %v323_v26, %v322_v19  ;;  %v193_v37 = vmul.f32 %v892_v28, %v1178_v1 }
  0x33   :  { %v263_v36 = vadd.f32 %v1192_v7, %v192_v27  ;;  %v194_v38 = vmul.f32 %v893_v29, %v1178_v1  ;;  %v325_v39 = vmax.f32 %v261_v30, 0.0  ;;  %v897_v41 = vunpack.c.h.bf16 %v1112_v21  ;;  %v1118_v21 = vld [vmem:[%s1502_s0 + $0xe8] sm:$0xff]  }
  0x34   :  { %v326_v40 = vmax.f32 %v262_v32, 0.0  ;;  %v195_v42 = vmul.f32 %v896_v33, %v1178_v1  ;;  %1139 = vst [vmem:[%s1505_s3 + $0x98] sm:$0xff] %v1028_v35   ;;  %v264_v44 = vadd.f32 %v1192_v7, %v193_v37  ;;  %v900_v46 = vunpack.c.l.bf16 %v1113_v34 }
  0x35   :  { %v327_v43 = vmax.f32 %v263_v36, 0.0  ;;  %v265_v45 = vadd.f32 %v1192_v7, %v194_v38  ;;  %v1033_v48 = vpack.c.bf16 %v325_v39, %v324_v31  ;;  %v196_v49 = vmul.f32 %v897_v41, %v1178_v1  ;;  %v1120_v39 = vld [vmem:[%s1502_s0 + $0xf8] sm:$0xff]  }
  0x36   :  { %v266_v50 = vadd.f32 %v1192_v7, %v195_v42  ;;  %v901_v51 = vunpack.c.h.bf16 %v1113_v34  ;;  %v328_v54 = vmax.f32 %v264_v44, 0.0  ;;  %v197_v56 = vmul.f32 %v900_v46, %v1178_v1  ;;  %v1119_v34 = vld [vmem:[%s1502_s0 + $0xf0] sm:$0xff]  }
  0x37   :  { %v1038_v53 = vpack.c.bf16 %v327_v43, %v326_v40  ;;  %v329_v55 = vmax.f32 %v265_v45, 0.0  ;;  %1140 = vst [vmem:[%s1505_s3 + $0xa0] sm:$0xff] %v1033_v48   ;;  %v267_v57 = vadd.f32 %v1192_v7, %v196_v49  ;;  %v904_v60 = vunpack.c.l.bf16 %v1114_v47 }
  0x38   :  { %v330_v58 = vmax.f32 %v266_v50, 0.0  ;;  %v198_v59 = vmul.f32 %v901_v51, %v1178_v1  ;;  %v268_v63 = vadd.f32 %v1192_v7, %v197_v56  ;;  %v905_v0 = vunpack.c.h.bf16 %v1114_v47 }
  0x39   :  { %1141 = vst [vmem:[%s1505_s3 + $0xa8] sm:$0xff] %v1038_v53   ;;  %v1043_v62 = vpack.c.bf16 %v329_v55, %v328_v54  ;;  %v908_v2 = vunpack.c.l.bf16 %v1115_v52  ;;  %v331_v3 = vmax.f32 %v267_v57, 0.0  ;;  %v199_v5 = vmul.f32 %v904_v60, %v1178_v1 }
  0x3a   :  { %v269_v4 = vadd.f32 %v1192_v7, %v198_v59  ;;  %v909_v6 = vunpack.c.h.bf16 %v1115_v52  ;;  %v332_v8 = vmax.f32 %v268_v63, 0.0  ;;  %v200_v9 = vmul.f32 %v905_v0, %v1178_v1 }
  0x3b   :  { %1142 = vst [vmem:[%s1505_s3 + $0xb0] sm:$0xff] %v1043_v62   ;;  %v201_v10 = vmul.f32 %v908_v2, %v1178_v1  ;;  %v912_v11 = vunpack.c.l.bf16 %v1116_v61  ;;  %v1048_v13 = vpack.c.bf16 %v331_v3, %v330_v58  ;;  %v270_v15 = vadd.f32 %v1192_v7, %v199_v5 }
  0x3c   :  { %v333_v14 = vmax.f32 %v269_v4, 0.0  ;;  %v202_v16 = vmul.f32 %v909_v6, %v1178_v1  ;;  %v271_v17 = vadd.f32 %v1192_v7, %v200_v9  ;;  %v913_v19 = vunpack.c.h.bf16 %v1116_v61 }
  0x3d   :  { %v272_v18 = vadd.f32 %v1192_v7, %v201_v10  ;;  %v203_v20 = vmul.f32 %v912_v11, %v1178_v1  ;;  %1143 = vst [vmem:[%s1505_s3 + $0xb8] sm:$0xff] %v1048_v13   ;;  %v334_v23 = vmax.f32 %v270_v15, 0.0  ;;  %v916_v25 = vunpack.c.l.bf16 %v1117_v12 }
  0x3e   :  { %v1053_v22 = vpack.c.bf16 %v333_v14, %v332_v8  ;;  %v273_v24 = vadd.f32 %v1192_v7, %v202_v16  ;;  %v335_v26 = vmax.f32 %v271_v17, 0.0  ;;  %v204_v28 = vmul.f32 %v913_v19, %v1178_v1 }
  0x3f   :  { %v336_v27 = vmax.f32 %v272_v18, 0.0  ;;  %v274_v29 = vadd.f32 %v1192_v7, %v203_v20  ;;  %v917_v31 = vunpack.c.h.bf16 %v1117_v12  ;;  %v205_v32 = vmul.f32 %v916_v25, %v1178_v1 }
  0x40   :  { %1144 = vst [vmem:[%s1505_s3 + $0xc0] sm:$0xff] %v1053_v22   ;;  %v337_v30 = vmax.f32 %v273_v24, 0.0  ;;  %v920_v33 = vunpack.c.l.bf16 %v1118_v21  ;;  %v1058_v35 = vpack.c.bf16 %v335_v26, %v334_v23  ;;  %v275_v36 = vadd.f32 %v1192_v7, %v204_v28 }
  0x41   :  { %v338_v37 = vmax.f32 %v274_v29, 0.0  ;;  %v921_v38 = vunpack.c.h.bf16 %v1118_v21  ;;  %v206_v41 = vmul.f32 %v917_v31, %v1178_v1  ;;  %v276_v42 = vadd.f32 %v1192_v7, %v205_v32 }
  0x42   :  { %v1063_v40 = vpack.c.bf16 %v337_v30, %v336_v27  ;;  %v207_v43 = vmul.f32 %v920_v33, %v1178_v1  ;;  %1145 = vst [vmem:[%s1505_s3 + $0xc8] sm:$0xff] %v1058_v35   ;;  %v339_v44 = vmax.f32 %v275_v36, 0.0  ;;  %v924_v46 = vunpack.c.l.bf16 %v1119_v34 }
  0x43   :  { %v208_v45 = vmul.f32 %v921_v38, %v1178_v1  ;;  %v925_v47 = vunpack.c.h.bf16 %v1119_v34  ;;  %v277_v48 = vadd.f32 %v1192_v7, %v206_v41  ;;  %v340_v49 = vmax.f32 %v276_v42, 0.0 }
  0x44   :  { %1146 = vst [vmem:[%s1505_s3 + $0xd0] sm:$0xff] %v1063_v40   ;;  %v278_v50 = vadd.f32 %v1192_v7, %v207_v43  ;;  %v928_v51 = vunpack.c.l.bf16 %v1120_v39  ;;  %v1068_v52 = vpack.c.bf16 %v339_v44, %v338_v37  ;;  %v209_v54 = vmul.f32 %v924_v46, %v1178_v1 }
  0x45   :  { %v279_v53 = vadd.f32 %v1192_v7, %v208_v45  ;;  %v210_v55 = vmul.f32 %v925_v47, %v1178_v1  ;;  %v341_v56 = vmax.f32 %v277_v48, 0.0  ;;  %v929_v58 = vunpack.c.h.bf16 %v1120_v39 }
  0x46   :  { %v342_v57 = vmax.f32 %v278_v50, 0.0  ;;  %v211_v59 = vmul.f32 %v928_v51, %v1178_v1  ;;  %1147 = vst [vmem:[%s1505_s3 + $0xd8] sm:$0xff] %v1068_v52   ;;  %v280_v61 = vadd.f32 %v1192_v7, %v209_v54 }
  0x47   :  { %v343_v60 = vmax.f32 %v279_v53, 0.0  ;;  %v281_v62 = vadd.f32 %v1192_v7, %v210_v55  ;;  %v1073_v63 = vpack.c.bf16 %v341_v56, %v340_v49  ;;  %v212_v0 = vmul.f32 %v929_v58, %v1178_v1 }
  0x48   :  { %v282_v2 = vadd.f32 %v1192_v7, %v211_v59  ;;  %v344_v4 = vmax.f32 %v280_v61, 0.0 }
  0x49   :  { %v1078_v3 = vpack.c.bf16 %v343_v60, %v342_v57  ;;  %v345_v5 = vmax.f32 %v281_v62, 0.0  ;;  %1148 = vst [vmem:[%s1505_s3 + $0xe0] sm:$0xff] %v1073_v63   ;;  %v283_v6 = vadd.f32 %v1192_v7, %v212_v0 }
  0x4a   :  { %v346_v8 = vmax.f32 %v282_v2, 0.0 }
  0x4b   :  { %1149 = vst [vmem:[%s1505_s3 + $0xe8] sm:$0xff] %v1078_v3   ;;  %v1083_v9 = vpack.c.bf16 %v345_v5, %v344_v4  ;;  %v347_v10 = vmax.f32 %v283_v6, 0.0 }
  0x4d   :  { %1150 = vst [vmem:[%s1505_s3 + $0xf0] sm:$0xff] %v1083_v9   ;;  %v1088_v1 = vpack.c.bf16 %v347_v10, %v346_v8 }
  0x4f   :  { %1151 = vst [vmem:[%s1505_s3 + $0xf8] sm:$0xff] %v1088_v1  }

// kernel: encoder_forward.7
= control target key start
LH: loop header
LB: loop body
LE: loop exit
PB: predicated region body
PF: predicated region fallthrough
CT: control target
= control target key end

     0   :  { %s2134_s1 = inlined_call_operand.vmem [shape: bf16[128,128], index: 1, kind: input, shape index: {}]   ;;  %s2135_s0 = inlined_call_operand.vmem [shape: bf16[512,128], index: 0, kind: input, shape index: {}]   ;;  %s2136_s2 = inlined_call_operand.vmem [shape: bf16[512,128], index: 2, kind: output, shape index: {0}]   ;;  %s2137_s3 = inlined_call_operand.vmem [shape: f32[8,128], index: 3, kind: output, shape index: {1}]   ;;  %s2138_s4 = inlined_call_operand.vmem [shape: f32[8,128], index: 4, kind: output, shape index: {2}]  }
   0x1   :  { %v1655_v0 = vld [vmem:[%s2134_s1] sm:$0xff]   ;;  %v1656_v1 = vld [vmem:[%s2134_s1 + $0x8] sm:$0xff]   ;;  %v1657_v2 = vld [vmem:[%s2134_s1 + $0x10] sm:$0xff]  }
   0x2   :  { %1559 = vmatprep.subr.bf16.mxu0 %v1655_v0  ;;  %1639 = vmatprep.subr.bf16.mxu1 %v1655_v0  ;;  %v1658_v3 = vld [vmem:[%s2134_s1 + $0x18] sm:$0xff]   ;;  %v1663_v4 = vld [vmem:[%s2135_s0] sm:$0xff]   ;;  %v1660_v6 = vld [vmem:[%s2134_s1 + $0x28] sm:$0xff]  }
   0x3   :  { %1560 = vmatpush3.bf16.msra.mxu0 %v1655_v0  ;;  %1647 = vmatpush3.bf16.msra.mxu1 %v1655_v0  ;;  %v1659_v5 = vld [vmem:[%s2134_s1 + $0x20] sm:$0xff]   ;;  %v1661_v7 = vld [vmem:[%s2134_s1 + $0x30] sm:$0xff]   ;;  %v1662_v8 = vld [vmem:[%s2134_s1 + $0x38] sm:$0xff]  }
   0x4   :  { %1561 = vmatprep.subr.bf16.mxu0 %v1656_v1  ;;  %1640 = vmatprep.subr.bf16.mxu1 %v1656_v1  ;;  %v1679_v9 = vld [vmem:[%s2135_s0 + $0x80] sm:$0xff]   ;;  %v1664_v10 = vld [vmem:[%s2135_s0 + $0x8] sm:$0xff]   ;;  %v1665_v11 = vld [vmem:[%s2135_s0 + $0x10] sm:$0xff]  }
   0x5   :  { %1575 = vmatprep.mubr.bf16.mxu0 %v1663_v4  ;;  %1607 = vmatprep.mubr.bf16.mxu1 %v1679_v9  ;;  %v1680_v12 = vld [vmem:[%s2135_s0 + $0x88] sm:$0xff]   ;;  %v1681_v13 = vld [vmem:[%s2135_s0 + $0x90] sm:$0xff]   ;;  %v1666_v14 = vld [vmem:[%s2135_s0 + $0x18] sm:$0xff]  }
   0x6   :  { %v1667_v15 = vld [vmem:[%s2135_s0 + $0x20] sm:$0xff]   ;;  %v1682_v16 = vld [vmem:[%s2135_s0 + $0x98] sm:$0xff]   ;;  %v1668_v18 = vld [vmem:[%s2135_s0 + $0x28] sm:$0xff]  }
   0x7   :  { %1562 = vmatpush3.bf16.msra.mxu0 %v1656_v1  ;;  %1648 = vmatpush3.bf16.msra.mxu1 %v1656_v1  ;;  %v1683_v17 = vld [vmem:[%s2135_s0 + $0xa0] sm:$0xff]   ;;  %v1684_v19 = vld [vmem:[%s2135_s0 + $0xa8] sm:$0xff]   ;;  %v1669_v20 = vld [vmem:[%s2135_s0 + $0x30] sm:$0xff]  }
   0x8   :  { %1563 = vmatprep.subr.bf16.mxu0 %v1657_v2  ;;  %1641 = vmatprep.subr.bf16.mxu1 %v1657_v2  ;;  %v1685_v21 = vld [vmem:[%s2135_s0 + $0xb0] sm:$0xff]   ;;  %v1670_v22 = vld [vmem:[%s2135_s0 + $0x38] sm:$0xff]   ;;  %v1671_v24 = vld [vmem:[%s2135_s0 + $0x40] sm:$0xff]  }
   0x9   :  { %v1686_v23 = vld [vmem:[%s2135_s0 + $0xb8] sm:$0xff]   ;;  %v1687_v25 = vld [vmem:[%s2135_s0 + $0xc0] sm:$0xff]   ;;  %v1672_v26 = vld [vmem:[%s2135_s0 + $0x48] sm:$0xff]  }
   0xa   :  { %v1688_v27 = vld [vmem:[%s2135_s0 + $0xc8] sm:$0xff]   ;;  %v1673_v28 = vld [vmem:[%s2135_s0 + $0x50] sm:$0xff]   ;;  %v1674_v30 = vld [vmem:[%s2135_s0 + $0x58] sm:$0xff]  }
   0xb   :  { %1564 = vmatpush3.bf16.msra.mxu0 %v1657_v2  ;;  %1649 = vmatpush3.bf16.msra.mxu1 %v1657_v2  ;;  %v1689_v29 = vld [vmem:[%s2135_s0 + $0xd0] sm:$0xff]   ;;  %v1690_v31 = vld [vmem:[%s2135_s0 + $0xd8] sm:$0xff]   ;;  %v1675_v32 = vld [vmem:[%s2135_s0 + $0x60] sm:$0xff]  }
   0xc   :  { %1565 = vmatprep.subr.bf16.mxu0 %v1658_v3  ;;  %1642 = vmatprep.subr.bf16.mxu1 %v1658_v3  ;;  %v1691_v33 = vld [vmem:[%s2135_s0 + $0xe0] sm:$0xff]   ;;  %v1676_v34 = vld [vmem:[%s2135_s0 + $0x68] sm:$0xff]   ;;  %v1677_v36 = vld [vmem:[%s2135_s0 + $0x70] sm:$0xff]  }
   0xd   :  { %v1692_v35 = vld [vmem:[%s2135_s0 + $0xe8] sm:$0xff]   ;;  %v1693_v37 = vld [vmem:[%s2135_s0 + $0xf0] sm:$0xff]   ;;  %v1678_v38 = vld [vmem:[%s2135_s0 + $0x78] sm:$0xff]  }
   0xe   :  { %v1694_v39 = vld [vmem:[%s2135_s0 + $0xf8] sm:$0xff]  }
   0xf   :  { %1566 = vmatpush3.bf16.msra.mxu0 %v1658_v3  ;;  %1650 = vmatpush3.bf16.msra.mxu1 %v1658_v3 }
  0x10   :  { %1567 = vmatprep.subr.bf16.mxu0 %v1659_v5  ;;  %1643 = vmatprep.subr.bf16.mxu1 %v1659_v5 }
  0x13   :  { %1568 = vmatpush3.bf16.msra.mxu0 %v1659_v5  ;;  %1651 = vmatpush3.bf16.msra.mxu1 %v1659_v5 }
  0x14   :  { %1569 = vmatprep.subr.bf16.mxu0 %v1660_v6  ;;  %1644 = vmatprep.subr.bf16.mxu1 %v1660_v6 }
  0x17   :  { %1570 = vmatpush3.bf16.msra.mxu0 %v1660_v6  ;;  %1652 = vmatpush3.bf16.msra.mxu1 %v1660_v6 }
  0x18   :  { %1571 = vmatprep.subr.bf16.mxu0 %v1661_v7  ;;  %1645 = vmatprep.subr.bf16.mxu1 %v1661_v7 }
  0x1b   :  { %1572 = vmatpush3.bf16.msra.mxu0 %v1661_v7  ;;  %1653 = vmatpush3.bf16.msra.mxu1 %v1661_v7 }
  0x1c   :  { %1573 = vmatprep.subr.bf16.mxu0 %v1662_v8  ;;  %1646 = vmatprep.subr.bf16.mxu1 %v1662_v8 }
  0x1f   :  { %1574 = vmatpush3.bf16.msra.mxu0 %v1662_v8  ;;  %1654 = vmatpush3.bf16.msra.mxu1 %v1662_v8 }
  0x22   :  { %1576 = vmatmul.mubr.bf16.vlgmr.msra.gmra.mrb[0].mxu0 %v1664_v10  ;;  %1608 = vmatmul.mubr.bf16.vlgmr.msra.gmra.mrb[0].mxu1 %v1680_v12 }
  0x23   :  { %1579 = vmatprep.mubr.bf16.mxu0 %v1665_v11  ;;  %1611 = vmatprep.mubr.bf16.mxu1 %v1681_v13 }
  0x2a   :  { %1580 = vmatmul.mubr.bf16.gmra.mrb[4].mxu0 %v1666_v14  ;;  %1612 = vmatmul.mubr.bf16.gmra.mrb[4].mxu1 %v1682_v16 }
  0x2b   :  { %1583 = vmatprep.mubr.bf16.mxu0 %v1667_v15  ;;  %1615 = vmatprep.mubr.bf16.mxu1 %v1683_v17 }
  0x32   :  { %1584 = vmatmul.mubr.bf16.gmra.mrb[8].mxu0 %v1668_v18  ;;  %1616 = vmatmul.mubr.bf16.gmra.mrb[8].mxu1 %v1684_v19 }
  0x33   :  { %1587 = vmatprep.mubr.bf16.mxu0 %v1669_v20  ;;  %1619 = vmatprep.mubr.bf16.mxu1 %v1685_v21 }
  0x3a   :  { %1588 = vmatmul.mubr.bf16.gmra.mrb[12].mxu0 %v1670_v22  ;;  %1620 = vmatmul.mubr.bf16.gmra.mrb[12].mxu1 %v1686_v23 }
  0x3b   :  { %1591 = vmatprep.mubr.bf16.mxu0 %v1671_v24  ;;  %1623 = vmatprep.mubr.bf16.mxu1 %v1687_v25 }
  0x42   :  { %1592 = vmatmul.mubr.bf16.gmra.mrb[16].mxu0 %v1672_v26  ;;  %1624 = vmatmul.mubr.bf16.gmra.mrb[16].mxu1 %v1688_v27 }
  0x43   :  { %1595 = vmatprep.mubr.bf16.mxu0 %v1673_v28  ;;  %1627 = vmatprep.mubr.bf16.mxu1 %v1689_v29 }
  0x4a   :  { %1596 = vmatmul.mubr.bf16.gmra.mrb[20].mxu0 %v1674_v30  ;;  %1628 = vmatmul.mubr.bf16.gmra.mrb[20].mxu1 %v1690_v31 }
  0x4b   :  { %1599 = vmatprep.mubr.bf16.mxu0 %v1675_v32  ;;  %1631 = vmatprep.mubr.bf16.mxu1 %v1691_v33 }
  0x52   :  { %1600 = vmatmul.mubr.bf16.gmra.mrb[24].mxu0 %v1676_v34  ;;  %1632 = vmatmul.mubr.bf16.gmra.mrb[24].mxu1 %v1692_v35 }
  0x53   :  { %1603 = vmatprep.mubr.bf16.mxu0 %v1677_v36  ;;  %1635 = vmatprep.mubr.bf16.mxu1 %v1693_v37 }
  0x5a   :  { %1604 = vmatmul.mubr.bf16.gmra.mrb[28].mxu0 %v1678_v38  ;;  %1636 = vmatmul.mubr.bf16.gmra.mrb[28].mxu1 %v1694_v39 }
  0xf5   :  { %v1577_v40 = vpop.f32.mrb[0].mxu0  ;;  %v1840_v41 = vpop.f32.mrb[0].mxu1 }
  0xf6   :  { %v369_v42 = vpop.f32.mrb[1].mxu0  ;;  %v1842_v43 = vpop.f32.mrb[1].mxu1  ;;  %v1015_v55 = vmul.f32 %v1577_v40, %v1577_v40 }
  0xf7   :  { %v1578_v44 = vpop.f32.mrb[2].mxu0  ;;  %v1844_v45 = vpop.f32.mrb[2].mxu1  ;;  %v1013_v46 = vmul.f32 %v369_v42, %v369_v42 }
  0xf8   :  { %v1336_v47 = vpack.c.bf16 %v1578_v44, %v1577_v40  ;;  %v372_v48 = vpop.f32.mrb[3].mxu0  ;;  %v1416_v49 = vpack.c.bf16 %v1844_v45, %v1840_v41  ;;  %v1848_v50 = vpop.f32.mrb[3].mxu1  ;;  %v1016_v58 = vmul.f32 %v1578_v44, %v1578_v44 }
  0xf9   :  { %v1331_v51 = vpack.c.bf16 %v372_v48, %v369_v42  ;;  %v944_v52 = vadd.f32 %v372_v48, %v369_v42  ;;  %v1014_v53 = vmul.f32 %v372_v48, %v372_v48  ;;  %v1411_v54 = vpack.c.bf16 %v1848_v50, %v1842_v43 }
  0xfa   :  { %1488 = vst [vmem:[%s2136_s2 + $0x8] sm:$0xff] %v1336_v47   ;;  %1504 = vst [vmem:[%s2136_s2 + $0x88] sm:$0xff] %v1416_v49  }
  0xfb   :  { %1332 = vst [vmem:[%s2136_s2] sm:$0xff] %v1331_v51   ;;  %v945_v56 = vadd.f32 %v1577_v40, %v944_v52  ;;  %v1077_v57 = vadd.f32 %v1014_v53, %v1013_v46  ;;  %1503 = vst [vmem:[%s2136_s2 + $0x80] sm:$0xff] %v1411_v54  }
  0xfd   :  { %v1078_v59 = vadd.f32 %v1077_v57, %v1015_v55  ;;  %v1581_v60 = vpop.f32.mrb[4].mxu0  ;;  %v946_v61 = vadd.f32 %v1578_v44, %v945_v56  ;;  %v1864_v62 = vpop.f32.mrb[4].mxu1 }
  0xfe   :  { %v385_v63 = vpop.f32.mrb[5].mxu0  ;;  %v1866_v0 = vpop.f32.mrb[5].mxu1  ;;  %v1019_v15 = vmul.f32 %v1581_v60, %v1581_v60 }
  0xff   :  { %v947_v1 = vadd.f32 %v946_v61, %v385_v63  ;;  %v1017_v2 = vmul.f32 %v385_v63, %v385_v63  ;;  %v1079_v3 = vadd.f32 %v1078_v59, %v1016_v58  ;;  %v1582_v4 = vpop.f32.mrb[6].mxu0  ;;  %v1868_v5 = vpop.f32.mrb[6].mxu1 }
 0x100   :  { %v1346_v6 = vpack.c.bf16 %v1582_v4, %v1581_v60  ;;  %v388_v7 = vpop.f32.mrb[7].mxu0  ;;  %v1426_v8 = vpack.c.bf16 %v1868_v5, %v1864_v62  ;;  %v1872_v9 = vpop.f32.mrb[7].mxu1  ;;  %v1020_v18 = vmul.f32 %v1582_v4, %v1582_v4 }
 0x101   :  { %v1080_v10 = vadd.f32 %v1079_v3, %v1017_v2  ;;  %v1341_v11 = vpack.c.bf16 %v388_v7, %v385_v63  ;;  %v948_v12 = vadd.f32 %v947_v1, %v388_v7  ;;  %v1018_v13 = vmul.f32 %v388_v7, %v388_v7 }
 0x102   :  { %1490 = vst [vmem:[%s2136_s2 + $0x18] sm:$0xff] %v1346_v6   ;;  %1506 = vst [vmem:[%s2136_s2 + $0x98] sm:$0xff] %v1426_v8   ;;  %v1421_v14 = vpack.c.bf16 %v1872_v9, %v1866_v0 }
 0x103   :  { %1489 = vst [vmem:[%s2136_s2 + $0x10] sm:$0xff] %v1341_v11   ;;  %v949_v16 = vadd.f32 %v1581_v60, %v948_v12  ;;  %v1081_v17 = vadd.f32 %v1080_v10, %v1018_v13 }
 0x104   :  { %1505 = vst [vmem:[%s2136_s2 + $0x90] sm:$0xff] %v1421_v14  }
 0x105   :  { %v1082_v19 = vadd.f32 %v1081_v17, %v1019_v15  ;;  %v1585_v20 = vpop.f32.mrb[8].mxu0  ;;  %v950_v21 = vadd.f32 %v1582_v4, %v949_v16  ;;  %v1888_v22 = vpop.f32.mrb[8].mxu1 }
 0x106   :  { %v401_v23 = vpop.f32.mrb[9].mxu0  ;;  %v1890_v24 = vpop.f32.mrb[9].mxu1  ;;  %v1023_v39 = vmul.f32 %v1585_v20, %v1585_v20 }
 0x107   :  { %v951_v25 = vadd.f32 %v950_v21, %v401_v23  ;;  %v1021_v26 = vmul.f32 %v401_v23, %v401_v23  ;;  %v1083_v27 = vadd.f32 %v1082_v19, %v1020_v18  ;;  %v1586_v28 = vpop.f32.mrb[10].mxu0  ;;  %v1892_v29 = vpop.f32.mrb[10].mxu1 }
 0x108   :  { %v1356_v30 = vpack.c.bf16 %v1586_v28, %v1585_v20  ;;  %v404_v31 = vpop.f32.mrb[11].mxu0  ;;  %v1436_v32 = vpack.c.bf16 %v1892_v29, %v1888_v22  ;;  %v1896_v33 = vpop.f32.mrb[11].mxu1  ;;  %v1024_v44 = vmul.f32 %v1586_v28, %v1586_v28 }
 0x109   :  { %v1084_v34 = vadd.f32 %v1083_v27, %v1021_v26  ;;  %v1351_v35 = vpack.c.bf16 %v404_v31, %v401_v23  ;;  %v952_v36 = vadd.f32 %v951_v25, %v404_v31  ;;  %v1022_v37 = vmul.f32 %v404_v31, %v404_v31 }
 0x10a   :  { %1492 = vst [vmem:[%s2136_s2 + $0x28] sm:$0xff] %v1356_v30   ;;  %1508 = vst [vmem:[%s2136_s2 + $0xa8] sm:$0xff] %v1436_v32   ;;  %v1431_v38 = vpack.c.bf16 %v1896_v33, %v1890_v24 }
 0x10b   :  { %1491 = vst [vmem:[%s2136_s2 + $0x20] sm:$0xff] %v1351_v35   ;;  %v953_v40 = vadd.f32 %v1585_v20, %v952_v36  ;;  %v1085_v42 = vadd.f32 %v1084_v34, %v1022_v37 }
 0x10c   :  { %1507 = vst [vmem:[%s2136_s2 + $0xa0] sm:$0xff] %v1431_v38  }
 0x10d   :  { %v1086_v46 = vadd.f32 %v1085_v42, %v1023_v39  ;;  %v1589_v47 = vpop.f32.mrb[12].mxu0  ;;  %v954_v48 = vadd.f32 %v1586_v28, %v953_v40  ;;  %v1912_v49 = vpop.f32.mrb[12].mxu1 }
 0x10e   :  { %v417_v51 = vpop.f32.mrb[13].mxu0  ;;  %v1914_v52 = vpop.f32.mrb[13].mxu1  ;;  %v1027_v6 = vmul.f32 %v1589_v47, %v1589_v47 }
 0x10f   :  { %v955_v53 = vadd.f32 %v954_v48, %v417_v51  ;;  %v1025_v54 = vmul.f32 %v417_v51, %v417_v51  ;;  %v1087_v55 = vadd.f32 %v1086_v46, %v1024_v44  ;;  %v1590_v56 = vpop.f32.mrb[14].mxu0  ;;  %v1916_v57 = vpop.f32.mrb[14].mxu1 }
 0x110   :  { %v1366_v58 = vpack.c.bf16 %v1590_v56, %v1589_v47  ;;  %v420_v59 = vpop.f32.mrb[15].mxu0  ;;  %v1446_v60 = vpack.c.bf16 %v1916_v57, %v1912_v49  ;;  %v1920_v61 = vpop.f32.mrb[15].mxu1  ;;  %v1028_v10 = vmul.f32 %v1590_v56, %v1590_v56 }
 0x111   :  { %v1088_v63 = vadd.f32 %v1087_v55, %v1025_v54  ;;  %v1361_v1 = vpack.c.bf16 %v420_v59, %v417_v51  ;;  %v956_v2 = vadd.f32 %v955_v53, %v420_v59  ;;  %v1026_v3 = vmul.f32 %v420_v59, %v420_v59 }
 0x112   :  { %1494 = vst [vmem:[%s2136_s2 + $0x38] sm:$0xff] %v1366_v58   ;;  %1510 = vst [vmem:[%s2136_s2 + $0xb8] sm:$0xff] %v1446_v60   ;;  %v1441_v4 = vpack.c.bf16 %v1920_v61, %v1914_v52 }
 0x113   :  { %1493 = vst [vmem:[%s2136_s2 + $0x30] sm:$0xff] %v1361_v1   ;;  %v957_v7 = vadd.f32 %v1589_v47, %v956_v2  ;;  %v1089_v8 = vadd.f32 %v1088_v63, %v1026_v3 }
 0x114   :  { %1509 = vst [vmem:[%s2136_s2 + $0xb0] sm:$0xff] %v1441_v4  }
 0x115   :  { %v1090_v11 = vadd.f32 %v1089_v8, %v1027_v6  ;;  %v1593_v12 = vpop.f32.mrb[16].mxu0  ;;  %v958_v13 = vadd.f32 %v1590_v56, %v957_v7  ;;  %v1936_v14 = vpop.f32.mrb[16].mxu1 }
 0x116   :  { %v433_v15 = vpop.f32.mrb[17].mxu0  ;;  %v1938_v16 = vpop.f32.mrb[17].mxu1  ;;  %v1031_v35 = vmul.f32 %v1593_v12, %v1593_v12 }
 0x117   :  { %v959_v17 = vadd.f32 %v958_v13, %v433_v15  ;;  %v1029_v18 = vmul.f32 %v433_v15, %v433_v15  ;;  %v1091_v19 = vadd.f32 %v1090_v11, %v1028_v10  ;;  %v1594_v20 = vpop.f32.mrb[18].mxu0  ;;  %v1940_v21 = vpop.f32.mrb[18].mxu1 }
 0x118   :  { %v1376_v23 = vpack.c.bf16 %v1594_v20, %v1593_v12  ;;  %v436_v25 = vpop.f32.mrb[19].mxu0  ;;  %v1456_v26 = vpack.c.bf16 %v1940_v21, %v1936_v14  ;;  %v1944_v27 = vpop.f32.mrb[19].mxu1  ;;  %v1032_v38 = vmul.f32 %v1594_v20, %v1594_v20 }
 0x119   :  { %v1092_v28 = vadd.f32 %v1091_v19, %v1029_v18  ;;  %v1371_v30 = vpack.c.bf16 %v436_v25, %v433_v15  ;;  %v960_v31 = vadd.f32 %v959_v17, %v436_v25  ;;  %v1030_v32 = vmul.f32 %v436_v25, %v436_v25 }
 0x11a   :  { %1496 = vst [vmem:[%s2136_s2 + $0x48] sm:$0xff] %v1376_v23   ;;  %1512 = vst [vmem:[%s2136_s2 + $0xc8] sm:$0xff] %v1456_v26   ;;  %v1451_v34 = vpack.c.bf16 %v1944_v27, %v1938_v16 }
 0x11b   :  { %1495 = vst [vmem:[%s2136_s2 + $0x40] sm:$0xff] %v1371_v30   ;;  %v961_v36 = vadd.f32 %v1593_v12, %v960_v31  ;;  %v1093_v37 = vadd.f32 %v1092_v28, %v1030_v32 }
 0x11c   :  { %1511 = vst [vmem:[%s2136_s2 + $0xc0] sm:$0xff] %v1451_v34  }
 0x11d   :  { %v1094_v39 = vadd.f32 %v1093_v37, %v1031_v35  ;;  %v1597_v40 = vpop.f32.mrb[20].mxu0  ;;  %v962_v42 = vadd.f32 %v1594_v20, %v961_v36  ;;  %v1960_v44 = vpop.f32.mrb[20].mxu1 }
 0x11e   :  { %v449_v46 = vpop.f32.mrb[21].mxu0  ;;  %v1962_v47 = vpop.f32.mrb[21].mxu1  ;;  %v1035_v6 = vmul.f32 %v1597_v40, %v1597_v40 }
 0x11f   :  { %v963_v48 = vadd.f32 %v962_v42, %v449_v46  ;;  %v1033_v51 = vmul.f32 %v449_v46, %v449_v46  ;;  %v1095_v53 = vadd.f32 %v1094_v39, %v1032_v38  ;;  %v1598_v54 = vpop.f32.mrb[22].mxu0  ;;  %v1964_v55 = vpop.f32.mrb[22].mxu1 }
 0x120   :  { %v1386_v56 = vpack.c.bf16 %v1598_v54, %v1597_v40  ;;  %v452_v58 = vpop.f32.mrb[23].mxu0  ;;  %v1466_v59 = vpack.c.bf16 %v1964_v55, %v1960_v44  ;;  %v1968_v60 = vpop.f32.mrb[23].mxu1  ;;  %v1036_v10 = vmul.f32 %v1598_v54, %v1598_v54 }
 0x121   :  { %v1096_v63 = vadd.f32 %v1095_v53, %v1033_v51  ;;  %v1381_v1 = vpack.c.bf16 %v452_v58, %v449_v46  ;;  %v964_v2 = vadd.f32 %v963_v48, %v452_v58  ;;  %v1034_v3 = vmul.f32 %v452_v58, %v452_v58 }
 0x122   :  { %1498 = vst [vmem:[%s2136_s2 + $0x58] sm:$0xff] %v1386_v56   ;;  %1514 = vst [vmem:[%s2136_s2 + $0xd8] sm:$0xff] %v1466_v59   ;;  %v1461_v4 = vpack.c.bf16 %v1968_v60, %v1962_v47 }
 0x123   :  { %1497 = vst [vmem:[%s2136_s2 + $0x50] sm:$0xff] %v1381_v1   ;;  %v965_v7 = vadd.f32 %v1597_v40, %v964_v2  ;;  %v1097_v8 = vadd.f32 %v1096_v63, %v1034_v3 }
 0x124   :  { %1513 = vst [vmem:[%s2136_s2 + $0xd0] sm:$0xff] %v1461_v4  }
 0x125   :  { %v1098_v11 = vadd.f32 %v1097_v8, %v1035_v6  ;;  %v1601_v12 = vpop.f32.mrb[24].mxu0  ;;  %v966_v13 = vadd.f32 %v1598_v54, %v965_v7  ;;  %v1984_v15 = vpop.f32.mrb[24].mxu1 }
 0x126   :  { %v465_v17 = vpop.f32.mrb[25].mxu0  ;;  %v1986_v18 = vpop.f32.mrb[25].mxu1  ;;  %v1039_v39 = vmul.f32 %v1601_v12, %v1601_v12 }
 0x127   :  { %v967_v19 = vadd.f32 %v966_v13, %v465_v17  ;;  %v1037_v20 = vmul.f32 %v465_v17, %v465_v17  ;;  %v1099_v23 = vadd.f32 %v1098_v11, %v1036_v10  ;;  %v1602_v25 = vpop.f32.mrb[26].mxu0  ;;  %v1988_v26 = vpop.f32.mrb[26].mxu1 }
 0x128   :  { %v1396_v28 = vpack.c.bf16 %v1602_v25, %v1601_v12  ;;  %v468_v30 = vpop.f32.mrb[27].mxu0  ;;  %v1476_v31 = vpack.c.bf16 %v1988_v26, %v1984_v15  ;;  %v1992_v32 = vpop.f32.mrb[27].mxu1  ;;  %v1040_v46 = vmul.f32 %v1602_v25, %v1602_v25 }
 0x129   :  { %v1100_v34 = vadd.f32 %v1099_v23, %v1037_v20  ;;  %v1391_v35 = vpack.c.bf16 %v468_v30, %v465_v17  ;;  %v968_v36 = vadd.f32 %v967_v19, %v468_v30  ;;  %v1038_v37 = vmul.f32 %v468_v30, %v468_v30 }
 0x12a   :  { %1500 = vst [vmem:[%s2136_s2 + $0x68] sm:$0xff] %v1396_v28   ;;  %1516 = vst [vmem:[%s2136_s2 + $0xe8] sm:$0xff] %v1476_v31   ;;  %v1471_v38 = vpack.c.bf16 %v1992_v32, %v1986_v18  ;;  %v1045_v31 = vmul.f32 %v1842_v43, %v1842_v43 }
 0x12b   :  { %1499 = vst [vmem:[%s2136_s2 + $0x60] sm:$0xff] %v1391_v35   ;;  %v969_v40 = vadd.f32 %v1601_v12, %v968_v36  ;;  %v1101_v42 = vadd.f32 %v1100_v34, %v1038_v37 }
 0x12c   :  { %1515 = vst [vmem:[%s2136_s2 + $0xe0] sm:$0xff] %v1471_v38   ;;  %v1046_v38 = vmul.f32 %v1848_v50, %v1848_v50 }
 0x12d   :  { %v1102_v48 = vadd.f32 %v1101_v42, %v1039_v39  ;;  %v1605_v51 = vpop.f32.mrb[28].mxu0  ;;  %v970_v53 = vadd.f32 %v1602_v25, %v969_v40  ;;  %v2008_v54 = vpop.f32.mrb[28].mxu1  ;;  %v1047_v39 = vmul.f32 %v1840_v41, %v1840_v41 }
 0x12e   :  { %v481_v56 = vpop.f32.mrb[29].mxu0  ;;  %v2010_v58 = vpop.f32.mrb[29].mxu1  ;;  %v1043_v19 = vmul.f32 %v1605_v51, %v1605_v51 }
 0x12f   :  { %v971_v59 = vadd.f32 %v970_v53, %v481_v56  ;;  %v1041_v63 = vmul.f32 %v481_v56, %v481_v56  ;;  %v1103_v1 = vadd.f32 %v1102_v48, %v1040_v46  ;;  %v1606_v2 = vpop.f32.mrb[30].mxu0  ;;  %v2012_v3 = vpop.f32.mrb[30].mxu1  ;;  %v1048_v46 = vmul.f32 %v1844_v45, %v1844_v45 }
 0x130   :  { %v1406_v4 = vpack.c.bf16 %v1606_v2, %v1605_v51  ;;  %v484_v6 = vpop.f32.mrb[31].mxu0  ;;  %v1486_v7 = vpack.c.bf16 %v2012_v3, %v2008_v54  ;;  %v2016_v8 = vpop.f32.mrb[31].mxu1  ;;  %v1044_v25 = vmul.f32 %v1606_v2, %v1606_v2 }
 0x131   :  { %v1104_v10 = vadd.f32 %v1103_v1, %v1041_v63  ;;  %v1401_v11 = vpack.c.bf16 %v484_v6, %v481_v56  ;;  %v972_v12 = vadd.f32 %v971_v59, %v484_v6  ;;  %v1042_v13 = vmul.f32 %v484_v6, %v484_v6 }
 0x132   :  { %1502 = vst [vmem:[%s2136_s2 + $0x78] sm:$0xff] %v1406_v4   ;;  %1518 = vst [vmem:[%s2136_s2 + $0xf8] sm:$0xff] %v1486_v7   ;;  %v1481_v17 = vpack.c.bf16 %v2016_v8, %v2010_v58  ;;  %v1050_v63 = vmul.f32 %v1872_v9, %v1872_v9 }
 0x133   :  { %1501 = vst [vmem:[%s2136_s2 + $0x70] sm:$0xff] %v1401_v11   ;;  %v973_v20 = vadd.f32 %v1605_v51, %v972_v12  ;;  %v1105_v23 = vadd.f32 %v1104_v10, %v1042_v13  ;;  %v1054_v12 = vmul.f32 %v1896_v33, %v1896_v33 }
 0x134   :  { %1517 = vst [vmem:[%s2136_s2 + $0xf0] sm:$0xff] %v1481_v17  }
 0x135   :  { %v1106_v28 = vadd.f32 %v1105_v23, %v1043_v19  ;;  %v974_v30 = vadd.f32 %v1606_v2, %v973_v20 }
 0x137   :  { %v975_v34 = vadd.f32 %v974_v30, %v1842_v43  ;;  %v1107_v35 = vadd.f32 %v1106_v28, %v1044_v25  ;;  %v1049_v43 = vmul.f32 %v1866_v0, %v1866_v0  ;;  %v1058_v30 = vmul.f32 %v1920_v61, %v1920_v61 }
 0x139   :  { %v1108_v36 = vadd.f32 %v1107_v35, %v1045_v31  ;;  %v976_v37 = vadd.f32 %v975_v34, %v1848_v50 }
 0x13b   :  { %v977_v40 = vadd.f32 %v1840_v41, %v976_v37  ;;  %v1109_v42 = vadd.f32 %v1108_v36, %v1046_v38  ;;  %v1051_v41 = vmul.f32 %v1864_v62, %v1864_v62 }
 0x13d   :  { %v1110_v48 = vadd.f32 %v1109_v42, %v1047_v39  ;;  %v978_v51 = vadd.f32 %v1844_v45, %v977_v40  ;;  %v1052_v45 = vmul.f32 %v1868_v5, %v1868_v5  ;;  %v1062_v40 = vmul.f32 %v1944_v27, %v1944_v27 }
 0x13f   :  { %v979_v53 = vadd.f32 %v978_v51, %v1866_v0  ;;  %v1111_v56 = vadd.f32 %v1110_v48, %v1048_v46  ;;  %v1053_v0 = vmul.f32 %v1890_v24, %v1890_v24 }
 0x141   :  { %v1112_v59 = vadd.f32 %v1111_v56, %v1049_v43  ;;  %v980_v50 = vadd.f32 %v979_v53, %v1872_v9 }
 0x143   :  { %v981_v1 = vadd.f32 %v1864_v62, %v980_v50  ;;  %v1113_v2 = vadd.f32 %v1112_v59, %v1050_v63  ;;  %v1055_v62 = vmul.f32 %v1888_v22, %v1888_v22  ;;  %v1066_v59 = vmul.f32 %v1968_v60, %v1968_v60 }
 0x145   :  { %v1114_v4 = vadd.f32 %v1113_v2, %v1051_v41  ;;  %v982_v6 = vadd.f32 %v1868_v5, %v981_v1  ;;  %v1056_v5 = vmul.f32 %v1892_v29, %v1892_v29 }
 0x147   :  { %v983_v7 = vadd.f32 %v982_v6, %v1890_v24  ;;  %v1115_v10 = vadd.f32 %v1114_v4, %v1052_v45  ;;  %v1057_v24 = vmul.f32 %v1914_v52, %v1914_v52  ;;  %v1070_v6 = vmul.f32 %v1992_v32, %v1992_v32 }
 0x149   :  { %v1116_v11 = vadd.f32 %v1115_v10, %v1053_v0  ;;  %v984_v9 = vadd.f32 %v983_v7, %v1896_v33 }
 0x14b   :  { %v985_v13 = vadd.f32 %v1888_v22, %v984_v9  ;;  %v1117_v17 = vadd.f32 %v1116_v11, %v1054_v12  ;;  %v1059_v22 = vmul.f32 %v1912_v49, %v1912_v49 }
 0x14d   :  { %v1118_v19 = vadd.f32 %v1117_v17, %v1055_v62  ;;  %v986_v20 = vadd.f32 %v1892_v29, %v985_v13  ;;  %v1060_v29 = vmul.f32 %v1916_v57, %v1916_v57  ;;  %v1074_v13 = vmul.f32 %v2016_v8, %v2016_v8 }
 0x14f   :  { %v987_v23 = vadd.f32 %v986_v20, %v1914_v52  ;;  %v1119_v25 = vadd.f32 %v1118_v19, %v1056_v5  ;;  %v1061_v52 = vmul.f32 %v1938_v16, %v1938_v16 }
 0x151   :  { %v1120_v28 = vadd.f32 %v1119_v25, %v1057_v24  ;;  %v988_v33 = vadd.f32 %v987_v23, %v1920_v61 }
 0x153   :  { %v989_v31 = vadd.f32 %v1912_v49, %v988_v33  ;;  %v1121_v34 = vadd.f32 %v1120_v28, %v1058_v30  ;;  %v1063_v49 = vmul.f32 %v1936_v14, %v1936_v14 }
 0x155   :  { %v1122_v35 = vadd.f32 %v1121_v34, %v1059_v22  ;;  %v990_v36 = vadd.f32 %v1916_v57, %v989_v31  ;;  %v1064_v57 = vmul.f32 %v1940_v21, %v1940_v21 }
 0x157   :  { %v991_v37 = vadd.f32 %v990_v36, %v1938_v16  ;;  %v1123_v38 = vadd.f32 %v1122_v35, %v1060_v29  ;;  %v1065_v16 = vmul.f32 %v1962_v47, %v1962_v47 }
 0x159   :  { %v1124_v39 = vadd.f32 %v1123_v38, %v1061_v52  ;;  %v992_v61 = vadd.f32 %v991_v37, %v1944_v27 }
 0x15b   :  { %v993_v42 = vadd.f32 %v1936_v14, %v992_v61  ;;  %v1125_v46 = vadd.f32 %v1124_v39, %v1062_v40  ;;  %v1067_v14 = vmul.f32 %v1960_v44, %v1960_v44 }
 0x15d   :  { %v1126_v48 = vadd.f32 %v1125_v46, %v1063_v49  ;;  %v994_v51 = vadd.f32 %v1940_v21, %v993_v42  ;;  %v1068_v21 = vmul.f32 %v1964_v55, %v1964_v55 }
 0x15f   :  { %v995_v43 = vadd.f32 %v994_v51, %v1962_v47  ;;  %v1127_v53 = vadd.f32 %v1126_v48, %v1064_v57  ;;  %v1069_v47 = vmul.f32 %v1986_v18, %v1986_v18 }
 0x161   :  { %v1128_v56 = vadd.f32 %v1127_v53, %v1065_v16  ;;  %v996_v27 = vadd.f32 %v995_v43, %v1968_v60 }
 0x163   :  { %v997_v50 = vadd.f32 %v1960_v44, %v996_v27  ;;  %v1129_v63 = vadd.f32 %v1128_v56, %v1066_v59  ;;  %v1071_v44 = vmul.f32 %v1984_v15, %v1984_v15 }
 0x165   :  { %v1130_v41 = vadd.f32 %v1129_v63, %v1067_v14  ;;  %v998_v1 = vadd.f32 %v1964_v55, %v997_v50  ;;  %v1072_v55 = vmul.f32 %v1988_v26, %v1988_v26 }
 0x167   :  { %v999_v2 = vadd.f32 %v998_v1, %v1986_v18  ;;  %v1131_v45 = vadd.f32 %v1130_v41, %v1068_v21  ;;  %v1073_v18 = vmul.f32 %v2010_v58, %v2010_v58 }
 0x169   :  { %v1132_v4 = vadd.f32 %v1131_v45, %v1069_v47  ;;  %v1000_v60 = vadd.f32 %v999_v2, %v1992_v32 }
 0x16b   :  { %v1001_v0 = vadd.f32 %v1984_v15, %v1000_v60  ;;  %v1133_v7 = vadd.f32 %v1132_v4, %v1070_v6  ;;  %v1075_v15 = vmul.f32 %v2008_v54, %v2008_v54 }
 0x16d   :  { %v1134_v10 = vadd.f32 %v1133_v7, %v1071_v44  ;;  %v1002_v11 = vadd.f32 %v1988_v26, %v1001_v0  ;;  %v1076_v26 = vmul.f32 %v2012_v3, %v2012_v3 }
 0x16f   :  { %v1003_v9 = vadd.f32 %v1002_v11, %v2010_v58  ;;  %v1135_v12 = vadd.f32 %v1134_v10, %v1072_v55 }
 0x171   :  { %v1136_v62 = vadd.f32 %v1135_v12, %v1073_v18  ;;  %v1004_v32 = vadd.f32 %v1003_v9, %v2016_v8 }
 0x173   :  { %v1005_v17 = vadd.f32 %v2008_v54, %v1004_v32  ;;  %v1137_v5 = vadd.f32 %v1136_v62, %v1074_v13 }
 0x175   :  { %v1006_v19 = vadd.f32 %v2012_v3, %v1005_v17  ;;  %v1138_v20 = vadd.f32 %v1137_v5, %v1075_v15 }
 0x177   :  { %v1007_v58 = vrot.slane %v1006_v19, 4  ;;  %v1139_v24 = vadd.f32 %v1138_v20, %v1076_v26 }
 0x179   :  { %v1008_v23 = vadd.f32 %v1007_v58, %v1006_v19  ;;  %v1140_v25 = vrot.slane %v1139_v24, 4 }
 0x17b   :  { %v1009_v28 = vrot.slane %v1008_v23, 2  ;;  %v1141_v33 = vadd.f32 %v1140_v25, %v1139_v24 }
 0x17d   :  { %v1010_v30 = vadd.f32 %v1009_v28, %v1008_v23  ;;  %v1142_v8 = vrot.slane %v1141_v33, 2 }
 0x17f   :  { %v1011_v22 = vrot.slane %v1010_v30, 1  ;;  %v1143_v31 = vadd.f32 %v1142_v8, %v1141_v33 }
 0x181   :  { %v1012_v34 = vadd.f32 %v1011_v22, %v1010_v30  ;;  %v1144_v29 = vrot.slane %v1143_v31, 1 }
 0x183   :  { %v1145_v54 = vadd.f32 %v1144_v29, %v1143_v31  ;;  %1146 = vst [vmem:[%s2137_s3] sm:$0xff] %v1012_v34 }
 0x185   :  { %1147 = vst [vmem:[%s2138_s4] sm:$0xff] %v1145_v54 }

// kernel: encoder_forward.9
= control target key start
LH: loop header
LB: loop body
LE: loop exit
PB: predicated region body
PF: predicated region fallthrough
CT: control target
= control target key end

     0   :  { %s717_s1 = inlined_call_operand.vmem [shape: bf16[256,128], index: 1, kind: input, shape index: {}]   ;;  %s718_s0 = inlined_call_operand.vmem [shape: bf16[128,256], index: 0, kind: input, shape index: {}]   ;;  %s719_s2 = inlined_call_operand.vmem [shape: f32[1,128], index: 2, kind: input, shape index: {}]   ;;  %s720_s3 = inlined_call_operand.vmem [shape: f32[128,128], index: 3, kind: output, shape index: {}]  }
   0x1   :  { %v492_v0 = vld [vmem:[%s717_s1 + $0x40] sm:$0xff]   ;;  %v494_v2 = vld [vmem:[%s717_s1 + $0x48] sm:$0xff]   ;;  %v496_v4 = vld [vmem:[%s717_s1 + $0x50] sm:$0xff]  }
   0x2   :  { %v493_v1 = vld [vmem:[%s717_s1] sm:$0xff]   ;;  %412 = vmatprep.subr.bf16.mxu0 %v492_v0  ;;  %476 = vmatprep.subr.bf16.mxu1 %v492_v0  ;;  %v495_v3 = vld [vmem:[%s717_s1 + $0x8] sm:$0xff]   ;;  %v497_v5 = vld [vmem:[%s717_s1 + $0x10] sm:$0xff]  }
   0x3   :  { %413 = vmatpush3.bf16.msra.mxu0 %v493_v1  ;;  %484 = vmatpush3.bf16.msra.mxu1 %v493_v1  ;;  %v498_v6 = vld [vmem:[%s717_s1 + $0x58] sm:$0xff]   ;;  %v500_v8 = vld [vmem:[%s717_s1 + $0x60] sm:$0xff]   ;;  %v502_v10 = vld [vmem:[%s717_s1 + $0x68] sm:$0xff]  }
   0x4   :  { %414 = vmatprep.subr.bf16.mxu0 %v494_v2  ;;  %477 = vmatprep.subr.bf16.mxu1 %v494_v2  ;;  %v499_v7 = vld [vmem:[%s717_s1 + $0x18] sm:$0xff]   ;;  %v501_v9 = vld [vmem:[%s717_s1 + $0x20] sm:$0xff]   ;;  %v503_v13 = vld [vmem:[%s717_s1 + $0x28] sm:$0xff]  }
   0x5   :  { %v510_v11 = vld [vmem:[%s718_s0 + $0x4] ss:$8 sps:$4 sm:$0xff]   ;;  %v504_v14 = vld [vmem:[%s717_s1 + $0x70] sm:$0xff]   ;;  %v506_v16 = vld [vmem:[%s717_s1 + $0x78] sm:$0xff]  }
   0x6   :  { %v513_v12 = vld [vmem:[%s718_s0 + $0x44] ss:$8 sps:$4 sm:$0xff]   ;;  %278 = vmatprep.mubr.bf16.mxu0 %v510_v11  ;;  %v505_v15 = vld [vmem:[%s717_s1 + $0x30] sm:$0xff]   ;;  %v507_v17 = vld [vmem:[%s717_s1 + $0x38] sm:$0xff]  }
   0x7   :  { %415 = vmatpush3.bf16.msra.mxu0 %v495_v3  ;;  %485 = vmatpush3.bf16.msra.mxu1 %v495_v3  ;;  %v508_v18 = vld [vmem:[%s718_s0] ss:$8 sps:$4 sm:$0xff]   ;;  %v514_v20 = vld [vmem:[%s718_s0 + $0x14] ss:$8 sps:$4 sm:$0xff]   ;;  %v518_v22 = vld [vmem:[%s718_s0 + $0x10] ss:$8 sps:$4 sm:$0xff]  }
   0x8   :  { %416 = vmatprep.subr.bf16.mxu0 %v496_v4  ;;  %478 = vmatprep.subr.bf16.mxu1 %v496_v4  ;;  %v511_v19 = vld [vmem:[%s718_s0 + $0x40] ss:$8 sps:$4 sm:$0xff]   ;;  %v516_v21 = vld [vmem:[%s718_s0 + $0x54] ss:$8 sps:$4 sm:$0xff]   ;;  %v519_v23 = vld [vmem:[%s718_s0 + $0x50] ss:$8 sps:$4 sm:$0xff]  }
   0x9   :  { %310 = vmatprep.mubr.bf16.mxu1 %v513_v12  ;;  %v520_v24 = vld [vmem:[%s718_s0 + $0x24] ss:$8 sps:$4 sm:$0xff]   ;;  %v524_v26 = vld [vmem:[%s718_s0 + $0x20] ss:$8 sps:$4 sm:$0xff]   ;;  %v526_v28 = vld [vmem:[%s718_s0 + $0x34] ss:$8 sps:$4 sm:$0xff]  }
   0xa   :  { %v522_v25 = vld [vmem:[%s718_s0 + $0x64] ss:$8 sps:$4 sm:$0xff]   ;;  %v525_v27 = vld [vmem:[%s718_s0 + $0x60] ss:$8 sps:$4 sm:$0xff]   ;;  %v528_v29 = vld [vmem:[%s718_s0 + $0x74] ss:$8 sps:$4 sm:$0xff]  }
   0xb   :  { %417 = vmatpush3.bf16.msra.mxu0 %v497_v5  ;;  %486 = vmatpush3.bf16.msra.mxu1 %v497_v5  ;;  %v530_v30 = vld [vmem:[%s718_s0 + $0x30] ss:$8 sps:$4 sm:$0xff]   ;;  %v651_v34 = vld [vmem:[%s719_s2] ss:$0 sm:$0xff] }
   0xc   :  { %418 = vmatprep.subr.bf16.mxu0 %v498_v6  ;;  %479 = vmatprep.subr.bf16.mxu1 %v498_v6  ;;  %v531_v31 = vld [vmem:[%s718_s0 + $0x70] ss:$8 sps:$4 sm:$0xff]  }
   0xf   :  { %419 = vmatpush3.bf16.msra.mxu0 %v499_v7  ;;  %487 = vmatpush3.bf16.msra.mxu1 %v499_v7 }
  0x10   :  { %420 = vmatprep.subr.bf16.mxu0 %v500_v8  ;;  %480 = vmatprep.subr.bf16.mxu1 %v500_v8 }
  0x13   :  { %421 = vmatpush3.bf16.msra.mxu0 %v501_v9  ;;  %488 = vmatpush3.bf16.msra.mxu1 %v501_v9 }
  0x14   :  { %422 = vmatprep.subr.bf16.mxu0 %v502_v10  ;;  %481 = vmatprep.subr.bf16.mxu1 %v502_v10 }
  0x17   :  { %423 = vmatpush3.bf16.msra.mxu0 %v503_v13  ;;  %489 = vmatpush3.bf16.msra.mxu1 %v503_v13 }
  0x18   :  { %424 = vmatprep.subr.bf16.mxu0 %v504_v14  ;;  %482 = vmatprep.subr.bf16.mxu1 %v504_v14 }
  0x1b   :  { %425 = vmatpush3.bf16.msra.mxu0 %v505_v15  ;;  %490 = vmatpush3.bf16.msra.mxu1 %v505_v15 }
  0x1c   :  { %426 = vmatprep.subr.bf16.mxu0 %v506_v16  ;;  %483 = vmatprep.subr.bf16.mxu1 %v506_v16 }
  0x1f   :  { %427 = vmatpush3.bf16.msra.mxu0 %v507_v17  ;;  %491 = vmatpush3.bf16.msra.mxu1 %v507_v17 }
  0x22   :  { %279 = vmatmul.mubr.bf16.vlgmr.msra.gmra.mrb[0].mxu0 %v508_v18  ;;  %311 = vmatmul.mubr.bf16.vlgmr.msra.gmra.mrb[0].mxu1 %v511_v19 }
  0x23   :  { %286 = vmatprep.mubr.bf16.mxu0 %v514_v20  ;;  %318 = vmatprep.mubr.bf16.mxu1 %v516_v21 }
  0x2a   :  { %287 = vmatmul.mubr.bf16.gmra.mrb[4].mxu0 %v518_v22  ;;  %319 = vmatmul.mubr.bf16.gmra.mrb[4].mxu1 %v519_v23 }
  0x2b   :  { %294 = vmatprep.mubr.bf16.mxu0 %v520_v24  ;;  %326 = vmatprep.mubr.bf16.mxu1 %v522_v25 }
  0x32   :  { %295 = vmatmul.mubr.bf16.gmra.mrb[8].mxu0 %v524_v26  ;;  %327 = vmatmul.mubr.bf16.gmra.mrb[8].mxu1 %v525_v27 }
  0x33   :  { %302 = vmatprep.mubr.bf16.mxu0 %v526_v28  ;;  %334 = vmatprep.mubr.bf16.mxu1 %v528_v29 }
  0x3a   :  { %303 = vmatmul.mubr.bf16.gmra.mrb[12].mxu0 %v530_v30  ;;  %335 = vmatmul.mubr.bf16.gmra.mrb[12].mxu1 %v531_v31 }
  0xf5   :  { %v428_v32 = vpop.f32.mrb[0].mxu0  ;;  %v452_v33 = vpop.f32.mrb[0].mxu1 }
  0xf6   :  { %v429_v35 = vpop.f32.mrb[1].mxu0  ;;  %v453_v36 = vpop.f32.mrb[1].mxu1 }
  0xf7   :  { %v430_v37 = vadd.f32 %v429_v35, %v428_v32  ;;  %v454_v38 = vadd.f32 %v453_v36, %v452_v33  ;;  %v431_v39 = vpop.f32.mrb[2].mxu0  ;;  %v455_v40 = vpop.f32.mrb[2].mxu1 }
  0xf8   :  { %v432_v41 = vpop.f32.mrb[3].mxu0  ;;  %v456_v42 = vpop.f32.mrb[3].mxu1 }
  0xf9   :  { %v281_v43 = vadd.f32 %v430_v37, %v651_v34  ;;  %v313_v44 = vadd.f32 %v454_v38, %v651_v34  ;;  %v433_v45 = vadd.f32 %v432_v41, %v431_v39  ;;  %v457_v46 = vadd.f32 %v456_v42, %v455_v40 }
  0xfb   :  { %v343_v47 = vmax.f32 %v281_v43, 0.0  ;;  %v351_v48 = vmax.f32 %v313_v44, 0.0  ;;  %v284_v49 = vadd.f32 %v433_v45, %v651_v34  ;;  %v316_v50 = vadd.f32 %v457_v46, %v651_v34 }
  0xfd   :  { %359 = vst [vmem:[%s720_s3] sm:$0xff] %v343_v47  ;;  %367 = vst [vmem:[%s720_s3 + $0x40] sm:$0xff] %v351_v48  ;;  %v344_v51 = vmax.f32 %v284_v49, 0.0  ;;  %v352_v52 = vmax.f32 %v316_v50, 0.0  ;;  %v434_v53 = vpop.f32.mrb[4].mxu0  ;;  %v458_v54 = vpop.f32.mrb[4].mxu1 }
  0xfe   :  { %v435_v55 = vpop.f32.mrb[5].mxu0  ;;  %v459_v56 = vpop.f32.mrb[5].mxu1 }
  0xff   :  { %360 = vst [vmem:[%s720_s3 + $0x8] sm:$0xff] %v344_v51  ;;  %368 = vst [vmem:[%s720_s3 + $0x48] sm:$0xff] %v352_v52  ;;  %v436_v57 = vadd.f32 %v435_v55, %v434_v53  ;;  %v460_v58 = vadd.f32 %v459_v56, %v458_v54  ;;  %v437_v59 = vpop.f32.mrb[6].mxu0  ;;  %v461_v60 = vpop.f32.mrb[6].mxu1 }
 0x100   :  { %v438_v61 = vpop.f32.mrb[7].mxu0  ;;  %v462_v62 = vpop.f32.mrb[7].mxu1 }
 0x101   :  { %v289_v63 = vadd.f32 %v436_v57, %v651_v34  ;;  %v321_v0 = vadd.f32 %v460_v58, %v651_v34  ;;  %v439_v1 = vadd.f32 %v438_v61, %v437_v59  ;;  %v463_v2 = vadd.f32 %v462_v62, %v461_v60 }
 0x103   :  { %v345_v3 = vmax.f32 %v289_v63, 0.0  ;;  %v353_v4 = vmax.f32 %v321_v0, 0.0  ;;  %v292_v5 = vadd.f32 %v439_v1, %v651_v34  ;;  %v324_v6 = vadd.f32 %v463_v2, %v651_v34 }
 0x105   :  { %361 = vst [vmem:[%s720_s3 + $0x10] sm:$0xff] %v345_v3  ;;  %369 = vst [vmem:[%s720_s3 + $0x50] sm:$0xff] %v353_v4  ;;  %v346_v7 = vmax.f32 %v292_v5, 0.0  ;;  %v354_v8 = vmax.f32 %v324_v6, 0.0  ;;  %v440_v9 = vpop.f32.mrb[8].mxu0  ;;  %v464_v10 = vpop.f32.mrb[8].mxu1 }
 0x106   :  { %v441_v11 = vpop.f32.mrb[9].mxu0  ;;  %v465_v12 = vpop.f32.mrb[9].mxu1 }
 0x107   :  { %362 = vst [vmem:[%s720_s3 + $0x18] sm:$0xff] %v346_v7  ;;  %370 = vst [vmem:[%s720_s3 + $0x58] sm:$0xff] %v354_v8  ;;  %v442_v13 = vadd.f32 %v441_v11, %v440_v9  ;;  %v466_v14 = vadd.f32 %v465_v12, %v464_v10  ;;  %v443_v15 = vpop.f32.mrb[10].mxu0  ;;  %v467_v16 = vpop.f32.mrb[10].mxu1 }
 0x108   :  { %v444_v17 = vpop.f32.mrb[11].mxu0  ;;  %v468_v18 = vpop.f32.mrb[11].mxu1 }
 0x109   :  { %v297_v19 = vadd.f32 %v442_v13, %v651_v34  ;;  %v329_v20 = vadd.f32 %v466_v14, %v651_v34  ;;  %v445_v21 = vadd.f32 %v444_v17, %v443_v15  ;;  %v469_v22 = vadd.f32 %v468_v18, %v467_v16 }
 0x10b   :  { %v347_v23 = vmax.f32 %v297_v19, 0.0  ;;  %v355_v24 = vmax.f32 %v329_v20, 0.0  ;;  %v300_v25 = vadd.f32 %v445_v21, %v651_v34  ;;  %v332_v26 = vadd.f32 %v469_v22, %v651_v34 }
 0x10d   :  { %363 = vst [vmem:[%s720_s3 + $0x20] sm:$0xff] %v347_v23  ;;  %371 = vst [vmem:[%s720_s3 + $0x60] sm:$0xff] %v355_v24  ;;  %v348_v27 = vmax.f32 %v300_v25, 0.0  ;;  %v356_v28 = vmax.f32 %v332_v26, 0.0  ;;  %v446_v29 = vpop.f32.mrb[12].mxu0  ;;  %v470_v30 = vpop.f32.mrb[12].mxu1 }
 0x10e   :  { %v447_v31 = vpop.f32.mrb[13].mxu0  ;;  %v471_v32 = vpop.f32.mrb[13].mxu1 }
 0x10f   :  { %364 = vst [vmem:[%s720_s3 + $0x28] sm:$0xff] %v348_v27  ;;  %372 = vst [vmem:[%s720_s3 + $0x68] sm:$0xff] %v356_v28  ;;  %v448_v33 = vadd.f32 %v447_v31, %v446_v29  ;;  %v472_v35 = vadd.f32 %v471_v32, %v470_v30  ;;  %v449_v36 = vpop.f32.mrb[14].mxu0  ;;  %v473_v37 = vpop.f32.mrb[14].mxu1 }
 0x110   :  { %v450_v38 = vpop.f32.mrb[15].mxu0  ;;  %v474_v39 = vpop.f32.mrb[15].mxu1 }
 0x111   :  { %v305_v40 = vadd.f32 %v448_v33, %v651_v34  ;;  %v337_v41 = vadd.f32 %v472_v35, %v651_v34  ;;  %v451_v42 = vadd.f32 %v450_v38, %v449_v36  ;;  %v475_v43 = vadd.f32 %v474_v39, %v473_v37 }
 0x113   :  { %v349_v44 = vmax.f32 %v305_v40, 0.0  ;;  %v357_v45 = vmax.f32 %v337_v41, 0.0  ;;  %v308_v46 = vadd.f32 %v451_v42, %v651_v34  ;;  %v340_v47 = vadd.f32 %v475_v43, %v651_v34 }
 0x115   :  { %365 = vst [vmem:[%s720_s3 + $0x30] sm:$0xff] %v349_v44  ;;  %373 = vst [vmem:[%s720_s3 + $0x70] sm:$0xff] %v357_v45  ;;  %v350_v48 = vmax.f32 %v308_v46, 0.0  ;;  %v358_v49 = vmax.f32 %v340_v47, 0.0 }
 0x117   :  { %366 = vst [vmem:[%s720_s3 + $0x38] sm:$0xff] %v350_v48  ;;  %374 = vst [vmem:[%s720_s3 + $0x78] sm:$0xff] %v358_v49 }

</bundles_post_ra>
